<compile_context>
chip_gen: v6e
topology: v6e:2x2x1
jax: 0.10.0
libtpu: 0.0.40
codegen_flags: <defaults>
</compile_context>

<pallas_src>
import functools

import jax
import jax.numpy as jnp
from jax import lax
from jax.experimental import pallas as pl
from jax.experimental.pallas import tpu as pltpu

N_EMBD = 32
BLOCK_SIZE = 8          # T (sequence length)
N_HEAD = 4
HEAD_SIZE = N_EMBD // N_HEAD
N_LAYER = 3
VOCAB_SIZE = 65
VOCAB_PAD = 128         # pad vocab to a full lane width for lane-dense stores
LN_EPS = 1e-5           # torch.nn.LayerNorm default
NEG_INF = -1e30         # large finite negative instead of -inf


def _layernorm(x, gamma, beta):
    # biased variance over last dim, matching torch.nn.LayerNorm
    mean = jnp.mean(x, axis=-1, keepdims=True)
    var = jnp.mean((x - mean) ** 2, axis=-1, keepdims=True)
    return (x - mean) * lax.rsqrt(var + LN_EPS) * gamma + beta


# ---------------------------------------------------------------------------
# Fused forward kernel: embedding -> 3 Blocks -> ln_f -> lm_head (padded vocab)
# ---------------------------------------------------------------------------
def fused_forward_kernel(idx_ref, tok_emb_ref, pos_emb_ref,
                         wk_ref, wq_ref, wv_ref, wp_ref, bp_ref, g1_ref, b1_ref,
                         w1_ref, bf1_ref, w2_ref, bf2_ref,
                         gf_ref, bf_ref, wlm_ref, blm_ref,
                         out_ref, *, batch, seq):
    B, T, C, H, HS = batch, seq, N_EMBD, N_HEAD, HEAD_SIZE
    BT = B * T

    # ---- token embedding as one-hot MXU matmul + tiled position add ----
    ids = idx_ref[...]                                              # (BT, 1) int32
    vocab_iota = lax.broadcasted_iota(jnp.int32, (BT, VOCAB_PAD), 1)
    onehot = (ids == vocab_iota).astype(jnp.float32)                # (BT, VP)
    x = jnp.dot(onehot, tok_emb_ref[...],
                preferred_element_type=jnp.float32)                 # (BT, C)
    pos = pos_emb_ref[...][:T]                                      # (T, C)
    x = x + jnp.concatenate([pos] * B, axis=0)                      # (BT, C)

    # causal mask shared across layers/heads, broadcast over batch
    row = lax.broadcasted_iota(jnp.int32, (T, T), 0)
    col = lax.broadcasted_iota(jnp.int32, (T, T), 1)
    causal = row >= col
    scale = C ** (-0.5)        # module quirk: scaled by n_embd**-0.5

    for l in range(N_LAYER):   # static unroll over layers (weights stacked on axis 0)
        g1 = g1_ref[l]                                              # (1, C)
        b1 = b1_ref[l]

        # ---- self-attention branch on ln1(x) ----
        xn = _layernorm(x, g1, b1)
        q = jnp.dot(xn, wq_ref[l], preferred_element_type=jnp.float32)   # (BT, C)
        k = jnp.dot(xn, wk_ref[l], preferred_element_type=jnp.float32)
        v = jnp.dot(xn, wv_ref[l], preferred_element_type=jnp.float32)
        q3 = q.reshape(B, T, C)
        k3 = k.reshape(B, T, C)
        v3 = v.reshape(B, T, C)

        head_outs = []
        for h in range(H):                 # static unroll over heads
            sl = slice(h * HS, (h + 1) * HS)
            qh, kh, vh = q3[..., sl], k3[..., sl], v3[..., sl]       # (B, T, HS)
            s = jnp.einsum('bid,bjd->bij', qh, kh,
                           preferred_element_type=jnp.float32) * scale
            s = jnp.where(causal, s, NEG_INF)
            s = s - jnp.max(s, axis=-1, keepdims=True)
            p = jnp.exp(s)
            p = p / jnp.sum(p, axis=-1, keepdims=True)
            head_outs.append(jnp.einsum('bij,bjd->bid', p, vh,
                                        preferred_element_type=jnp.float32))
        attn = jnp.concatenate(head_outs, axis=-1).reshape(BT, C)    # (BT, C)
        attn = jnp.dot(attn, wp_ref[l],
                       preferred_element_type=jnp.float32) + bp_ref[l]
        x = x + attn

        # ---- feed-forward branch on ln1(x) (module reuses ln1; ln2 unused) ----
        xn1 = _layernorm(x, g1, b1)
        h1 = jnp.dot(xn1, w1_ref[l],
                     preferred_element_type=jnp.float32) + bf1_ref[l]    # (BT, 4C)
        h1 = jnp.maximum(h1, 0.0)
        x = x + jnp.dot(h1, w2_ref[l],
                        preferred_element_type=jnp.float32) + bf2_ref[l]

    # ---- final ln_f + lm_head (padded vocab -> lane-dense (BT, 128) store) ----
    xf = _layernorm(x, gf_ref[...], bf_ref[...])
    out_ref[...] = jnp.dot(xf, wlm_ref[...],
                           preferred_element_type=jnp.float32) + blm_ref[...]


# ---------------------------------------------------------------------------
# Wrapper
# ---------------------------------------------------------------------------
def run_forward(params, idx2, batch, seq):
    BT = batch * seq
    kernel = functools.partial(fused_forward_kernel, batch=batch, seq=seq)
    operands = (idx2, params["tok_emb"], params["pos_emb"],
                params["wk"], params["wq"], params["wv"], params["wp"],
                params["bp"], params["g1"], params["b1"],
                params["w1"], params["bf1"], params["w2"], params["bf2"],
                params["g_f"], params["b_f"], params["w_lm"], params["b_lm"])
    vmem = pl.BlockSpec(memory_space=pltpu.MemorySpace.VMEM)   # whole array in VMEM
    return pl.pallas_call(
        kernel,
        out_shape=jax.ShapeDtypeStruct((BT, VOCAB_PAD), jnp.float32),
        in_specs=[vmem] * len(operands),
        out_specs=vmem,
    )(*operands)


@jax.jit
def forward(params, idx):
    """idx: (B, T) int32 -> logits (B, T, VOCAB_SIZE) float32 (targets=None path)."""
    B, T = idx.shape
    idx2 = idx.reshape(B * T, 1).astype(jnp.int32)
    logits_flat = run_forward(params, idx2, B, T)                 # (B*T, VOCAB_PAD)
    return logits_flat[:, :VOCAB_SIZE].reshape(B, T, VOCAB_SIZE)


def init_params(key):
    keys = iter(jax.random.split(key, 32))
    std = 0.02

    def w(shape):
        return jax.random.normal(next(keys), shape, jnp.float32) * std

    def stack(fn):
        return jnp.stack([fn() for _ in range(N_LAYER)], axis=0)

    # embeddings / lm_head padded along vocab to 128 (extra rows/cols are zero
    # and never selected / sliced off in the wrapper)
    tok_emb = jnp.zeros((VOCAB_PAD, N_EMBD), jnp.float32)
    tok_emb = tok_emb.at[:VOCAB_SIZE].set(w((VOCAB_SIZE, N_EMBD)))
    w_lm = jnp.zeros((N_EMBD, VOCAB_PAD), jnp.float32)
    w_lm = w_lm.at[:, :VOCAB_SIZE].set(w((VOCAB_SIZE, N_EMBD)).T)  # stored (in, out)

    params = {
        "tok_emb": tok_emb,                                   # (128, C)
        "pos_emb": w((BLOCK_SIZE, N_EMBD)),                   # (T, C)
        # per-layer stacks; Linear weights pre-transposed to (in, out)
        "wk": stack(lambda: w((N_EMBD, N_EMBD))),             # (L, C, C)
        "wq": stack(lambda: w((N_EMBD, N_EMBD))),
        "wv": stack(lambda: w((N_EMBD, N_EMBD))),
        "wp": stack(lambda: w((N_EMBD, N_EMBD))),
        "bp": jnp.zeros((N_LAYER, 1, N_EMBD), jnp.float32),
        "g1": jnp.ones((N_LAYER, 1, N_EMBD), jnp.float32),
        "b1": jnp.zeros((N_LAYER, 1, N_EMBD), jnp.float32),
        # ln2 exists in the module but is never used in forward -> omitted
        "w1": stack(lambda: w((N_EMBD, 4 * N_EMBD))),         # (L, C, 4C)
        "bf1": jnp.zeros((N_LAYER, 1, 4 * N_EMBD), jnp.float32),
        "w2": stack(lambda: w((4 * N_EMBD, N_EMBD))),         # (L, 4C, C)
        "bf2": jnp.zeros((N_LAYER, 1, N_EMBD), jnp.float32),
        "g_f": jnp.ones((1, N_EMBD), jnp.float32),
        "b_f": jnp.zeros((1, N_EMBD), jnp.float32),
        "w_lm": w_lm,                                         # (C, 128)
        "b_lm": jnp.zeros((1, VOCAB_PAD), jnp.float32),
    }
    return params


if __name__ == "__main__":
    key = jax.random.PRNGKey(0)
    k_params, k_idx = jax.random.split(key)
    params = init_params(k_params)

    B, T = 2, BLOCK_SIZE
    idx = jax.random.randint(k_idx, (B, T), 0, VOCAB_SIZE, dtype=jnp.int32)

    logits = forward(params, idx)
    jax.block_until_ready(logits)
    assert logits.shape == (B, T, VOCAB_SIZE)
    assert bool(jnp.all(jnp.isfinite(logits)))
    print("KERNEL_OK")
</pallas_src>

<mosaic_0001>
module attributes {stable_mosaic.version = 11 : i64} {
  func.func @fused_forward_kernel(%arg0: memref<16x1xi32, #tpu.memory_space<vmem>>, %arg1: memref<128x32xf32, #tpu.memory_space<vmem>>, %arg2: memref<8x32xf32, #tpu.memory_space<vmem>>, %arg3: memref<3x32x32xf32, #tpu.memory_space<vmem>>, %arg4: memref<3x32x32xf32, #tpu.memory_space<vmem>>, %arg5: memref<3x32x32xf32, #tpu.memory_space<vmem>>, %arg6: memref<3x32x32xf32, #tpu.memory_space<vmem>>, %arg7: memref<3x1x32xf32, #tpu.memory_space<vmem>>, %arg8: memref<3x1x32xf32, #tpu.memory_space<vmem>>, %arg9: memref<3x1x32xf32, #tpu.memory_space<vmem>>, %arg10: memref<3x32x128xf32, #tpu.memory_space<vmem>>, %arg11: memref<3x1x128xf32, #tpu.memory_space<vmem>>, %arg12: memref<3x128x32xf32, #tpu.memory_space<vmem>>, %arg13: memref<3x1x32xf32, #tpu.memory_space<vmem>>, %arg14: memref<1x32xf32, #tpu.memory_space<vmem>>, %arg15: memref<1x32xf32, #tpu.memory_space<vmem>>, %arg16: memref<32x128xf32, #tpu.memory_space<vmem>>, %arg17: memref<1x128xf32, #tpu.memory_space<vmem>>, %arg18: memref<16x128xf32, #tpu.memory_space<vmem>>) attributes {dimension_semantics = [], scalar_prefetch = 0 : i64, scratch_operands = 0 : i64, tpu.core_type = #tpu.core_type<tc>} {
    %c0 = arith.constant 0 : index
    %c0_0 = arith.constant 0 : index
    %0 = vector.load %arg0[%c0, %c0_0] : memref<16x1xi32, #tpu.memory_space<vmem>>, vector<16x1xi32>
    %1 = tpu.iota {dimensions = array<i32: 1>} : vector<16x128xi32>
    %2 = vector.broadcast %0 : vector<16x1xi32> to vector<16x128xi32>
    %3 = arith.cmpi eq, %2, %1 : vector<16x128xi32>
    %4 = arith.extui %3 : vector<16x128xi1> to vector<16x128xi32>
    %5 = arith.sitofp %4 : vector<16x128xi32> to vector<16x128xf32>
    %c0_1 = arith.constant 0 : index
    %c0_2 = arith.constant 0 : index
    %6 = vector.load %arg1[%c0_1, %c0_2] : memref<128x32xf32, #tpu.memory_space<vmem>>, vector<128x32xf32>
    %cst = arith.constant dense<0.000000e+00> : vector<16x32xf32>
    %7 = tpu.matmul %5, %6, %cst {dimension_numbers = #tpu.dot_dimension_numbers<[1], [0], [0], [1], [0, 0, 1, 1], [], []>} : vector<16x128xf32>, vector<128x32xf32>, vector<16x32xf32> -> vector<16x32xf32>
    %c0_3 = arith.constant 0 : index
    %c0_4 = arith.constant 0 : index
    %8 = vector.load %arg2[%c0_3, %c0_4] : memref<8x32xf32, #tpu.memory_space<vmem>>, vector<8x32xf32>
    %9 = tpu.concatenate %8, %8 in 0 : vector<8x32xf32>, vector<8x32xf32> -> vector<16x32xf32>
    %10 = arith.addf %7, %9 : vector<16x32xf32>
    %11 = tpu.iota {dimensions = array<i32: 0>} : vector<8x8xi32>
    %12 = tpu.iota {dimensions = array<i32: 1>} : vector<8x8xi32>
    %13 = arith.cmpi sge, %11, %12 : vector<8x8xi32>
    %c0_5 = arith.constant 0 : index
    %c0_6 = arith.constant 0 : index
    %c0_7 = arith.constant 0 : index
    %14 = vector.load %arg8[%c0_5, %c0_6, %c0_7] : memref<3x1x32xf32, #tpu.memory_space<vmem>>, vector<1x1x32xf32>
    %15 = vector.shape_cast %14 : vector<1x1x32xf32> to vector<1x32xf32>
    %c0_8 = arith.constant 0 : index
    %c0_9 = arith.constant 0 : index
    %c0_10 = arith.constant 0 : index
    %16 = vector.load %arg9[%c0_8, %c0_9, %c0_10] : memref<3x1x32xf32, #tpu.memory_space<vmem>>, vector<1x1x32xf32>
    %17 = vector.shape_cast %16 : vector<1x1x32xf32> to vector<1x32xf32>
    %cst_11 = arith.constant dense<0.000000e+00> : vector<16xf32>
    %18 = vector.multi_reduction <add>, %10, %cst_11 [1] : vector<16x32xf32> to vector<16xf32>
    %19 = vector.shape_cast %18 : vector<16xf32> to vector<16x1xf32>
    %cst_12 = arith.constant 3.200000e+01 : f32
    %20 = vector.broadcast %cst_12 : f32 to vector<16x1xf32>
    %21 = arith.divf %19, %20 : vector<16x1xf32>
    %22 = vector.broadcast %21 : vector<16x1xf32> to vector<16x32xf32>
    %23 = arith.subf %10, %22 : vector<16x32xf32>
    %24 = arith.mulf %23, %23 : vector<16x32xf32>
    %cst_13 = arith.constant dense<0.000000e+00> : vector<16xf32>
    %25 = vector.multi_reduction <add>, %24, %cst_13 [1] : vector<16x32xf32> to vector<16xf32>
    %26 = vector.shape_cast %25 : vector<16xf32> to vector<16x1xf32>
    %cst_14 = arith.constant 3.200000e+01 : f32
    %27 = vector.broadcast %cst_14 : f32 to vector<16x1xf32>
    %28 = arith.divf %26, %27 : vector<16x1xf32>
    %29 = vector.broadcast %21 : vector<16x1xf32> to vector<16x32xf32>
    %30 = arith.subf %10, %29 : vector<16x32xf32>
    %cst_15 = arith.constant 9.99999974E-6 : f32
    %31 = vector.broadcast %cst_15 : f32 to vector<16x1xf32>
    %32 = arith.addf %28, %31 : vector<16x1xf32>
    %33 = math.rsqrt %32 : vector<16x1xf32>
    %34 = vector.broadcast %33 : vector<16x1xf32> to vector<16x32xf32>
    %35 = arith.mulf %30, %34 : vector<16x32xf32>
    %36 = vector.broadcast %15 : vector<1x32xf32> to vector<16x32xf32>
    %37 = arith.mulf %35, %36 : vector<16x32xf32>
    %38 = vector.broadcast %17 : vector<1x32xf32> to vector<16x32xf32>
    %39 = arith.addf %37, %38 : vector<16x32xf32>
    %c0_16 = arith.constant 0 : index
    %c0_17 = arith.constant 0 : index
    %c0_18 = arith.constant 0 : index
    %40 = vector.load %arg4[%c0_16, %c0_17, %c0_18] : memref<3x32x32xf32, #tpu.memory_space<vmem>>, vector<1x32x32xf32>
    %41 = vector.shape_cast %40 : vector<1x32x32xf32> to vector<32x32xf32>
    %cst_19 = arith.constant dense<0.000000e+00> : vector<16x32xf32>
    %42 = tpu.matmul %39, %41, %cst_19 {dimension_numbers = #tpu.dot_dimension_numbers<[1], [0], [0], [1], [0, 0, 1, 1], [], []>} : vector<16x32xf32>, vector<32x32xf32>, vector<16x32xf32> -> vector<16x32xf32>
    %c0_20 = arith.constant 0 : index
    %c0_21 = arith.constant 0 : index
    %c0_22 = arith.constant 0 : index
    %43 = vector.load %arg3[%c0_20, %c0_21, %c0_22] : memref<3x32x32xf32, #tpu.memory_space<vmem>>, vector<1x32x32xf32>
    %44 = vector.shape_cast %43 : vector<1x32x32xf32> to vector<32x32xf32>
    %cst_23 = arith.constant dense<0.000000e+00> : vector<16x32xf32>
    %45 = tpu.matmul %39, %44, %cst_23 {dimension_numbers = #tpu.dot_dimension_numbers<[1], [0], [0], [1], [0, 0, 1, 1], [], []>} : vector<16x32xf32>, vector<32x32xf32>, vector<16x32xf32> -> vector<16x32xf32>
    %c0_24 = arith.constant 0 : index
    %c0_25 = arith.constant 0 : index
    %c0_26 = arith.constant 0 : index
    %46 = vector.load %arg5[%c0_24, %c0_25, %c0_26] : memref<3x32x32xf32, #tpu.memory_space<vmem>>, vector<1x32x32xf32>
    %47 = vector.shape_cast %46 : vector<1x32x32xf32> to vector<32x32xf32>
    %cst_27 = arith.constant dense<0.000000e+00> : vector<16x32xf32>
    %48 = tpu.matmul %39, %47, %cst_27 {dimension_numbers = #tpu.dot_dimension_numbers<[1], [0], [0], [1], [0, 0, 1, 1], [], []>} : vector<16x32xf32>, vector<32x32xf32>, vector<16x32xf32> -> vector<16x32xf32>
    %49 = vector.shape_cast %42 : vector<16x32xf32> to vector<2x8x32xf32>
    %50 = vector.shape_cast %45 : vector<16x32xf32> to vector<2x8x32xf32>
    %51 = vector.shape_cast %48 : vector<16x32xf32> to vector<2x8x32xf32>
    %52 = vector.extract_strided_slice %49 {offsets = [0, 0, 0], sizes = [2, 8, 8], strides = [1, 1, 1]} : vector<2x8x32xf32> to vector<2x8x8xf32>
    %53 = vector.extract_strided_slice %50 {offsets = [0, 0, 0], sizes = [2, 8, 8], strides = [1, 1, 1]} : vector<2x8x32xf32> to vector<2x8x8xf32>
    %54 = vector.extract_strided_slice %51 {offsets = [0, 0, 0], sizes = [2, 8, 8], strides = [1, 1, 1]} : vector<2x8x32xf32> to vector<2x8x8xf32>
    "tpu.trace_start"() <{level = 10 : i32, message = "bid,bjd->bij"}> : () -> ()
    %cst_28 = arith.constant dense<0.000000e+00> : vector<2x8x8xf32>
    %55 = tpu.matmul %52, %53, %cst_28 {dimension_numbers = #tpu.dot_dimension_numbers<[2], [2], [1], [1], [0, 0, 0, 1, 1, 1], [0], [0]>} : vector<2x8x8xf32>, vector<2x8x8xf32>, vector<2x8x8xf32> -> vector<2x8x8xf32>
    "tpu.trace_stop"() : () -> ()
    %cst_29 = arith.constant 0.176776692 : f32
    %56 = vector.broadcast %cst_29 : f32 to vector<2x8x8xf32>
    %57 = arith.mulf %55, %56 : vector<2x8x8xf32>
    %cst_30 = arith.constant -1.000000e+30 : f32
    %58 = vector.shape_cast %13 : vector<8x8xi1> to vector<1x8x8xi1>
    %59 = vector.broadcast %58 : vector<1x8x8xi1> to vector<2x8x8xi1>
    %60 = vector.broadcast %cst_30 : f32 to vector<2x8x8xf32>
    %61 = arith.select %59, %57, %60 : vector<2x8x8xi1>, vector<2x8x8xf32>
    %cst_31 = arith.constant dense<0xFF800000> : vector<2x8xf32>
    %62 = vector.multi_reduction <maximumf>, %61, %cst_31 [2] : vector<2x8x8xf32> to vector<2x8xf32>
    %63 = vector.shape_cast %62 : vector<2x8xf32> to vector<2x8x1xf32>
    %64 = vector.broadcast %63 : vector<2x8x1xf32> to vector<2x8x8xf32>
    %65 = arith.subf %61, %64 : vector<2x8x8xf32>
    %66 = math.exp %65 : vector<2x8x8xf32>
    %cst_32 = arith.constant dense<0.000000e+00> : vector<2x8xf32>
    %67 = vector.multi_reduction <add>, %66, %cst_32 [2] : vector<2x8x8xf32> to vector<2x8xf32>
    %68 = vector.shape_cast %67 : vector<2x8xf32> to vector<2x8x1xf32>
    %69 = vector.broadcast %68 : vector<2x8x1xf32> to vector<2x8x8xf32>
    %70 = arith.divf %66, %69 : vector<2x8x8xf32>
    "tpu.trace_start"() <{level = 10 : i32, message = "bij,bjd->bid"}> : () -> ()
    %cst_33 = arith.constant dense<0.000000e+00> : vector<2x8x8xf32>
    %71 = tpu.matmul %70, %54, %cst_33 {dimension_numbers = #tpu.dot_dimension_numbers<[2], [1], [1], [2], [0, 0, 0, 1, 1, 2], [0], [0]>} : vector<2x8x8xf32>, vector<2x8x8xf32>, vector<2x8x8xf32> -> vector<2x8x8xf32>
    "tpu.trace_stop"() : () -> ()
    %72 = vector.extract_strided_slice %49 {offsets = [0, 0, 8], sizes = [2, 8, 8], strides = [1, 1, 1]} : vector<2x8x32xf32> to vector<2x8x8xf32>
    %73 = vector.extract_strided_slice %50 {offsets = [0, 0, 8], sizes = [2, 8, 8], strides = [1, 1, 1]} : vector<2x8x32xf32> to vector<2x8x8xf32>
    %74 = vector.extract_strided_slice %51 {offsets = [0, 0, 8], sizes = [2, 8, 8], strides = [1, 1, 1]} : vector<2x8x32xf32> to vector<2x8x8xf32>
    "tpu.trace_start"() <{level = 10 : i32, message = "bid,bjd->bij"}> : () -> ()
    %cst_34 = arith.constant dense<0.000000e+00> : vector<2x8x8xf32>
    %75 = tpu.matmul %72, %73, %cst_34 {dimension_numbers = #tpu.dot_dimension_numbers<[2], [2], [1], [1], [0, 0, 0, 1, 1, 1], [0], [0]>} : vector<2x8x8xf32>, vector<2x8x8xf32>, vector<2x8x8xf32> -> vector<2x8x8xf32>
    "tpu.trace_stop"() : () -> ()
    %cst_35 = arith.constant 0.176776692 : f32
    %76 = vector.broadcast %cst_35 : f32 to vector<2x8x8xf32>
    %77 = arith.mulf %75, %76 : vector<2x8x8xf32>
    %cst_36 = arith.constant -1.000000e+30 : f32
    %78 = vector.shape_cast %13 : vector<8x8xi1> to vector<1x8x8xi1>
    %79 = vector.broadcast %78 : vector<1x8x8xi1> to vector<2x8x8xi1>
    %80 = vector.broadcast %cst_36 : f32 to vector<2x8x8xf32>
    %81 = arith.select %79, %77, %80 : vector<2x8x8xi1>, vector<2x8x8xf32>
    %cst_37 = arith.constant dense<0xFF800000> : vector<2x8xf32>
    %82 = vector.multi_reduction <maximumf>, %81, %cst_37 [2] : vector<2x8x8xf32> to vector<2x8xf32>
    %83 = vector.shape_cast %82 : vector<2x8xf32> to vector<2x8x1xf32>
    %84 = vector.broadcast %83 : vector<2x8x1xf32> to vector<2x8x8xf32>
    %85 = arith.subf %81, %84 : vector<2x8x8xf32>
    %86 = math.exp %85 : vector<2x8x8xf32>
    %cst_38 = arith.constant dense<0.000000e+00> : vector<2x8xf32>
    %87 = vector.multi_reduction <add>, %86, %cst_38 [2] : vector<2x8x8xf32> to vector<2x8xf32>
    %88 = vector.shape_cast %87 : vector<2x8xf32> to vector<2x8x1xf32>
    %89 = vector.broadcast %88 : vector<2x8x1xf32> to vector<2x8x8xf32>
    %90 = arith.divf %86, %89 : vector<2x8x8xf32>
    "tpu.trace_start"() <{level = 10 : i32, message = "bij,bjd->bid"}> : () -> ()
    %cst_39 = arith.constant dense<0.000000e+00> : vector<2x8x8xf32>
    %91 = tpu.matmul %90, %74, %cst_39 {dimension_numbers = #tpu.dot_dimension_numbers<[2], [1], [1], [2], [0, 0, 0, 1, 1, 2], [0], [0]>} : vector<2x8x8xf32>, vector<2x8x8xf32>, vector<2x8x8xf32> -> vector<2x8x8xf32>
    "tpu.trace_stop"() : () -> ()
    %92 = vector.extract_strided_slice %49 {offsets = [0, 0, 16], sizes = [2, 8, 8], strides = [1, 1, 1]} : vector<2x8x32xf32> to vector<2x8x8xf32>
    %93 = vector.extract_strided_slice %50 {offsets = [0, 0, 16], sizes = [2, 8, 8], strides = [1, 1, 1]} : vector<2x8x32xf32> to vector<2x8x8xf32>
    %94 = vector.extract_strided_slice %51 {offsets = [0, 0, 16], sizes = [2, 8, 8], strides = [1, 1, 1]} : vector<2x8x32xf32> to vector<2x8x8xf32>
    "tpu.trace_start"() <{level = 10 : i32, message = "bid,bjd->bij"}> : () -> ()
    %cst_40 = arith.constant dense<0.000000e+00> : vector<2x8x8xf32>
    %95 = tpu.matmul %92, %93, %cst_40 {dimension_numbers = #tpu.dot_dimension_numbers<[2], [2], [1], [1], [0, 0, 0, 1, 1, 1], [0], [0]>} : vector<2x8x8xf32>, vector<2x8x8xf32>, vector<2x8x8xf32> -> vector<2x8x8xf32>
    "tpu.trace_stop"() : () -> ()
    %cst_41 = arith.constant 0.176776692 : f32
    %96 = vector.broadcast %cst_41 : f32 to vector<2x8x8xf32>
    %97 = arith.mulf %95, %96 : vector<2x8x8xf32>
    %cst_42 = arith.constant -1.000000e+30 : f32
    %98 = vector.shape_cast %13 : vector<8x8xi1> to vector<1x8x8xi1>
    %99 = vector.broadcast %98 : vector<1x8x8xi1> to vector<2x8x8xi1>
    %100 = vector.broadcast %cst_42 : f32 to vector<2x8x8xf32>
    %101 = arith.select %99, %97, %100 : vector<2x8x8xi1>, vector<2x8x8xf32>
    %cst_43 = arith.constant dense<0xFF800000> : vector<2x8xf32>
    %102 = vector.multi_reduction <maximumf>, %101, %cst_43 [2] : vector<2x8x8xf32> to vector<2x8xf32>
    %103 = vector.shape_cast %102 : vector<2x8xf32> to vector<2x8x1xf32>
    %104 = vector.broadcast %103 : vector<2x8x1xf32> to vector<2x8x8xf32>
    %105 = arith.subf %101, %104 : vector<2x8x8xf32>
    %106 = math.exp %105 : vector<2x8x8xf32>
    %cst_44 = arith.constant dense<0.000000e+00> : vector<2x8xf32>
    %107 = vector.multi_reduction <add>, %106, %cst_44 [2] : vector<2x8x8xf32> to vector<2x8xf32>
    %108 = vector.shape_cast %107 : vector<2x8xf32> to vector<2x8x1xf32>
    %109 = vector.broadcast %108 : vector<2x8x1xf32> to vector<2x8x8xf32>
    %110 = arith.divf %106, %109 : vector<2x8x8xf32>
    "tpu.trace_start"() <{level = 10 : i32, message = "bij,bjd->bid"}> : () -> ()
    %cst_45 = arith.constant dense<0.000000e+00> : vector<2x8x8xf32>
    %111 = tpu.matmul %110, %94, %cst_45 {dimension_numbers = #tpu.dot_dimension_numbers<[2], [1], [1], [2], [0, 0, 0, 1, 1, 2], [0], [0]>} : vector<2x8x8xf32>, vector<2x8x8xf32>, vector<2x8x8xf32> -> vector<2x8x8xf32>
    "tpu.trace_stop"() : () -> ()
    %112 = vector.extract_strided_slice %49 {offsets = [0, 0, 24], sizes = [2, 8, 8], strides = [1, 1, 1]} : vector<2x8x32xf32> to vector<2x8x8xf32>
    %113 = vector.extract_strided_slice %50 {offsets = [0, 0, 24], sizes = [2, 8, 8], strides = [1, 1, 1]} : vector<2x8x32xf32> to vector<2x8x8xf32>
    %114 = vector.extract_strided_slice %51 {offsets = [0, 0, 24], sizes = [2, 8, 8], strides = [1, 1, 1]} : vector<2x8x32xf32> to vector<2x8x8xf32>
    "tpu.trace_start"() <{level = 10 : i32, message = "bid,bjd->bij"}> : () -> ()
    %cst_46 = arith.constant dense<0.000000e+00> : vector<2x8x8xf32>
    %115 = tpu.matmul %112, %113, %cst_46 {dimension_numbers = #tpu.dot_dimension_numbers<[2], [2], [1], [1], [0, 0, 0, 1, 1, 1], [0], [0]>} : vector<2x8x8xf32>, vector<2x8x8xf32>, vector<2x8x8xf32> -> vector<2x8x8xf32>
    "tpu.trace_stop"() : () -> ()
    %cst_47 = arith.constant 0.176776692 : f32
    %116 = vector.broadcast %cst_47 : f32 to vector<2x8x8xf32>
    %117 = arith.mulf %115, %116 : vector<2x8x8xf32>
    %cst_48 = arith.constant -1.000000e+30 : f32
    %118 = vector.shape_cast %13 : vector<8x8xi1> to vector<1x8x8xi1>
    %119 = vector.broadcast %118 : vector<1x8x8xi1> to vector<2x8x8xi1>
    %120 = vector.broadcast %cst_48 : f32 to vector<2x8x8xf32>
    %121 = arith.select %119, %117, %120 : vector<2x8x8xi1>, vector<2x8x8xf32>
    %cst_49 = arith.constant dense<0xFF800000> : vector<2x8xf32>
    %122 = vector.multi_reduction <maximumf>, %121, %cst_49 [2] : vector<2x8x8xf32> to vector<2x8xf32>
    %123 = vector.shape_cast %122 : vector<2x8xf32> to vector<2x8x1xf32>
    %124 = vector.broadcast %123 : vector<2x8x1xf32> to vector<2x8x8xf32>
    %125 = arith.subf %121, %124 : vector<2x8x8xf32>
    %126 = math.exp %125 : vector<2x8x8xf32>
    %cst_50 = arith.constant dense<0.000000e+00> : vector<2x8xf32>
    %127 = vector.multi_reduction <add>, %126, %cst_50 [2] : vector<2x8x8xf32> to vector<2x8xf32>
    %128 = vector.shape_cast %127 : vector<2x8xf32> to vector<2x8x1xf32>
    %129 = vector.broadcast %128 : vector<2x8x1xf32> to vector<2x8x8xf32>
    %130 = arith.divf %126, %129 : vector<2x8x8xf32>
    "tpu.trace_start"() <{level = 10 : i32, message = "bij,bjd->bid"}> : () -> ()
    %cst_51 = arith.constant dense<0.000000e+00> : vector<2x8x8xf32>
    %131 = tpu.matmul %130, %114, %cst_51 {dimension_numbers = #tpu.dot_dimension_numbers<[2], [1], [1], [2], [0, 0, 0, 1, 1, 2], [0], [0]>} : vector<2x8x8xf32>, vector<2x8x8xf32>, vector<2x8x8xf32> -> vector<2x8x8xf32>
    "tpu.trace_stop"() : () -> ()
    %132 = tpu.concatenate %71, %91, %111, %131 in 2 : vector<2x8x8xf32>, vector<2x8x8xf32>, vector<2x8x8xf32>, vector<2x8x8xf32> -> vector<2x8x32xf32>
    %133 = vector.shape_cast %132 : vector<2x8x32xf32> to vector<16x32xf32>
    %c0_52 = arith.constant 0 : index
    %c0_53 = arith.constant 0 : index
    %c0_54 = arith.constant 0 : index
    %134 = vector.load %arg6[%c0_52, %c0_53, %c0_54] : memref<3x32x32xf32, #tpu.memory_space<vmem>>, vector<1x32x32xf32>
    %135 = vector.shape_cast %134 : vector<1x32x32xf32> to vector<32x32xf32>
    %cst_55 = arith.constant dense<0.000000e+00> : vector<16x32xf32>
    %136 = tpu.matmul %133, %135, %cst_55 {dimension_numbers = #tpu.dot_dimension_numbers<[1], [0], [0], [1], [0, 0, 1, 1], [], []>} : vector<16x32xf32>, vector<32x32xf32>, vector<16x32xf32> -> vector<16x32xf32>
    %c0_56 = arith.constant 0 : index
    %c0_57 = arith.constant 0 : index
    %c0_58 = arith.constant 0 : index
    %137 = vector.load %arg7[%c0_56, %c0_57, %c0_58] : memref<3x1x32xf32, #tpu.memory_space<vmem>>, vector<1x1x32xf32>
    %138 = vector.shape_cast %137 : vector<1x1x32xf32> to vector<1x32xf32>
    %139 = vector.broadcast %138 : vector<1x32xf32> to vector<16x32xf32>
    %140 = arith.addf %136, %139 : vector<16x32xf32>
    %141 = arith.addf %10, %140 : vector<16x32xf32>
    %cst_59 = arith.constant dense<0.000000e+00> : vector<16xf32>
    %142 = vector.multi_reduction <add>, %141, %cst_59 [1] : vector<16x32xf32> to vector<16xf32>
    %143 = vector.shape_cast %142 : vector<16xf32> to vector<16x1xf32>
    %cst_60 = arith.constant 3.200000e+01 : f32
    %144 = vector.broadcast %cst_60 : f32 to vector<16x1xf32>
    %145 = arith.divf %143, %144 : vector<16x1xf32>
    %146 = vector.broadcast %145 : vector<16x1xf32> to vector<16x32xf32>
    %147 = arith.subf %141, %146 : vector<16x32xf32>
    %148 = arith.mulf %147, %147 : vector<16x32xf32>
    %cst_61 = arith.constant dense<0.000000e+00> : vector<16xf32>
    %149 = vector.multi_reduction <add>, %148, %cst_61 [1] : vector<16x32xf32> to vector<16xf32>
    %150 = vector.shape_cast %149 : vector<16xf32> to vector<16x1xf32>
    %cst_62 = arith.constant 3.200000e+01 : f32
    %151 = vector.broadcast %cst_62 : f32 to vector<16x1xf32>
    %152 = arith.divf %150, %151 : vector<16x1xf32>
    %153 = vector.broadcast %145 : vector<16x1xf32> to vector<16x32xf32>
    %154 = arith.subf %141, %153 : vector<16x32xf32>
    %cst_63 = arith.constant 9.99999974E-6 : f32
    %155 = vector.broadcast %cst_63 : f32 to vector<16x1xf32>
    %156 = arith.addf %152, %155 : vector<16x1xf32>
    %157 = math.rsqrt %156 : vector<16x1xf32>
    %158 = vector.broadcast %157 : vector<16x1xf32> to vector<16x32xf32>
    %159 = arith.mulf %154, %158 : vector<16x32xf32>
    %160 = vector.broadcast %15 : vector<1x32xf32> to vector<16x32xf32>
    %161 = arith.mulf %159, %160 : vector<16x32xf32>
    %162 = vector.broadcast %17 : vector<1x32xf32> to vector<16x32xf32>
    %163 = arith.addf %161, %162 : vector<16x32xf32>
    %c0_64 = arith.constant 0 : index
    %c0_65 = arith.constant 0 : index
    %c0_66 = arith.constant 0 : index
    %164 = vector.load %arg10[%c0_64, %c0_65, %c0_66] : memref<3x32x128xf32, #tpu.memory_space<vmem>>, vector<1x32x128xf32>
    %165 = vector.shape_cast %164 : vector<1x32x128xf32> to vector<32x128xf32>
    %cst_67 = arith.constant dense<0.000000e+00> : vector<16x128xf32>
    %166 = tpu.matmul %163, %165, %cst_67 {dimension_numbers = #tpu.dot_dimension_numbers<[1], [0], [0], [1], [0, 0, 1, 1], [], []>} : vector<16x32xf32>, vector<32x128xf32>, vector<16x128xf32> -> vector<16x128xf32>
    %c0_68 = arith.constant 0 : index
    %c0_69 = arith.constant 0 : index
    %c0_70 = arith.constant 0 : index
    %167 = vector.load %arg11[%c0_68, %c0_69, %c0_70] : memref<3x1x128xf32, #tpu.memory_space<vmem>>, vector<1x1x128xf32>
    %168 = vector.shape_cast %167 : vector<1x1x128xf32> to vector<1x128xf32>
    %169 = vector.broadcast %168 : vector<1x128xf32> to vector<16x128xf32>
    %170 = arith.addf %166, %169 : vector<16x128xf32>
    %cst_71 = arith.constant 0.000000e+00 : f32
    %171 = vector.broadcast %cst_71 : f32 to vector<16x128xf32>
    %172 = arith.maximumf %170, %171 : vector<16x128xf32>
    %c0_72 = arith.constant 0 : index
    %c0_73 = arith.constant 0 : index
    %c0_74 = arith.constant 0 : index
    %173 = vector.load %arg12[%c0_72, %c0_73, %c0_74] : memref<3x128x32xf32, #tpu.memory_space<vmem>>, vector<1x128x32xf32>
    %174 = vector.shape_cast %173 : vector<1x128x32xf32> to vector<128x32xf32>
    %cst_75 = arith.constant dense<0.000000e+00> : vector<16x32xf32>
    %175 = tpu.matmul %172, %174, %cst_75 {dimension_numbers = #tpu.dot_dimension_numbers<[1], [0], [0], [1], [0, 0, 1, 1], [], []>} : vector<16x128xf32>, vector<128x32xf32>, vector<16x32xf32> -> vector<16x32xf32>
    %176 = arith.addf %141, %175 : vector<16x32xf32>
    %c0_76 = arith.constant 0 : index
    %c0_77 = arith.constant 0 : index
    %c0_78 = arith.constant 0 : index
    %177 = vector.load %arg13[%c0_76, %c0_77, %c0_78] : memref<3x1x32xf32, #tpu.memory_space<vmem>>, vector<1x1x32xf32>
    %178 = vector.shape_cast %177 : vector<1x1x32xf32> to vector<1x32xf32>
    %179 = vector.broadcast %178 : vector<1x32xf32> to vector<16x32xf32>
    %180 = arith.addf %176, %179 : vector<16x32xf32>
    %c1 = arith.constant 1 : index
    %c0_79 = arith.constant 0 : index
    %c0_80 = arith.constant 0 : index
    %181 = vector.load %arg8[%c1, %c0_79, %c0_80] : memref<3x1x32xf32, #tpu.memory_space<vmem>>, vector<1x1x32xf32>
    %182 = vector.shape_cast %181 : vector<1x1x32xf32> to vector<1x32xf32>
    %c1_81 = arith.constant 1 : index
    %c0_82 = arith.constant 0 : index
    %c0_83 = arith.constant 0 : index
    %183 = vector.load %arg9[%c1_81, %c0_82, %c0_83] : memref<3x1x32xf32, #tpu.memory_space<vmem>>, vector<1x1x32xf32>
    %184 = vector.shape_cast %183 : vector<1x1x32xf32> to vector<1x32xf32>
    %cst_84 = arith.constant dense<0.000000e+00> : vector<16xf32>
    %185 = vector.multi_reduction <add>, %180, %cst_84 [1] : vector<16x32xf32> to vector<16xf32>
    %186 = vector.shape_cast %185 : vector<16xf32> to vector<16x1xf32>
    %cst_85 = arith.constant 3.200000e+01 : f32
    %187 = vector.broadcast %cst_85 : f32 to vector<16x1xf32>
    %188 = arith.divf %186, %187 : vector<16x1xf32>
    %189 = vector.broadcast %188 : vector<16x1xf32> to vector<16x32xf32>
    %190 = arith.subf %180, %189 : vector<16x32xf32>
    %191 = arith.mulf %190, %190 : vector<16x32xf32>
    %cst_86 = arith.constant dense<0.000000e+00> : vector<16xf32>
    %192 = vector.multi_reduction <add>, %191, %cst_86 [1] : vector<16x32xf32> to vector<16xf32>
    %193 = vector.shape_cast %192 : vector<16xf32> to vector<16x1xf32>
    %cst_87 = arith.constant 3.200000e+01 : f32
    %194 = vector.broadcast %cst_87 : f32 to vector<16x1xf32>
    %195 = arith.divf %193, %194 : vector<16x1xf32>
    %196 = vector.broadcast %188 : vector<16x1xf32> to vector<16x32xf32>
    %197 = arith.subf %180, %196 : vector<16x32xf32>
    %cst_88 = arith.constant 9.99999974E-6 : f32
    %198 = vector.broadcast %cst_88 : f32 to vector<16x1xf32>
    %199 = arith.addf %195, %198 : vector<16x1xf32>
    %200 = math.rsqrt %199 : vector<16x1xf32>
    %201 = vector.broadcast %200 : vector<16x1xf32> to vector<16x32xf32>
    %202 = arith.mulf %197, %201 : vector<16x32xf32>
    %203 = vector.broadcast %182 : vector<1x32xf32> to vector<16x32xf32>
    %204 = arith.mulf %202, %203 : vector<16x32xf32>
    %205 = vector.broadcast %184 : vector<1x32xf32> to vector<16x32xf32>
    %206 = arith.addf %204, %205 : vector<16x32xf32>
    %c1_89 = arith.constant 1 : index
    %c0_90 = arith.constant 0 : index
    %c0_91 = arith.constant 0 : index
    %207 = vector.load %arg4[%c1_89, %c0_90, %c0_91] : memref<3x32x32xf32, #tpu.memory_space<vmem>>, vector<1x32x32xf32>
    %208 = vector.shape_cast %207 : vector<1x32x32xf32> to vector<32x32xf32>
    %cst_92 = arith.constant dense<0.000000e+00> : vector<16x32xf32>
    %209 = tpu.matmul %206, %208, %cst_92 {dimension_numbers = #tpu.dot_dimension_numbers<[1], [0], [0], [1], [0, 0, 1, 1], [], []>} : vector<16x32xf32>, vector<32x32xf32>, vector<16x32xf32> -> vector<16x32xf32>
    %c1_93 = arith.constant 1 : index
    %c0_94 = arith.constant 0 : index
    %c0_95 = arith.constant 0 : index
    %210 = vector.load %arg3[%c1_93, %c0_94, %c0_95] : memref<3x32x32xf32, #tpu.memory_space<vmem>>, vector<1x32x32xf32>
    %211 = vector.shape_cast %210 : vector<1x32x32xf32> to vector<32x32xf32>
    %cst_96 = arith.constant dense<0.000000e+00> : vector<16x32xf32>
    %212 = tpu.matmul %206, %211, %cst_96 {dimension_numbers = #tpu.dot_dimension_numbers<[1], [0], [0], [1], [0, 0, 1, 1], [], []>} : vector<16x32xf32>, vector<32x32xf32>, vector<16x32xf32> -> vector<16x32xf32>
    %c1_97 = arith.constant 1 : index
    %c0_98 = arith.constant 0 : index
    %c0_99 = arith.constant 0 : index
    %213 = vector.load %arg5[%c1_97, %c0_98, %c0_99] : memref<3x32x32xf32, #tpu.memory_space<vmem>>, vector<1x32x32xf32>
    %214 = vector.shape_cast %213 : vector<1x32x32xf32> to vector<32x32xf32>
    %cst_100 = arith.constant dense<0.000000e+00> : vector<16x32xf32>
    %215 = tpu.matmul %206, %214, %cst_100 {dimension_numbers = #tpu.dot_dimension_numbers<[1], [0], [0], [1], [0, 0, 1, 1], [], []>} : vector<16x32xf32>, vector<32x32xf32>, vector<16x32xf32> -> vector<16x32xf32>
    %216 = vector.shape_cast %209 : vector<16x32xf32> to vector<2x8x32xf32>
    %217 = vector.shape_cast %212 : vector<16x32xf32> to vector<2x8x32xf32>
    %218 = vector.shape_cast %215 : vector<16x32xf32> to vector<2x8x32xf32>
    %219 = vector.extract_strided_slice %216 {offsets = [0, 0, 0], sizes = [2, 8, 8], strides = [1, 1, 1]} : vector<2x8x32xf32> to vector<2x8x8xf32>
    %220 = vector.extract_strided_slice %217 {offsets = [0, 0, 0], sizes = [2, 8, 8], strides = [1, 1, 1]} : vector<2x8x32xf32> to vector<2x8x8xf32>
    %221 = vector.extract_strided_slice %218 {offsets = [0, 0, 0], sizes = [2, 8, 8], strides = [1, 1, 1]} : vector<2x8x32xf32> to vector<2x8x8xf32>
    "tpu.trace_start"() <{level = 10 : i32, message = "bid,bjd->bij"}> : () -> ()
    %cst_101 = arith.constant dense<0.000000e+00> : vector<2x8x8xf32>
    %222 = tpu.matmul %219, %220, %cst_101 {dimension_numbers = #tpu.dot_dimension_numbers<[2], [2], [1], [1], [0, 0, 0, 1, 1, 1], [0], [0]>} : vector<2x8x8xf32>, vector<2x8x8xf32>, vector<2x8x8xf32> -> vector<2x8x8xf32>
    "tpu.trace_stop"() : () -> ()
    %cst_102 = arith.constant 0.176776692 : f32
    %223 = vector.broadcast %cst_102 : f32 to vector<2x8x8xf32>
    %224 = arith.mulf %222, %223 : vector<2x8x8xf32>
    %cst_103 = arith.constant -1.000000e+30 : f32
    %225 = vector.shape_cast %13 : vector<8x8xi1> to vector<1x8x8xi1>
    %226 = vector.broadcast %225 : vector<1x8x8xi1> to vector<2x8x8xi1>
    %227 = vector.broadcast %cst_103 : f32 to vector<2x8x8xf32>
    %228 = arith.select %226, %224, %227 : vector<2x8x8xi1>, vector<2x8x8xf32>
    %cst_104 = arith.constant dense<0xFF800000> : vector<2x8xf32>
    %229 = vector.multi_reduction <maximumf>, %228, %cst_104 [2] : vector<2x8x8xf32> to vector<2x8xf32>
    %230 = vector.shape_cast %229 : vector<2x8xf32> to vector<2x8x1xf32>
    %231 = vector.broadcast %230 : vector<2x8x1xf32> to vector<2x8x8xf32>
    %232 = arith.subf %228, %231 : vector<2x8x8xf32>
    %233 = math.exp %232 : vector<2x8x8xf32>
    %cst_105 = arith.constant dense<0.000000e+00> : vector<2x8xf32>
    %234 = vector.multi_reduction <add>, %233, %cst_105 [2] : vector<2x8x8xf32> to vector<2x8xf32>
    %235 = vector.shape_cast %234 : vector<2x8xf32> to vector<2x8x1xf32>
    %236 = vector.broadcast %235 : vector<2x8x1xf32> to vector<2x8x8xf32>
    %237 = arith.divf %233, %236 : vector<2x8x8xf32>
    "tpu.trace_start"() <{level = 10 : i32, message = "bij,bjd->bid"}> : () -> ()
    %cst_106 = arith.constant dense<0.000000e+00> : vector<2x8x8xf32>
    %238 = tpu.matmul %237, %221, %cst_106 {dimension_numbers = #tpu.dot_dimension_numbers<[2], [1], [1], [2], [0, 0, 0, 1, 1, 2], [0], [0]>} : vector<2x8x8xf32>, vector<2x8x8xf32>, vector<2x8x8xf32> -> vector<2x8x8xf32>
    "tpu.trace_stop"() : () -> ()
    %239 = vector.extract_strided_slice %216 {offsets = [0, 0, 8], sizes = [2, 8, 8], strides = [1, 1, 1]} : vector<2x8x32xf32> to vector<2x8x8xf32>
    %240 = vector.extract_strided_slice %217 {offsets = [0, 0, 8], sizes = [2, 8, 8], strides = [1, 1, 1]} : vector<2x8x32xf32> to vector<2x8x8xf32>
    %241 = vector.extract_strided_slice %218 {offsets = [0, 0, 8], sizes = [2, 8, 8], strides = [1, 1, 1]} : vector<2x8x32xf32> to vector<2x8x8xf32>
    "tpu.trace_start"() <{level = 10 : i32, message = "bid,bjd->bij"}> : () -> ()
    %cst_107 = arith.constant dense<0.000000e+00> : vector<2x8x8xf32>
    %242 = tpu.matmul %239, %240, %cst_107 {dimension_numbers = #tpu.dot_dimension_numbers<[2], [2], [1], [1], [0, 0, 0, 1, 1, 1], [0], [0]>} : vector<2x8x8xf32>, vector<2x8x8xf32>, vector<2x8x8xf32> -> vector<2x8x8xf32>
    "tpu.trace_stop"() : () -> ()
    %cst_108 = arith.constant 0.176776692 : f32
    %243 = vector.broadcast %cst_108 : f32 to vector<2x8x8xf32>
    %244 = arith.mulf %242, %243 : vector<2x8x8xf32>
    %cst_109 = arith.constant -1.000000e+30 : f32
    %245 = vector.shape_cast %13 : vector<8x8xi1> to vector<1x8x8xi1>
    %246 = vector.broadcast %245 : vector<1x8x8xi1> to vector<2x8x8xi1>
    %247 = vector.broadcast %cst_109 : f32 to vector<2x8x8xf32>
    %248 = arith.select %246, %244, %247 : vector<2x8x8xi1>, vector<2x8x8xf32>
    %cst_110 = arith.constant dense<0xFF800000> : vector<2x8xf32>
    %249 = vector.multi_reduction <maximumf>, %248, %cst_110 [2] : vector<2x8x8xf32> to vector<2x8xf32>
    %250 = vector.shape_cast %249 : vector<2x8xf32> to vector<2x8x1xf32>
    %251 = vector.broadcast %250 : vector<2x8x1xf32> to vector<2x8x8xf32>
    %252 = arith.subf %248, %251 : vector<2x8x8xf32>
    %253 = math.exp %252 : vector<2x8x8xf32>
    %cst_111 = arith.constant dense<0.000000e+00> : vector<2x8xf32>
    %254 = vector.multi_reduction <add>, %253, %cst_111 [2] : vector<2x8x8xf32> to vector<2x8xf32>
    %255 = vector.shape_cast %254 : vector<2x8xf32> to vector<2x8x1xf32>
    %256 = vector.broadcast %255 : vector<2x8x1xf32> to vector<2x8x8xf32>
    %257 = arith.divf %253, %256 : vector<2x8x8xf32>
    "tpu.trace_start"() <{level = 10 : i32, message = "bij,bjd->bid"}> : () -> ()
    %cst_112 = arith.constant dense<0.000000e+00> : vector<2x8x8xf32>
    %258 = tpu.matmul %257, %241, %cst_112 {dimension_numbers = #tpu.dot_dimension_numbers<[2], [1], [1], [2], [0, 0, 0, 1, 1, 2], [0], [0]>} : vector<2x8x8xf32>, vector<2x8x8xf32>, vector<2x8x8xf32> -> vector<2x8x8xf32>
    "tpu.trace_stop"() : () -> ()
    %259 = vector.extract_strided_slice %216 {offsets = [0, 0, 16], sizes = [2, 8, 8], strides = [1, 1, 1]} : vector<2x8x32xf32> to vector<2x8x8xf32>
    %260 = vector.extract_strided_slice %217 {offsets = [0, 0, 16], sizes = [2, 8, 8], strides = [1, 1, 1]} : vector<2x8x32xf32> to vector<2x8x8xf32>
    %261 = vector.extract_strided_slice %218 {offsets = [0, 0, 16], sizes = [2, 8, 8], strides = [1, 1, 1]} : vector<2x8x32xf32> to vector<2x8x8xf32>
    "tpu.trace_start"() <{level = 10 : i32, message = "bid,bjd->bij"}> : () -> ()
    %cst_113 = arith.constant dense<0.000000e+00> : vector<2x8x8xf32>
    %262 = tpu.matmul %259, %260, %cst_113 {dimension_numbers = #tpu.dot_dimension_numbers<[2], [2], [1], [1], [0, 0, 0, 1, 1, 1], [0], [0]>} : vector<2x8x8xf32>, vector<2x8x8xf32>, vector<2x8x8xf32> -> vector<2x8x8xf32>
    "tpu.trace_stop"() : () -> ()
    %cst_114 = arith.constant 0.176776692 : f32
    %263 = vector.broadcast %cst_114 : f32 to vector<2x8x8xf32>
    %264 = arith.mulf %262, %263 : vector<2x8x8xf32>
    %cst_115 = arith.constant -1.000000e+30 : f32
    %265 = vector.shape_cast %13 : vector<8x8xi1> to vector<1x8x8xi1>
    %266 = vector.broadcast %265 : vector<1x8x8xi1> to vector<2x8x8xi1>
    %267 = vector.broadcast %cst_115 : f32 to vector<2x8x8xf32>
    %268 = arith.select %266, %264, %267 : vector<2x8x8xi1>, vector<2x8x8xf32>
    %cst_116 = arith.constant dense<0xFF800000> : vector<2x8xf32>
    %269 = vector.multi_reduction <maximumf>, %268, %cst_116 [2] : vector<2x8x8xf32> to vector<2x8xf32>
    %270 = vector.shape_cast %269 : vector<2x8xf32> to vector<2x8x1xf32>
    %271 = vector.broadcast %270 : vector<2x8x1xf32> to vector<2x8x8xf32>
    %272 = arith.subf %268, %271 : vector<2x8x8xf32>
    %273 = math.exp %272 : vector<2x8x8xf32>
    %cst_117 = arith.constant dense<0.000000e+00> : vector<2x8xf32>
    %274 = vector.multi_reduction <add>, %273, %cst_117 [2] : vector<2x8x8xf32> to vector<2x8xf32>
    %275 = vector.shape_cast %274 : vector<2x8xf32> to vector<2x8x1xf32>
    %276 = vector.broadcast %275 : vector<2x8x1xf32> to vector<2x8x8xf32>
    %277 = arith.divf %273, %276 : vector<2x8x8xf32>
    "tpu.trace_start"() <{level = 10 : i32, message = "bij,bjd->bid"}> : () -> ()
    %cst_118 = arith.constant dense<0.000000e+00> : vector<2x8x8xf32>
    %278 = tpu.matmul %277, %261, %cst_118 {dimension_numbers = #tpu.dot_dimension_numbers<[2], [1], [1], [2], [0, 0, 0, 1, 1, 2], [0], [0]>} : vector<2x8x8xf32>, vector<2x8x8xf32>, vector<2x8x8xf32> -> vector<2x8x8xf32>
    "tpu.trace_stop"() : () -> ()
    %279 = vector.extract_strided_slice %216 {offsets = [0, 0, 24], sizes = [2, 8, 8], strides = [1, 1, 1]} : vector<2x8x32xf32> to vector<2x8x8xf32>
    %280 = vector.extract_strided_slice %217 {offsets = [0, 0, 24], sizes = [2, 8, 8], strides = [1, 1, 1]} : vector<2x8x32xf32> to vector<2x8x8xf32>
    %281 = vector.extract_strided_slice %218 {offsets = [0, 0, 24], sizes = [2, 8, 8], strides = [1, 1, 1]} : vector<2x8x32xf32> to vector<2x8x8xf32>
    "tpu.trace_start"() <{level = 10 : i32, message = "bid,bjd->bij"}> : () -> ()
    %cst_119 = arith.constant dense<0.000000e+00> : vector<2x8x8xf32>
    %282 = tpu.matmul %279, %280, %cst_119 {dimension_numbers = #tpu.dot_dimension_numbers<[2], [2], [1], [1], [0, 0, 0, 1, 1, 1], [0], [0]>} : vector<2x8x8xf32>, vector<2x8x8xf32>, vector<2x8x8xf32> -> vector<2x8x8xf32>
    "tpu.trace_stop"() : () -> ()
    %cst_120 = arith.constant 0.176776692 : f32
    %283 = vector.broadcast %cst_120 : f32 to vector<2x8x8xf32>
    %284 = arith.mulf %282, %283 : vector<2x8x8xf32>
    %cst_121 = arith.constant -1.000000e+30 : f32
    %285 = vector.shape_cast %13 : vector<8x8xi1> to vector<1x8x8xi1>
    %286 = vector.broadcast %285 : vector<1x8x8xi1> to vector<2x8x8xi1>
    %287 = vector.broadcast %cst_121 : f32 to vector<2x8x8xf32>
    %288 = arith.select %286, %284, %287 : vector<2x8x8xi1>, vector<2x8x8xf32>
    %cst_122 = arith.constant dense<0xFF800000> : vector<2x8xf32>
    %289 = vector.multi_reduction <maximumf>, %288, %cst_122 [2] : vector<2x8x8xf32> to vector<2x8xf32>
    %290 = vector.shape_cast %289 : vector<2x8xf32> to vector<2x8x1xf32>
    %291 = vector.broadcast %290 : vector<2x8x1xf32> to vector<2x8x8xf32>
    %292 = arith.subf %288, %291 : vector<2x8x8xf32>
    %293 = math.exp %292 : vector<2x8x8xf32>
    %cst_123 = arith.constant dense<0.000000e+00> : vector<2x8xf32>
    %294 = vector.multi_reduction <add>, %293, %cst_123 [2] : vector<2x8x8xf32> to vector<2x8xf32>
    %295 = vector.shape_cast %294 : vector<2x8xf32> to vector<2x8x1xf32>
    %296 = vector.broadcast %295 : vector<2x8x1xf32> to vector<2x8x8xf32>
    %297 = arith.divf %293, %296 : vector<2x8x8xf32>
    "tpu.trace_start"() <{level = 10 : i32, message = "bij,bjd->bid"}> : () -> ()
    %cst_124 = arith.constant dense<0.000000e+00> : vector<2x8x8xf32>
    %298 = tpu.matmul %297, %281, %cst_124 {dimension_numbers = #tpu.dot_dimension_numbers<[2], [1], [1], [2], [0, 0, 0, 1, 1, 2], [0], [0]>} : vector<2x8x8xf32>, vector<2x8x8xf32>, vector<2x8x8xf32> -> vector<2x8x8xf32>
    "tpu.trace_stop"() : () -> ()
    %299 = tpu.concatenate %238, %258, %278, %298 in 2 : vector<2x8x8xf32>, vector<2x8x8xf32>, vector<2x8x8xf32>, vector<2x8x8xf32> -> vector<2x8x32xf32>
    %300 = vector.shape_cast %299 : vector<2x8x32xf32> to vector<16x32xf32>
    %c1_125 = arith.constant 1 : index
    %c0_126 = arith.constant 0 : index
    %c0_127 = arith.constant 0 : index
    %301 = vector.load %arg6[%c1_125, %c0_126, %c0_127] : memref<3x32x32xf32, #tpu.memory_space<vmem>>, vector<1x32x32xf32>
    %302 = vector.shape_cast %301 : vector<1x32x32xf32> to vector<32x32xf32>
    %cst_128 = arith.constant dense<0.000000e+00> : vector<16x32xf32>
    %303 = tpu.matmul %300, %302, %cst_128 {dimension_numbers = #tpu.dot_dimension_numbers<[1], [0], [0], [1], [0, 0, 1, 1], [], []>} : vector<16x32xf32>, vector<32x32xf32>, vector<16x32xf32> -> vector<16x32xf32>
    %c1_129 = arith.constant 1 : index
    %c0_130 = arith.constant 0 : index
    %c0_131 = arith.constant 0 : index
    %304 = vector.load %arg7[%c1_129, %c0_130, %c0_131] : memref<3x1x32xf32, #tpu.memory_space<vmem>>, vector<1x1x32xf32>
    %305 = vector.shape_cast %304 : vector<1x1x32xf32> to vector<1x32xf32>
    %306 = vector.broadcast %305 : vector<1x32xf32> to vector<16x32xf32>
    %307 = arith.addf %303, %306 : vector<16x32xf32>
    %308 = arith.addf %180, %307 : vector<16x32xf32>
    %cst_132 = arith.constant dense<0.000000e+00> : vector<16xf32>
    %309 = vector.multi_reduction <add>, %308, %cst_132 [1] : vector<16x32xf32> to vector<16xf32>
    %310 = vector.shape_cast %309 : vector<16xf32> to vector<16x1xf32>
    %cst_133 = arith.constant 3.200000e+01 : f32
    %311 = vector.broadcast %cst_133 : f32 to vector<16x1xf32>
    %312 = arith.divf %310, %311 : vector<16x1xf32>
    %313 = vector.broadcast %312 : vector<16x1xf32> to vector<16x32xf32>
    %314 = arith.subf %308, %313 : vector<16x32xf32>
    %315 = arith.mulf %314, %314 : vector<16x32xf32>
    %cst_134 = arith.constant dense<0.000000e+00> : vector<16xf32>
    %316 = vector.multi_reduction <add>, %315, %cst_134 [1] : vector<16x32xf32> to vector<16xf32>
    %317 = vector.shape_cast %316 : vector<16xf32> to vector<16x1xf32>
    %cst_135 = arith.constant 3.200000e+01 : f32
    %318 = vector.broadcast %cst_135 : f32 to vector<16x1xf32>
    %319 = arith.divf %317, %318 : vector<16x1xf32>
    %320 = vector.broadcast %312 : vector<16x1xf32> to vector<16x32xf32>
    %321 = arith.subf %308, %320 : vector<16x32xf32>
    %cst_136 = arith.constant 9.99999974E-6 : f32
    %322 = vector.broadcast %cst_136 : f32 to vector<16x1xf32>
    %323 = arith.addf %319, %322 : vector<16x1xf32>
    %324 = math.rsqrt %323 : vector<16x1xf32>
    %325 = vector.broadcast %324 : vector<16x1xf32> to vector<16x32xf32>
    %326 = arith.mulf %321, %325 : vector<16x32xf32>
    %327 = vector.broadcast %182 : vector<1x32xf32> to vector<16x32xf32>
    %328 = arith.mulf %326, %327 : vector<16x32xf32>
    %329 = vector.broadcast %184 : vector<1x32xf32> to vector<16x32xf32>
    %330 = arith.addf %328, %329 : vector<16x32xf32>
    %c1_137 = arith.constant 1 : index
    %c0_138 = arith.constant 0 : index
    %c0_139 = arith.constant 0 : index
    %331 = vector.load %arg10[%c1_137, %c0_138, %c0_139] : memref<3x32x128xf32, #tpu.memory_space<vmem>>, vector<1x32x128xf32>
    %332 = vector.shape_cast %331 : vector<1x32x128xf32> to vector<32x128xf32>
    %cst_140 = arith.constant dense<0.000000e+00> : vector<16x128xf32>
    %333 = tpu.matmul %330, %332, %cst_140 {dimension_numbers = #tpu.dot_dimension_numbers<[1], [0], [0], [1], [0, 0, 1, 1], [], []>} : vector<16x32xf32>, vector<32x128xf32>, vector<16x128xf32> -> vector<16x128xf32>
    %c1_141 = arith.constant 1 : index
    %c0_142 = arith.constant 0 : index
    %c0_143 = arith.constant 0 : index
    %334 = vector.load %arg11[%c1_141, %c0_142, %c0_143] : memref<3x1x128xf32, #tpu.memory_space<vmem>>, vector<1x1x128xf32>
    %335 = vector.shape_cast %334 : vector<1x1x128xf32> to vector<1x128xf32>
    %336 = vector.broadcast %335 : vector<1x128xf32> to vector<16x128xf32>
    %337 = arith.addf %333, %336 : vector<16x128xf32>
    %cst_144 = arith.constant 0.000000e+00 : f32
    %338 = vector.broadcast %cst_144 : f32 to vector<16x128xf32>
    %339 = arith.maximumf %337, %338 : vector<16x128xf32>
    %c1_145 = arith.constant 1 : index
    %c0_146 = arith.constant 0 : index
    %c0_147 = arith.constant 0 : index
    %340 = vector.load %arg12[%c1_145, %c0_146, %c0_147] : memref<3x128x32xf32, #tpu.memory_space<vmem>>, vector<1x128x32xf32>
    %341 = vector.shape_cast %340 : vector<1x128x32xf32> to vector<128x32xf32>
    %cst_148 = arith.constant dense<0.000000e+00> : vector<16x32xf32>
    %342 = tpu.matmul %339, %341, %cst_148 {dimension_numbers = #tpu.dot_dimension_numbers<[1], [0], [0], [1], [0, 0, 1, 1], [], []>} : vector<16x128xf32>, vector<128x32xf32>, vector<16x32xf32> -> vector<16x32xf32>
    %343 = arith.addf %308, %342 : vector<16x32xf32>
    %c1_149 = arith.constant 1 : index
    %c0_150 = arith.constant 0 : index
    %c0_151 = arith.constant 0 : index
    %344 = vector.load %arg13[%c1_149, %c0_150, %c0_151] : memref<3x1x32xf32, #tpu.memory_space<vmem>>, vector<1x1x32xf32>
    %345 = vector.shape_cast %344 : vector<1x1x32xf32> to vector<1x32xf32>
    %346 = vector.broadcast %345 : vector<1x32xf32> to vector<16x32xf32>
    %347 = arith.addf %343, %346 : vector<16x32xf32>
    %c2 = arith.constant 2 : index
    %c0_152 = arith.constant 0 : index
    %c0_153 = arith.constant 0 : index
    %348 = vector.load %arg8[%c2, %c0_152, %c0_153] : memref<3x1x32xf32, #tpu.memory_space<vmem>>, vector<1x1x32xf32>
    %349 = vector.shape_cast %348 : vector<1x1x32xf32> to vector<1x32xf32>
    %c2_154 = arith.constant 2 : index
    %c0_155 = arith.constant 0 : index
    %c0_156 = arith.constant 0 : index
    %350 = vector.load %arg9[%c2_154, %c0_155, %c0_156] : memref<3x1x32xf32, #tpu.memory_space<vmem>>, vector<1x1x32xf32>
    %351 = vector.shape_cast %350 : vector<1x1x32xf32> to vector<1x32xf32>
    %cst_157 = arith.constant dense<0.000000e+00> : vector<16xf32>
    %352 = vector.multi_reduction <add>, %347, %cst_157 [1] : vector<16x32xf32> to vector<16xf32>
    %353 = vector.shape_cast %352 : vector<16xf32> to vector<16x1xf32>
    %cst_158 = arith.constant 3.200000e+01 : f32
    %354 = vector.broadcast %cst_158 : f32 to vector<16x1xf32>
    %355 = arith.divf %353, %354 : vector<16x1xf32>
    %356 = vector.broadcast %355 : vector<16x1xf32> to vector<16x32xf32>
    %357 = arith.subf %347, %356 : vector<16x32xf32>
    %358 = arith.mulf %357, %357 : vector<16x32xf32>
    %cst_159 = arith.constant dense<0.000000e+00> : vector<16xf32>
    %359 = vector.multi_reduction <add>, %358, %cst_159 [1] : vector<16x32xf32> to vector<16xf32>
    %360 = vector.shape_cast %359 : vector<16xf32> to vector<16x1xf32>
    %cst_160 = arith.constant 3.200000e+01 : f32
    %361 = vector.broadcast %cst_160 : f32 to vector<16x1xf32>
    %362 = arith.divf %360, %361 : vector<16x1xf32>
    %363 = vector.broadcast %355 : vector<16x1xf32> to vector<16x32xf32>
    %364 = arith.subf %347, %363 : vector<16x32xf32>
    %cst_161 = arith.constant 9.99999974E-6 : f32
    %365 = vector.broadcast %cst_161 : f32 to vector<16x1xf32>
    %366 = arith.addf %362, %365 : vector<16x1xf32>
    %367 = math.rsqrt %366 : vector<16x1xf32>
    %368 = vector.broadcast %367 : vector<16x1xf32> to vector<16x32xf32>
    %369 = arith.mulf %364, %368 : vector<16x32xf32>
    %370 = vector.broadcast %349 : vector<1x32xf32> to vector<16x32xf32>
    %371 = arith.mulf %369, %370 : vector<16x32xf32>
    %372 = vector.broadcast %351 : vector<1x32xf32> to vector<16x32xf32>
    %373 = arith.addf %371, %372 : vector<16x32xf32>
    %c2_162 = arith.constant 2 : index
    %c0_163 = arith.constant 0 : index
    %c0_164 = arith.constant 0 : index
    %374 = vector.load %arg4[%c2_162, %c0_163, %c0_164] : memref<3x32x32xf32, #tpu.memory_space<vmem>>, vector<1x32x32xf32>
    %375 = vector.shape_cast %374 : vector<1x32x32xf32> to vector<32x32xf32>
    %cst_165 = arith.constant dense<0.000000e+00> : vector<16x32xf32>
    %376 = tpu.matmul %373, %375, %cst_165 {dimension_numbers = #tpu.dot_dimension_numbers<[1], [0], [0], [1], [0, 0, 1, 1], [], []>} : vector<16x32xf32>, vector<32x32xf32>, vector<16x32xf32> -> vector<16x32xf32>
    %c2_166 = arith.constant 2 : index
    %c0_167 = arith.constant 0 : index
    %c0_168 = arith.constant 0 : index
    %377 = vector.load %arg3[%c2_166, %c0_167, %c0_168] : memref<3x32x32xf32, #tpu.memory_space<vmem>>, vector<1x32x32xf32>
    %378 = vector.shape_cast %377 : vector<1x32x32xf32> to vector<32x32xf32>
    %cst_169 = arith.constant dense<0.000000e+00> : vector<16x32xf32>
    %379 = tpu.matmul %373, %378, %cst_169 {dimension_numbers = #tpu.dot_dimension_numbers<[1], [0], [0], [1], [0, 0, 1, 1], [], []>} : vector<16x32xf32>, vector<32x32xf32>, vector<16x32xf32> -> vector<16x32xf32>
    %c2_170 = arith.constant 2 : index
    %c0_171 = arith.constant 0 : index
    %c0_172 = arith.constant 0 : index
    %380 = vector.load %arg5[%c2_170, %c0_171, %c0_172] : memref<3x32x32xf32, #tpu.memory_space<vmem>>, vector<1x32x32xf32>
    %381 = vector.shape_cast %380 : vector<1x32x32xf32> to vector<32x32xf32>
    %cst_173 = arith.constant dense<0.000000e+00> : vector<16x32xf32>
    %382 = tpu.matmul %373, %381, %cst_173 {dimension_numbers = #tpu.dot_dimension_numbers<[1], [0], [0], [1], [0, 0, 1, 1], [], []>} : vector<16x32xf32>, vector<32x32xf32>, vector<16x32xf32> -> vector<16x32xf32>
    %383 = vector.shape_cast %376 : vector<16x32xf32> to vector<2x8x32xf32>
    %384 = vector.shape_cast %379 : vector<16x32xf32> to vector<2x8x32xf32>
    %385 = vector.shape_cast %382 : vector<16x32xf32> to vector<2x8x32xf32>
    %386 = vector.extract_strided_slice %383 {offsets = [0, 0, 0], sizes = [2, 8, 8], strides = [1, 1, 1]} : vector<2x8x32xf32> to vector<2x8x8xf32>
    %387 = vector.extract_strided_slice %384 {offsets = [0, 0, 0], sizes = [2, 8, 8], strides = [1, 1, 1]} : vector<2x8x32xf32> to vector<2x8x8xf32>
    %388 = vector.extract_strided_slice %385 {offsets = [0, 0, 0], sizes = [2, 8, 8], strides = [1, 1, 1]} : vector<2x8x32xf32> to vector<2x8x8xf32>
    "tpu.trace_start"() <{level = 10 : i32, message = "bid,bjd->bij"}> : () -> ()
    %cst_174 = arith.constant dense<0.000000e+00> : vector<2x8x8xf32>
    %389 = tpu.matmul %386, %387, %cst_174 {dimension_numbers = #tpu.dot_dimension_numbers<[2], [2], [1], [1], [0, 0, 0, 1, 1, 1], [0], [0]>} : vector<2x8x8xf32>, vector<2x8x8xf32>, vector<2x8x8xf32> -> vector<2x8x8xf32>
    "tpu.trace_stop"() : () -> ()
    %cst_175 = arith.constant 0.176776692 : f32
    %390 = vector.broadcast %cst_175 : f32 to vector<2x8x8xf32>
    %391 = arith.mulf %389, %390 : vector<2x8x8xf32>
    %cst_176 = arith.constant -1.000000e+30 : f32
    %392 = vector.shape_cast %13 : vector<8x8xi1> to vector<1x8x8xi1>
    %393 = vector.broadcast %392 : vector<1x8x8xi1> to vector<2x8x8xi1>
    %394 = vector.broadcast %cst_176 : f32 to vector<2x8x8xf32>
    %395 = arith.select %393, %391, %394 : vector<2x8x8xi1>, vector<2x8x8xf32>
    %cst_177 = arith.constant dense<0xFF800000> : vector<2x8xf32>
    %396 = vector.multi_reduction <maximumf>, %395, %cst_177 [2] : vector<2x8x8xf32> to vector<2x8xf32>
    %397 = vector.shape_cast %396 : vector<2x8xf32> to vector<2x8x1xf32>
    %398 = vector.broadcast %397 : vector<2x8x1xf32> to vector<2x8x8xf32>
    %399 = arith.subf %395, %398 : vector<2x8x8xf32>
    %400 = math.exp %399 : vector<2x8x8xf32>
    %cst_178 = arith.constant dense<0.000000e+00> : vector<2x8xf32>
    %401 = vector.multi_reduction <add>, %400, %cst_178 [2] : vector<2x8x8xf32> to vector<2x8xf32>
    %402 = vector.shape_cast %401 : vector<2x8xf32> to vector<2x8x1xf32>
    %403 = vector.broadcast %402 : vector<2x8x1xf32> to vector<2x8x8xf32>
    %404 = arith.divf %400, %403 : vector<2x8x8xf32>
    "tpu.trace_start"() <{level = 10 : i32, message = "bij,bjd->bid"}> : () -> ()
    %cst_179 = arith.constant dense<0.000000e+00> : vector<2x8x8xf32>
    %405 = tpu.matmul %404, %388, %cst_179 {dimension_numbers = #tpu.dot_dimension_numbers<[2], [1], [1], [2], [0, 0, 0, 1, 1, 2], [0], [0]>} : vector<2x8x8xf32>, vector<2x8x8xf32>, vector<2x8x8xf32> -> vector<2x8x8xf32>
    "tpu.trace_stop"() : () -> ()
    %406 = vector.extract_strided_slice %383 {offsets = [0, 0, 8], sizes = [2, 8, 8], strides = [1, 1, 1]} : vector<2x8x32xf32> to vector<2x8x8xf32>
    %407 = vector.extract_strided_slice %384 {offsets = [0, 0, 8], sizes = [2, 8, 8], strides = [1, 1, 1]} : vector<2x8x32xf32> to vector<2x8x8xf32>
    %408 = vector.extract_strided_slice %385 {offsets = [0, 0, 8], sizes = [2, 8, 8], strides = [1, 1, 1]} : vector<2x8x32xf32> to vector<2x8x8xf32>
    "tpu.trace_start"() <{level = 10 : i32, message = "bid,bjd->bij"}> : () -> ()
    %cst_180 = arith.constant dense<0.000000e+00> : vector<2x8x8xf32>
    %409 = tpu.matmul %406, %407, %cst_180 {dimension_numbers = #tpu.dot_dimension_numbers<[2], [2], [1], [1], [0, 0, 0, 1, 1, 1], [0], [0]>} : vector<2x8x8xf32>, vector<2x8x8xf32>, vector<2x8x8xf32> -> vector<2x8x8xf32>
    "tpu.trace_stop"() : () -> ()
    %cst_181 = arith.constant 0.176776692 : f32
    %410 = vector.broadcast %cst_181 : f32 to vector<2x8x8xf32>
    %411 = arith.mulf %409, %410 : vector<2x8x8xf32>
    %cst_182 = arith.constant -1.000000e+30 : f32
    %412 = vector.shape_cast %13 : vector<8x8xi1> to vector<1x8x8xi1>
    %413 = vector.broadcast %412 : vector<1x8x8xi1> to vector<2x8x8xi1>
    %414 = vector.broadcast %cst_182 : f32 to vector<2x8x8xf32>
    %415 = arith.select %413, %411, %414 : vector<2x8x8xi1>, vector<2x8x8xf32>
    %cst_183 = arith.constant dense<0xFF800000> : vector<2x8xf32>
    %416 = vector.multi_reduction <maximumf>, %415, %cst_183 [2] : vector<2x8x8xf32> to vector<2x8xf32>
    %417 = vector.shape_cast %416 : vector<2x8xf32> to vector<2x8x1xf32>
    %418 = vector.broadcast %417 : vector<2x8x1xf32> to vector<2x8x8xf32>
    %419 = arith.subf %415, %418 : vector<2x8x8xf32>
    %420 = math.exp %419 : vector<2x8x8xf32>
    %cst_184 = arith.constant dense<0.000000e+00> : vector<2x8xf32>
    %421 = vector.multi_reduction <add>, %420, %cst_184 [2] : vector<2x8x8xf32> to vector<2x8xf32>
    %422 = vector.shape_cast %421 : vector<2x8xf32> to vector<2x8x1xf32>
    %423 = vector.broadcast %422 : vector<2x8x1xf32> to vector<2x8x8xf32>
    %424 = arith.divf %420, %423 : vector<2x8x8xf32>
    "tpu.trace_start"() <{level = 10 : i32, message = "bij,bjd->bid"}> : () -> ()
    %cst_185 = arith.constant dense<0.000000e+00> : vector<2x8x8xf32>
    %425 = tpu.matmul %424, %408, %cst_185 {dimension_numbers = #tpu.dot_dimension_numbers<[2], [1], [1], [2], [0, 0, 0, 1, 1, 2], [0], [0]>} : vector<2x8x8xf32>, vector<2x8x8xf32>, vector<2x8x8xf32> -> vector<2x8x8xf32>
    "tpu.trace_stop"() : () -> ()
    %426 = vector.extract_strided_slice %383 {offsets = [0, 0, 16], sizes = [2, 8, 8], strides = [1, 1, 1]} : vector<2x8x32xf32> to vector<2x8x8xf32>
    %427 = vector.extract_strided_slice %384 {offsets = [0, 0, 16], sizes = [2, 8, 8], strides = [1, 1, 1]} : vector<2x8x32xf32> to vector<2x8x8xf32>
    %428 = vector.extract_strided_slice %385 {offsets = [0, 0, 16], sizes = [2, 8, 8], strides = [1, 1, 1]} : vector<2x8x32xf32> to vector<2x8x8xf32>
    "tpu.trace_start"() <{level = 10 : i32, message = "bid,bjd->bij"}> : () -> ()
    %cst_186 = arith.constant dense<0.000000e+00> : vector<2x8x8xf32>
    %429 = tpu.matmul %426, %427, %cst_186 {dimension_numbers = #tpu.dot_dimension_numbers<[2], [2], [1], [1], [0, 0, 0, 1, 1, 1], [0], [0]>} : vector<2x8x8xf32>, vector<2x8x8xf32>, vector<2x8x8xf32> -> vector<2x8x8xf32>
    "tpu.trace_stop"() : () -> ()
    %cst_187 = arith.constant 0.176776692 : f32
    %430 = vector.broadcast %cst_187 : f32 to vector<2x8x8xf32>
    %431 = arith.mulf %429, %430 : vector<2x8x8xf32>
    %cst_188 = arith.constant -1.000000e+30 : f32
    %432 = vector.shape_cast %13 : vector<8x8xi1> to vector<1x8x8xi1>
    %433 = vector.broadcast %432 : vector<1x8x8xi1> to vector<2x8x8xi1>
    %434 = vector.broadcast %cst_188 : f32 to vector<2x8x8xf32>
    %435 = arith.select %433, %431, %434 : vector<2x8x8xi1>, vector<2x8x8xf32>
    %cst_189 = arith.constant dense<0xFF800000> : vector<2x8xf32>
    %436 = vector.multi_reduction <maximumf>, %435, %cst_189 [2] : vector<2x8x8xf32> to vector<2x8xf32>
    %437 = vector.shape_cast %436 : vector<2x8xf32> to vector<2x8x1xf32>
    %438 = vector.broadcast %437 : vector<2x8x1xf32> to vector<2x8x8xf32>
    %439 = arith.subf %435, %438 : vector<2x8x8xf32>
    %440 = math.exp %439 : vector<2x8x8xf32>
    %cst_190 = arith.constant dense<0.000000e+00> : vector<2x8xf32>
    %441 = vector.multi_reduction <add>, %440, %cst_190 [2] : vector<2x8x8xf32> to vector<2x8xf32>
    %442 = vector.shape_cast %441 : vector<2x8xf32> to vector<2x8x1xf32>
    %443 = vector.broadcast %442 : vector<2x8x1xf32> to vector<2x8x8xf32>
    %444 = arith.divf %440, %443 : vector<2x8x8xf32>
    "tpu.trace_start"() <{level = 10 : i32, message = "bij,bjd->bid"}> : () -> ()
    %cst_191 = arith.constant dense<0.000000e+00> : vector<2x8x8xf32>
    %445 = tpu.matmul %444, %428, %cst_191 {dimension_numbers = #tpu.dot_dimension_numbers<[2], [1], [1], [2], [0, 0, 0, 1, 1, 2], [0], [0]>} : vector<2x8x8xf32>, vector<2x8x8xf32>, vector<2x8x8xf32> -> vector<2x8x8xf32>
    "tpu.trace_stop"() : () -> ()
    %446 = vector.extract_strided_slice %383 {offsets = [0, 0, 24], sizes = [2, 8, 8], strides = [1, 1, 1]} : vector<2x8x32xf32> to vector<2x8x8xf32>
    %447 = vector.extract_strided_slice %384 {offsets = [0, 0, 24], sizes = [2, 8, 8], strides = [1, 1, 1]} : vector<2x8x32xf32> to vector<2x8x8xf32>
    %448 = vector.extract_strided_slice %385 {offsets = [0, 0, 24], sizes = [2, 8, 8], strides = [1, 1, 1]} : vector<2x8x32xf32> to vector<2x8x8xf32>
    "tpu.trace_start"() <{level = 10 : i32, message = "bid,bjd->bij"}> : () -> ()
    %cst_192 = arith.constant dense<0.000000e+00> : vector<2x8x8xf32>
    %449 = tpu.matmul %446, %447, %cst_192 {dimension_numbers = #tpu.dot_dimension_numbers<[2], [2], [1], [1], [0, 0, 0, 1, 1, 1], [0], [0]>} : vector<2x8x8xf32>, vector<2x8x8xf32>, vector<2x8x8xf32> -> vector<2x8x8xf32>
    "tpu.trace_stop"() : () -> ()
    %cst_193 = arith.constant 0.176776692 : f32
    %450 = vector.broadcast %cst_193 : f32 to vector<2x8x8xf32>
    %451 = arith.mulf %449, %450 : vector<2x8x8xf32>
    %cst_194 = arith.constant -1.000000e+30 : f32
    %452 = vector.shape_cast %13 : vector<8x8xi1> to vector<1x8x8xi1>
    %453 = vector.broadcast %452 : vector<1x8x8xi1> to vector<2x8x8xi1>
    %454 = vector.broadcast %cst_194 : f32 to vector<2x8x8xf32>
    %455 = arith.select %453, %451, %454 : vector<2x8x8xi1>, vector<2x8x8xf32>
    %cst_195 = arith.constant dense<0xFF800000> : vector<2x8xf32>
    %456 = vector.multi_reduction <maximumf>, %455, %cst_195 [2] : vector<2x8x8xf32> to vector<2x8xf32>
    %457 = vector.shape_cast %456 : vector<2x8xf32> to vector<2x8x1xf32>
    %458 = vector.broadcast %457 : vector<2x8x1xf32> to vector<2x8x8xf32>
    %459 = arith.subf %455, %458 : vector<2x8x8xf32>
    %460 = math.exp %459 : vector<2x8x8xf32>
    %cst_196 = arith.constant dense<0.000000e+00> : vector<2x8xf32>
    %461 = vector.multi_reduction <add>, %460, %cst_196 [2] : vector<2x8x8xf32> to vector<2x8xf32>
    %462 = vector.shape_cast %461 : vector<2x8xf32> to vector<2x8x1xf32>
    %463 = vector.broadcast %462 : vector<2x8x1xf32> to vector<2x8x8xf32>
    %464 = arith.divf %460, %463 : vector<2x8x8xf32>
    "tpu.trace_start"() <{level = 10 : i32, message = "bij,bjd->bid"}> : () -> ()
    %cst_197 = arith.constant dense<0.000000e+00> : vector<2x8x8xf32>
    %465 = tpu.matmul %464, %448, %cst_197 {dimension_numbers = #tpu.dot_dimension_numbers<[2], [1], [1], [2], [0, 0, 0, 1, 1, 2], [0], [0]>} : vector<2x8x8xf32>, vector<2x8x8xf32>, vector<2x8x8xf32> -> vector<2x8x8xf32>
    "tpu.trace_stop"() : () -> ()
    %466 = tpu.concatenate %405, %425, %445, %465 in 2 : vector<2x8x8xf32>, vector<2x8x8xf32>, vector<2x8x8xf32>, vector<2x8x8xf32> -> vector<2x8x32xf32>
    %467 = vector.shape_cast %466 : vector<2x8x32xf32> to vector<16x32xf32>
    %c2_198 = arith.constant 2 : index
    %c0_199 = arith.constant 0 : index
    %c0_200 = arith.constant 0 : index
    %468 = vector.load %arg6[%c2_198, %c0_199, %c0_200] : memref<3x32x32xf32, #tpu.memory_space<vmem>>, vector<1x32x32xf32>
    %469 = vector.shape_cast %468 : vector<1x32x32xf32> to vector<32x32xf32>
    %cst_201 = arith.constant dense<0.000000e+00> : vector<16x32xf32>
    %470 = tpu.matmul %467, %469, %cst_201 {dimension_numbers = #tpu.dot_dimension_numbers<[1], [0], [0], [1], [0, 0, 1, 1], [], []>} : vector<16x32xf32>, vector<32x32xf32>, vector<16x32xf32> -> vector<16x32xf32>
    %c2_202 = arith.constant 2 : index
    %c0_203 = arith.constant 0 : index
    %c0_204 = arith.constant 0 : index
    %471 = vector.load %arg7[%c2_202, %c0_203, %c0_204] : memref<3x1x32xf32, #tpu.memory_space<vmem>>, vector<1x1x32xf32>
    %472 = vector.shape_cast %471 : vector<1x1x32xf32> to vector<1x32xf32>
    %473 = vector.broadcast %472 : vector<1x32xf32> to vector<16x32xf32>
    %474 = arith.addf %470, %473 : vector<16x32xf32>
    %475 = arith.addf %347, %474 : vector<16x32xf32>
    %cst_205 = arith.constant dense<0.000000e+00> : vector<16xf32>
    %476 = vector.multi_reduction <add>, %475, %cst_205 [1] : vector<16x32xf32> to vector<16xf32>
    %477 = vector.shape_cast %476 : vector<16xf32> to vector<16x1xf32>
    %cst_206 = arith.constant 3.200000e+01 : f32
    %478 = vector.broadcast %cst_206 : f32 to vector<16x1xf32>
    %479 = arith.divf %477, %478 : vector<16x1xf32>
    %480 = vector.broadcast %479 : vector<16x1xf32> to vector<16x32xf32>
    %481 = arith.subf %475, %480 : vector<16x32xf32>
    %482 = arith.mulf %481, %481 : vector<16x32xf32>
    %cst_207 = arith.constant dense<0.000000e+00> : vector<16xf32>
    %483 = vector.multi_reduction <add>, %482, %cst_207 [1] : vector<16x32xf32> to vector<16xf32>
    %484 = vector.shape_cast %483 : vector<16xf32> to vector<16x1xf32>
    %cst_208 = arith.constant 3.200000e+01 : f32
    %485 = vector.broadcast %cst_208 : f32 to vector<16x1xf32>
    %486 = arith.divf %484, %485 : vector<16x1xf32>
    %487 = vector.broadcast %479 : vector<16x1xf32> to vector<16x32xf32>
    %488 = arith.subf %475, %487 : vector<16x32xf32>
    %cst_209 = arith.constant 9.99999974E-6 : f32
    %489 = vector.broadcast %cst_209 : f32 to vector<16x1xf32>
    %490 = arith.addf %486, %489 : vector<16x1xf32>
    %491 = math.rsqrt %490 : vector<16x1xf32>
    %492 = vector.broadcast %491 : vector<16x1xf32> to vector<16x32xf32>
    %493 = arith.mulf %488, %492 : vector<16x32xf32>
    %494 = vector.broadcast %349 : vector<1x32xf32> to vector<16x32xf32>
    %495 = arith.mulf %493, %494 : vector<16x32xf32>
    %496 = vector.broadcast %351 : vector<1x32xf32> to vector<16x32xf32>
    %497 = arith.addf %495, %496 : vector<16x32xf32>
    %c2_210 = arith.constant 2 : index
    %c0_211 = arith.constant 0 : index
    %c0_212 = arith.constant 0 : index
    %498 = vector.load %arg10[%c2_210, %c0_211, %c0_212] : memref<3x32x128xf32, #tpu.memory_space<vmem>>, vector<1x32x128xf32>
    %499 = vector.shape_cast %498 : vector<1x32x128xf32> to vector<32x128xf32>
    %cst_213 = arith.constant dense<0.000000e+00> : vector<16x128xf32>
    %500 = tpu.matmul %497, %499, %cst_213 {dimension_numbers = #tpu.dot_dimension_numbers<[1], [0], [0], [1], [0, 0, 1, 1], [], []>} : vector<16x32xf32>, vector<32x128xf32>, vector<16x128xf32> -> vector<16x128xf32>
    %c2_214 = arith.constant 2 : index
    %c0_215 = arith.constant 0 : index
    %c0_216 = arith.constant 0 : index
    %501 = vector.load %arg11[%c2_214, %c0_215, %c0_216] : memref<3x1x128xf32, #tpu.memory_space<vmem>>, vector<1x1x128xf32>
    %502 = vector.shape_cast %501 : vector<1x1x128xf32> to vector<1x128xf32>
    %503 = vector.broadcast %502 : vector<1x128xf32> to vector<16x128xf32>
    %504 = arith.addf %500, %503 : vector<16x128xf32>
    %cst_217 = arith.constant 0.000000e+00 : f32
    %505 = vector.broadcast %cst_217 : f32 to vector<16x128xf32>
    %506 = arith.maximumf %504, %505 : vector<16x128xf32>
    %c2_218 = arith.constant 2 : index
    %c0_219 = arith.constant 0 : index
    %c0_220 = arith.constant 0 : index
    %507 = vector.load %arg12[%c2_218, %c0_219, %c0_220] : memref<3x128x32xf32, #tpu.memory_space<vmem>>, vector<1x128x32xf32>
    %508 = vector.shape_cast %507 : vector<1x128x32xf32> to vector<128x32xf32>
    %cst_221 = arith.constant dense<0.000000e+00> : vector<16x32xf32>
    %509 = tpu.matmul %506, %508, %cst_221 {dimension_numbers = #tpu.dot_dimension_numbers<[1], [0], [0], [1], [0, 0, 1, 1], [], []>} : vector<16x128xf32>, vector<128x32xf32>, vector<16x32xf32> -> vector<16x32xf32>
    %510 = arith.addf %475, %509 : vector<16x32xf32>
    %c2_222 = arith.constant 2 : index
    %c0_223 = arith.constant 0 : index
    %c0_224 = arith.constant 0 : index
    %511 = vector.load %arg13[%c2_222, %c0_223, %c0_224] : memref<3x1x32xf32, #tpu.memory_space<vmem>>, vector<1x1x32xf32>
    %512 = vector.shape_cast %511 : vector<1x1x32xf32> to vector<1x32xf32>
    %513 = vector.broadcast %512 : vector<1x32xf32> to vector<16x32xf32>
    %514 = arith.addf %510, %513 : vector<16x32xf32>
    %c0_225 = arith.constant 0 : index
    %c0_226 = arith.constant 0 : index
    %515 = vector.load %arg14[%c0_225, %c0_226] : memref<1x32xf32, #tpu.memory_space<vmem>>, vector<1x32xf32>
    %c0_227 = arith.constant 0 : index
    %c0_228 = arith.constant 0 : index
    %516 = vector.load %arg15[%c0_227, %c0_228] : memref<1x32xf32, #tpu.memory_space<vmem>>, vector<1x32xf32>
    %cst_229 = arith.constant dense<0.000000e+00> : vector<16xf32>
    %517 = vector.multi_reduction <add>, %514, %cst_229 [1] : vector<16x32xf32> to vector<16xf32>
    %518 = vector.shape_cast %517 : vector<16xf32> to vector<16x1xf32>
    %cst_230 = arith.constant 3.200000e+01 : f32
    %519 = vector.broadcast %cst_230 : f32 to vector<16x1xf32>
    %520 = arith.divf %518, %519 : vector<16x1xf32>
    %521 = vector.broadcast %520 : vector<16x1xf32> to vector<16x32xf32>
    %522 = arith.subf %514, %521 : vector<16x32xf32>
    %523 = arith.mulf %522, %522 : vector<16x32xf32>
    %cst_231 = arith.constant dense<0.000000e+00> : vector<16xf32>
    %524 = vector.multi_reduction <add>, %523, %cst_231 [1] : vector<16x32xf32> to vector<16xf32>
    %525 = vector.shape_cast %524 : vector<16xf32> to vector<16x1xf32>
    %cst_232 = arith.constant 3.200000e+01 : f32
    %526 = vector.broadcast %cst_232 : f32 to vector<16x1xf32>
    %527 = arith.divf %525, %526 : vector<16x1xf32>
    %528 = vector.broadcast %520 : vector<16x1xf32> to vector<16x32xf32>
    %529 = arith.subf %514, %528 : vector<16x32xf32>
    %cst_233 = arith.constant 9.99999974E-6 : f32
    %530 = vector.broadcast %cst_233 : f32 to vector<16x1xf32>
    %531 = arith.addf %527, %530 : vector<16x1xf32>
    %532 = math.rsqrt %531 : vector<16x1xf32>
    %533 = vector.broadcast %532 : vector<16x1xf32> to vector<16x32xf32>
    %534 = arith.mulf %529, %533 : vector<16x32xf32>
    %535 = vector.broadcast %515 : vector<1x32xf32> to vector<16x32xf32>
    %536 = arith.mulf %534, %535 : vector<16x32xf32>
    %537 = vector.broadcast %516 : vector<1x32xf32> to vector<16x32xf32>
    %538 = arith.addf %536, %537 : vector<16x32xf32>
    %c0_234 = arith.constant 0 : index
    %c0_235 = arith.constant 0 : index
    %539 = vector.load %arg16[%c0_234, %c0_235] : memref<32x128xf32, #tpu.memory_space<vmem>>, vector<32x128xf32>
    %cst_236 = arith.constant dense<0.000000e+00> : vector<16x128xf32>
    %540 = tpu.matmul %538, %539, %cst_236 {dimension_numbers = #tpu.dot_dimension_numbers<[1], [0], [0], [1], [0, 0, 1, 1], [], []>} : vector<16x32xf32>, vector<32x128xf32>, vector<16x128xf32> -> vector<16x128xf32>
    %c0_237 = arith.constant 0 : index
    %c0_238 = arith.constant 0 : index
    %541 = vector.load %arg17[%c0_237, %c0_238] : memref<1x128xf32, #tpu.memory_space<vmem>>, vector<1x128xf32>
    %542 = vector.broadcast %541 : vector<1x128xf32> to vector<16x128xf32>
    %543 = arith.addf %540, %542 : vector<16x128xf32>
    %c0_239 = arith.constant 0 : index
    %c0_240 = arith.constant 0 : index
    %544 = vector.load %arg18[%c0_239, %c0_240] : memref<16x128xf32, #tpu.memory_space<vmem>>, vector<16x128xf32>
    tpu.vector_store %arg18[%c0_239, %c0_240], %543 {strides = array<i32>} : memref<16x128xf32, #tpu.memory_space<vmem>>, vector<16x128xf32>,
    return
  }
}

</mosaic_0001>

<bundles_post_ra>
// kernel: forward.1
= control target key start
LH: loop header
LB: loop body
LE: loop exit
PB: predicated region body
PF: predicated region fallthrough
CT: control target
= control target key end

     0   :  { %v7399_v0 = vmov 0   ;;  %v61_v19 = vlaneseq  ;;  %v7400_v22 = vmov 1.0   ;;  %vm172_vm2 = vcmask 261120   ;;  %s7405_s24 = smov 104   ;;  %s7406_s25 = smov 8   ;;  %s8700_s0 = inlined_call_operand.vmem [shape: s32[16,1], index: 0, kind: input, shape index: {}]   ;;  %s8701_s1 = inlined_call_operand.vmem [shape: f32[128,32], index: 1, kind: input, shape index: {}]   ;;  %s8702_s2 = inlined_call_operand.vmem [shape: f32[8,32], index: 2, kind: input, shape index: {}]   ;;  %s8703_s4 = inlined_call_operand.vmem [shape: f32[3,32,32], index: 4, kind: input, shape index: {}]   ;;  %s8704_s3 = inlined_call_operand.vmem [shape: f32[3,32,32], index: 3, kind: input, shape index: {}]   ;;  %s8705_s8 = inlined_call_operand.vmem [shape: f32[3,1,32], index: 8, kind: input, shape index: {}]   ;;  %s8706_s9 = inlined_call_operand.vmem [shape: f32[3,1,32], index: 9, kind: input, shape index: {}]   ;;  %s8707_s5 = inlined_call_operand.vmem [shape: f32[3,32,32], index: 5, kind: input, shape index: {}]   ;;  %s8708_s6 = inlined_call_operand.vmem [shape: f32[3,32,32], index: 6, kind: input, shape index: {}]   ;;  %s8709_s7 = inlined_call_operand.vmem [shape: f32[3,1,32], index: 7, kind: input, shape index: {}]   ;;  %s8710_s10 = inlined_call_operand.vmem [shape: f32[3,32,128], index: 10, kind: input, shape index: {}]   ;;  %s8711_s12 = inlined_call_operand.vmem [shape: f32[3,128,32], index: 12, kind: input, shape index: {}]   ;;  %s8712_s11 = inlined_call_operand.vmem [shape: f32[3,1,128], index: 11, kind: input, shape index: {}]   ;;  %s8713_s13 = inlined_call_operand.vmem [shape: f32[3,1,32], index: 13, kind: input, shape index: {}]   ;;  %s8714_s16 = inlined_call_operand.vmem [shape: f32[32,128], index: 16, kind: input, shape index: {}]   ;;  %s8715_s14 = inlined_call_operand.vmem [shape: f32[1,32], index: 14, kind: input, shape index: {}]   ;;  %s8716_s15 = inlined_call_operand.vmem [shape: f32[1,32], index: 15, kind: input, shape index: {}]   ;;  %s8717_s17 = inlined_call_operand.vmem [shape: f32[1,128], index: 17, kind: input, shape index: {}]   ;;  %s8718_s18 = inlined_call_operand.vmem [shape: f32[16,128], index: 18, kind: output, shape index: {}]  }
   0x1   :  { %8721 = sst [smem:[#allocation2_spill]] %s8700_s0  ;;  %7274 = vset.pattern.permute.xlu0 %v7399_v0  ;;  %v219_v41 = vld [vmem:[%s8703_s4 + $0x18] sm:$0xff]  ;;  %v218_v42 = vld [vmem:[%s8703_s4 + $0x10] sm:$0xff]  ;;  %v217_v43 = vld [vmem:[%s8703_s4 + $0x8] sm:$0xff]  ;;  %vm7402_vm3 = vmmov 0   ;;  %vm459_vm4 = vcmask 64512  }
   0x2   :  { %8722 = sst [smem:[#allocation3_spill]] %s8701_s1  ;;  %v7559_v20 = vand.u32 127, %v61_v19  ;;  %6743 = vmatprep.subr.mxu1 %v219_v41  ;;  %v216_v44 = vld [vmem:[%s8703_s4] sm:$0xff]  ;;  %v304_v45 = vld [vmem:[%s8704_s3 + $0x18] sm:$0xff]  ;;  %v303_v62 = vld [vmem:[%s8704_s3 + $0x10] sm:$0xff]  ;;  %s7407_s26 = smov 16  }
   0x3   :  { %8723 = sst [smem:[#allocation4_spill]] %s8702_s2  ;;  %6744 = vmatpush3.msra.mxu1 %v219_v41  ;;  %v7596_v53 = vld [vmem:[%s8705_s8] ss:$0 sm:$0xff]  ;;  %v302_v63 = vld [vmem:[%s8704_s3 + $0x8] sm:$0xff]  ;;  %s7408_s22 = smov 24   ;;  %vm1819_vm6 = vcmask 195584  }
   0x4   :  { %s8724_s29 = sld [smem:[#allocation2_spill]]  ;;  %6745 = vmatprep.subr.mxu1 %v218_v42  ;;  %v7601_v55 = vld [vmem:[%s8706_s9] ss:$0 sm:$0xff]  ;;  %vm1816_vm7 = vcmask 130048  }
   0x5   :  { %s8725_s19 = sld [smem:[#allocation3_spill]]  ;;  %6746 = vmatpush3.msra.mxu1 %v218_v42  ;;  %v301_v0 = vld [vmem:[%s8704_s3] sm:$0xff] }
   0x6   :  { %s8726_s23 = sld [smem:[#allocation4_spill]]  ;;  %6747 = vmatprep.subr.mxu1 %v217_v43 }
   0x7   :  { %6748 = vmatpush3.msra.mxu1 %v217_v43 }
   0x8   :  { %6749 = vmatprep.subr.mxu1 %v216_v44 }
   0x9   :  { %6750 = vmatpush3.msra.mxu1 %v216_v44 }
   0xa   :  { %v59_v1 = vld [vmem:[%s8724_s29] sm:$0xff]  ;;  %v60_v4 = vld [vmem:[%s8724_s29 + $0x8] sm:$0xff]  ;;  %6754 = vmatprep.subr.mxu1 %v304_v45 }
   0xb   :  { %v90_v2 = vld [vmem:[%s8725_s19 + $0x78] sm:$0xff]  ;;  %64 = vperm.xlu0 %7274, %v59_v1   ;;  %v89_v3 = vld [vmem:[%s8725_s19 + $0x70] sm:$0xff]  ;;  %v88_v5 = vld [vmem:[%s8725_s19 + $0x68] sm:$0xff] }
   0xc   :  { %6708 = vmatprep.subr.mxu0 %v90_v2  ;;  %v87_v6 = vld [vmem:[%s8725_s19 + $0x60] sm:$0xff]  ;;  %v86_v7 = vld [vmem:[%s8725_s19 + $0x58] sm:$0xff]  ;;  %v85_v8 = vld [vmem:[%s8725_s19 + $0x50] sm:$0xff] }
   0xd   :  { %6709 = vmatpush3.msra.mxu0 %v90_v2  ;;  %v84_v9 = vld [vmem:[%s8725_s19 + $0x48] sm:$0xff]  ;;  %v83_v10 = vld [vmem:[%s8725_s19 + $0x40] sm:$0xff]  ;;  %v82_v11 = vld [vmem:[%s8725_s19 + $0x38] sm:$0xff] }
   0xe   :  { %6710 = vmatprep.subr.mxu0 %v89_v3  ;;  %v81_v12 = vld [vmem:[%s8725_s19 + $0x30] sm:$0xff]  ;;  %v80_v13 = vld [vmem:[%s8725_s19 + $0x28] sm:$0xff]  ;;  %v79_v14 = vld [vmem:[%s8725_s19 + $0x20] sm:$0xff] }
   0xf   :  { %6711 = vmatpush3.msra.mxu0 %v89_v3  ;;  %67 = vperm.xlu0 %7274, %v60_v4   ;;  %v78_v15 = vld [vmem:[%s8725_s19 + $0x18] sm:$0xff]  ;;  %v77_v16 = vld [vmem:[%s8725_s19 + $0x10] sm:$0xff]  ;;  %v76_v17 = vld [vmem:[%s8725_s19 + $0x8] sm:$0xff] }
  0x10   :  { %6712 = vmatprep.subr.mxu0 %v88_v5  ;;  %v75_v18 = vld [vmem:[%s8725_s19] sm:$0xff]  ;;  %v383_v1 = vld [vmem:[%s8707_s5 + $0x18] sm:$0xff]  ;;  %v382_v2 = vld [vmem:[%s8707_s5 + $0x10] sm:$0xff]  ;;  %s7403_s19 = smov 120  }
  0x11   :  { %6713 = vmatpush3.msra.mxu0 %v88_v5  ;;  %v91_v25 = vld [vmem:[%s8726_s23] sm:$0xff]  ;;  %v381_v3 = vld [vmem:[%s8707_s5 + $0x8] sm:$0xff]  ;;  %v7401_v5 = vmov 0.0   ;;  %s7404_s23 = smov 112  }
  0x12   :  { %6714 = vmatprep.subr.mxu0 %v87_v6  ;;  %v380_v4 = vld [vmem:[%s8707_s5] sm:$0xff] }
  0x13   :  { %6715 = vmatpush3.msra.mxu0 %v87_v6 }
  0x14   :  { %6716 = vmatprep.subr.mxu0 %v86_v7 }
  0x15   :  { %6717 = vmatpush3.msra.mxu0 %v86_v7 }
  0x16   :  { %6718 = vmatprep.subr.mxu0 %v85_v8 }
  0x17   :  { %6719 = vmatpush3.msra.mxu0 %v85_v8 }
  0x18   :  { %6720 = vmatprep.subr.mxu0 %v84_v9 }
  0x19   :  { %6721 = vmatpush3.msra.mxu0 %v84_v9 }
  0x1a   :  { %6722 = vmatprep.subr.mxu0 %v83_v10 }
  0x1b   :  { %6723 = vmatpush3.msra.mxu0 %v83_v10 }
  0x1c   :  { %6724 = vmatprep.subr.mxu0 %v82_v11 }
  0x1d   :  { %6725 = vmatpush3.msra.mxu0 %v82_v11 }
  0x1e   :  { %6726 = vmatprep.subr.mxu0 %v81_v12 }
  0x1f   :  { %6727 = vmatpush3.msra.mxu0 %v81_v12  ;;  %v168_v12 = vshrl.u32 %v61_v19, 7 }
  0x20   :  { %6728 = vmatprep.subr.mxu0 %v80_v13 }
  0x21   :  { %6729 = vmatpush3.msra.mxu0 %v80_v13  ;;  %vm7672_vm5 = vcmp.ge.s32.totalorder %v168_v12, %v7559_v20 }
  0x22   :  { %6730 = vmatprep.subr.mxu0 %v79_v14 }
  0x23   :  { %6731 = vmatpush3.msra.mxu0 %v79_v14 }
  0x24   :  { %6732 = vmatprep.subr.mxu0 %v78_v15 }
  0x25   :  { %6733 = vmatpush3.msra.mxu0 %v78_v15 }
  0x26   :  { %6734 = vmatprep.subr.mxu0 %v77_v16 }
  0x27   :  { %6735 = vmatpush3.msra.mxu0 %v77_v16 }
  0x28   :  { %6736 = vmatprep.subr.mxu0 %v76_v17 }
  0x29   :  { %6737 = vmatpush3.msra.mxu0 %v76_v17 }
  0x2a   :  { %6738 = vmatprep.subr.mxu0 %v75_v18 }
  0x2b   :  { %6739 = vmatpush3.msra.mxu0 %v75_v18 }
  0x2c   :  { %6796 = vmatprep.subr.mxu0 %v7401_v5 }
  0x86   :  { %v65_v21 = vpop.permute.xlu0 %64 }
  0x87   :  { %vm69_vm0 = vcmp.eq.s32.totalorder %v65_v21, %v7559_v20 }
  0x88   :  { %6740 = vmatprep.mubr.msk.f32.mxu0 %vm69_vm0, %v7400_v22 }
  0x8a   :  { %v68_v23 = vpop.permute.xlu0 %67 }
  0x8b   :  { %vm70_vm1 = vcmp.eq.s32.totalorder %v68_v23, %v7559_v20 }
  0x8c   :  { %6741 = vmatmul.mubr.msk.f32.vlgmr.msra.gmra.mxu0 %vm70_vm1, %v7400_v22 }
  0x8d   :  { %6798 = vmatprep.mubr.msk.f32.mxu0 %vm7402_vm3, %v7401_v5 }
 0x14c   :  { %v6742_v24 = vpop.f32.mrf.mxu0 }
 0x14d   :  { %v7568_v28 = vadd.f32 %v6742_v24, %v91_v25 }
 0x14e   :  { %v158_v26 = vpop.f32.mrf.mxu0 }
 0x14f   :  { %v7566_v27 = vadd.f32 %v158_v26, %v91_v25  ;;  %v176_v30 = vsel %vm172_vm2, %v7568_v28, 0.0 }
 0x151   :  { %v173_v29 = vsel %vm172_vm2, %v7566_v27, 0.0 }
 0x152   :  { %174 = vadd.xlane.f32.xlu1 %v173_v29 }
 0x156   :  { %177 = vadd.xlane.f32.xlu1 %v176_v30 }
 0x1db   :  { %v175_v31 = vpop.xlane.xlu1 %174 }
 0x1dc   :  { %v180_v32 = vmul.f32 0.03125, %v175_v31 }
 0x1de   :  { %v182_v33 = vsub.f32 %v7566_v27, %v180_v32 }
 0x1df   :  { %v178_v34 = vpop.xlane.xlu1 %177 }
 0x1e0   :  { %v181_v35 = vmul.f32 0.03125, %v178_v34  ;;  %v184_v36 = vmul.f32 %v182_v33, %v182_v33 }
 0x1e2   :  { %v183_v37 = vsub.f32 %v7568_v28, %v181_v35  ;;  %v186_v38 = vsel %vm172_vm2, %v184_v36, 0.0 }
 0x1e3   :  { %187 = vadd.xlane.f32.xlu0 %v186_v38 }
 0x1e4   :  { %v185_v39 = vmul.f32 %v183_v37, %v183_v37 }
 0x1e6   :  { %v189_v40 = vsel %vm172_vm2, %v185_v39, 0.0 }
 0x1e7   :  { %190 = vadd.xlane.f32.xlu1 %v189_v40 }
 0x26c   :  { %v188_v46 = vpop.xlane.xlu0 %187 }
 0x26d   :  { %v192_v47 = vmul.f32 0.03125, %v188_v46 }
 0x26f   :  { %v194_v48 = vadd.f32 1e-05, %v192_v47 }
 0x270   :  { %v191_v49 = vpop.xlane.xlu1 %190 }
 0x271   :  { %7275 = vrsqrt.f32 %v194_v48  ;;  %v193_v50 = vmul.f32 0.03125, %v191_v49 }
 0x273   :  { %v195_v51 = vadd.f32 1e-05, %v193_v50 }
 0x275   :  { %7277 = vrsqrt.f32 %v195_v51 }
 0x27e   :  { %v7276_v52 = vpop.eup %7275 }
 0x27f   :  { %v198_v54 = vmul.f32 %v7276_v52, %v182_v33 }
 0x281   :  { %v206_v56 = vmul.f32 %v7596_v53, %v198_v54 }
 0x282   :  { %v7278_v57 = vpop.eup %7277 }
 0x283   :  { %v214_v58 = vadd.f32 %v7601_v55, %v206_v56  ;;  %v199_v59 = vmul.f32 %v7278_v57, %v183_v37 }
 0x285   :  { %6751 = vmatprep.mubr.msk.f32.mxu1 %vm172_vm2, %v214_v58  ;;  %v207_v60 = vmul.f32 %v7596_v53, %v199_v59 }
 0x287   :  { %v215_v61 = vadd.f32 %v7601_v55, %v207_v60 }
 0x289   :  { %6752 = vmatmul.mubr.msk.f32.vlgmr.msra.gmra.mxu1 %vm172_vm2, %v215_v61 }
 0x28a   :  { %6755 = vmatpush3.msra.mxu1 %v304_v45  ;;  %6762 = vmatprep.mubr.msk.f32.mxu1 %vm172_vm2, %v214_v58 }
 0x28b   :  { %6756 = vmatprep.subr.mxu1 %v303_v62 }
 0x28c   :  { %6757 = vmatpush3.msra.mxu1 %v303_v62 }
 0x28d   :  { %6758 = vmatprep.subr.mxu1 %v302_v63 }
 0x28e   :  { %6759 = vmatpush3.msra.mxu1 %v302_v63 }
 0x28f   :  { %6760 = vmatprep.subr.mxu1 %v301_v0 }
 0x290   :  { %6761 = vmatpush3.msra.mxu1 %v301_v0 }
 0x291   :  { %6763 = vmatmul.mubr.msk.f32.vlgmr.msra.gmra.mxu1 %vm172_vm2, %v215_v61  ;;  %6765 = vmatprep.subr.mxu1 %v383_v1 }
 0x292   :  { %6766 = vmatpush3.msra.mxu1 %v383_v1  ;;  %6773 = vmatprep.mubr.msk.f32.mxu1 %vm172_vm2, %v214_v58 }
 0x293   :  { %6767 = vmatprep.subr.mxu1 %v382_v2 }
 0x294   :  { %6768 = vmatpush3.msra.mxu1 %v382_v2 }
 0x295   :  { %6769 = vmatprep.subr.mxu1 %v381_v3 }
 0x296   :  { %6770 = vmatpush3.msra.mxu1 %v381_v3 }
 0x297   :  { %6771 = vmatprep.subr.mxu1 %v380_v4 }
 0x298   :  { %6772 = vmatpush3.msra.mxu1 %v380_v4 }
 0x299   :  { %6774 = vmatmul.mubr.msk.f32.vlgmr.msra.gmra.mxu1 %vm172_vm2, %v215_v61  ;;  %6776 = vmatprep.subr.mxu1 %v7401_v5 }
 0x29a   :  { %6778 = vmatprep.mubr.msk.f32.mxu1 %vm7402_vm3, %v7401_v5 }
 0x349   :  { %v7640_v6 = vpop.f32.mrf.mxu1 }
 0x34b   :  { %v7642_v7 = vpop.f32.mrf.mxu1 }
 0x351   :  { %v7644_v8 = vpop.f32.mrf.mxu1 }
 0x352   :  { %866 = vrot.lane.b32.xlu0 %v7644_v8, %s7403_s19 }
 0x353   :  { %v7648_v9 = vpop.f32.mrf.mxu1 }
 0x354   :  { %6777 = vmatpush3.xpose.msk.msra.mxu1 %vm459_vm4, %v7648_v9 }
 0x355   :  { %6781 = vmatprep.subr.mxu1 %v7401_v5 }
 0x357   :  { %6779 = vmatmul.mubr.msk.f32.vlgmr.msra.gmra.mxu1 %vm459_vm4, %v7642_v7 }
 0x358   :  { %6782 = vmatpush3.xpose.msk.msra.mxu1 %vm459_vm4, %v7644_v8  ;;  %6783 = vmatprep.mubr.msk.f32.mxu1 %vm7402_vm3, %v7401_v5 }
 0x359   :  { %v7659_v10 = vpop.f32.mrf.mxu1  ;;  %6786 = vmatprep.subr.mxu1 %v7401_v5 }
 0x35b   :  { %v7662_v11 = vpop.f32.mrf.mxu1  ;;  %6784 = vmatmul.mubr.msk.f32.vlgmr.msra.gmra.mxu1 %vm459_vm4, %v7640_v6 }
 0x35c   :  { %6787 = vmatpush3.msra.mxu1 %v7662_v11  ;;  %6788 = vmatprep.mubr.msk.f32.mxu1 %vm7402_vm3, %v7401_v5 }
 0x35d   :  { %6791 = vmatprep.subr.mxu1 %v7401_v5 }
 0x3c4   :  { %v867_v44 = vpop.permute.xlu0 %866 }
 0x417   :  { %v532_v14 = vpop.f32.mrf.mxu1 }
 0x418   :  { %v612_v15 = vmul.f32 0.17677669, %v532_v14 }
 0x419   :  { %v6780_v16 = vpop.f32.mrf.mxu1 }
 0x41a   :  { %v616_v17 = vsel %vm7672_vm5, %v612_v15, -1e+30 }
 0x41b   :  { %v608_v18 = vpop.f32.mrf.mxu1  ;;  %v618_v21 = vsel %vm459_vm4, %v616_v17, -inf }
 0x41c   :  { %v613_v22 = vmul.f32 0.17677669, %v608_v18  ;;  %619 = vmax.xlane.f32.xlu1 %v618_v21 }
 0x41d   :  { %v6785_v23 = vpop.f32.mrf.mxu1 }
 0x41e   :  { %v617_v19 = vsel %vm7672_vm5, %v613_v22, -1e+30 }
 0x41f   :  { %v621_v20 = vsel %vm459_vm4, %v617_v19, -inf }
 0x420   :  { %622 = vmax.xlane.f32.xlu1 %v621_v20 }
 0x431   :  { %788 = vrot.lane.b32.xlu1 %v7648_v9, %s7403_s19 }
 0x435   :  { %786 = vrot.lane.b32.xlu1 %v7642_v7, %s7403_s19 }
 0x4a5   :  { %v620_v24 = vpop.xlane.xlu1 %619 }
 0x4a6   :  { %v624_v25 = vsub.f32 %v616_v17, %v620_v24 }
 0x4a8   :  { %v626_v26 = vmul.f32 1.442695, %v624_v25 }
 0x4a9   :  { %v623_v29 = vpop.xlane.xlu1 %622 }
 0x4aa   :  { %7279 = vpow2.f32 %v626_v26  ;;  %v625_v30 = vsub.f32 %v617_v19, %v623_v29 }
 0x4ac   :  { %v628_v31 = vmul.f32 1.442695, %v625_v30 }
 0x4ad   :  { %v789_v32 = vpop.permute.xlu1 %788 }
 0x4ae   :  { %7281 = vpow2.f32 %v628_v31  ;;  %6797 = vmatpush3.xpose.msk.msra.mxu0 %vm459_vm4, %v789_v32 }
 0x4af   :  { %6806 = vmatprep.subr.mxu0 %v7401_v5 }
 0x4b1   :  { %v787_v33 = vpop.permute.xlu1 %786 }
 0x4b2   :  { %6799 = vmatmul.mubr.msk.f32.vlgmr.msra.gmra.mxu0 %vm459_vm4, %v787_v33 }
 0x4b3   :  { %6808 = vmatprep.mubr.msk.f32.mxu0 %vm7402_vm3, %v7401_v5 }
 0x4b7   :  { %v7280_v34 = vpop.eup %7279 }
 0x4b8   :  { %v630_v35 = vsel %vm459_vm4, %v7280_v34, 0.0 }
 0x4b9   :  { %631 = vadd.xlane.f32.xlu1 %v630_v35 }
 0x4bb   :  { %v7282_v36 = vpop.eup %7281 }
 0x4bc   :  { %v633_v37 = vsel %vm459_vm4, %v7282_v36, 0.0 }
 0x4bd   :  { %634 = vadd.xlane.f32.xlu1 %v633_v37 }
 0x4ce   :  { %864 = vrot.lane.b32.xlu1 %v7640_v6, %s7403_s19 }
 0x542   :  { %v632_v38 = vpop.xlane.xlu1 %631 }
 0x543   :  { %7283 = vrcp.f32 %v632_v38 }
 0x546   :  { %v635_v39 = vpop.xlane.xlu1 %634 }
 0x547   :  { %7285 = vrcp.f32 %v635_v39 }
 0x54a   :  { %v865_v45 = vpop.permute.xlu1 %864 }
 0x550   :  { %v7284_v40 = vpop.eup %7283 }
 0x551   :  { %v637_v41 = vmul.f32 %v7284_v40, %v7280_v34 }
 0x553   :  { %6789 = vmatmul.mubr.msk.f32.vlgmr.msra.gmra.mxu1 %vm459_vm4, %v637_v41 }
 0x554   :  { %v7286_v42 = vpop.eup %7285  ;;  %6792 = vmatpush3.msra.mxu1 %v7659_v10  ;;  %6793 = vmatprep.mubr.msk.f32.mxu1 %vm7402_vm3, %v7401_v5 }
 0x555   :  { %6801 = vmatprep.subr.mxu1 %v7401_v5  ;;  %v639_v43 = vmul.f32 %v7286_v42, %v7282_v36 }
 0x557   :  { %6794 = vmatmul.mubr.msk.f32.vlgmr.msra.gmra.mxu1 %vm459_vm4, %v639_v43 }
 0x558   :  { %6802 = vmatpush3.xpose.msk.msra.mxu1 %vm459_vm4, %v867_v44  ;;  %6803 = vmatprep.mubr.msk.f32.mxu1 %vm7402_vm3, %v7401_v5 }
 0x559   :  { %6811 = vmatprep.subr.mxu1 %v7401_v5 }
 0x55b   :  { %6804 = vmatmul.mubr.msk.f32.vlgmr.msra.gmra.mxu1 %vm459_vm4, %v865_v45 }
 0x55c   :  { %6813 = vmatprep.mubr.msk.f32.mxu1 %vm7402_vm3, %v7401_v5 }
 0x572   :  { %v860_v46 = vpop.f32.mrf.mxu0 }
 0x573   :  { %v942_v47 = vmul.f32 0.17677669, %v860_v46 }
 0x574   :  { %v6800_v48 = vpop.f32.mrf.mxu0 }
 0x575   :  { %v944_v49 = vsel %vm7672_vm5, %v942_v47, -1e+30 }
 0x576   :  { %v946_v50 = vsel %vm459_vm4, %v944_v49, -inf }
 0x577   :  { %947 = vmax.xlane.f32.xlu1 %v946_v50 }
 0x600   :  { %v948_v51 = vpop.xlane.xlu1 %947 }
 0x601   :  { %v952_v52 = vsub.f32 %v944_v49, %v948_v51 }
 0x603   :  { %v954_v54 = vmul.f32 1.442695, %v952_v52 }
 0x605   :  { %7287 = vpow2.f32 %v954_v54 }
 0x612   :  { %v7288_v56 = vpop.eup %7287 }
 0x613   :  { %v7711_v57 = vpop.f32.mrf.mxu1  ;;  %v958_v58 = vsel %vm459_vm4, %v7288_v56, 0.0 }
 0x614   :  { %959 = vadd.xlane.f32.xlu1 %v958_v58 }
 0x615   :  { %v6790_v59 = vpop.f32.mrf.mxu1 }
 0x617   :  { %v7714_v60 = vpop.f32.mrf.mxu1 }
 0x619   :  { %v6795_v61 = vpop.f32.mrf.mxu1 }
 0x61b   :  { %v938_v62 = vpop.f32.mrf.mxu1 }
 0x61c   :  { %v943_v63 = vmul.f32 0.17677669, %v938_v62 }
 0x61d   :  { %v6805_v0 = vpop.f32.mrf.mxu1 }
 0x61e   :  { %v945_v1 = vsel %vm7672_vm5, %v943_v63, -1e+30 }
 0x61f   :  { %v949_v2 = vsel %vm459_vm4, %v945_v1, -inf }
 0x620   :  { %950 = vmax.xlane.f32.xlu0 %v949_v2 }
 0x625   :  { %969 = vrot.lane.b32.xlu1 %v7662_v11, %s7403_s19 }
 0x629   :  { %1124 = vrot.lane.b32.xlu1 %v7648_v9, %s7404_s23 }
 0x62d   :  { %1202 = vrot.lane.b32.xlu1 %v7644_v8, %s7404_s23 }
 0x631   :  { %1200 = vrot.lane.b32.xlu1 %v7640_v6, %s7404_s23 }
 0x636   :  { %1046 = vrot.lane.b32.xlu0 %v7659_v10, %s7403_s19 }
 0x69d   :  { %v960_v3 = vpop.xlane.xlu1 %959 }
 0x69e   :  { %7289 = vrcp.f32 %v960_v3 }
 0x6a1   :  { %v970_v4 = vpop.permute.xlu1 %969 }
 0x6a2   :  { %6807 = vmatpush3.msra.mxu0 %v970_v4 }
 0x6a3   :  { %6816 = vmatprep.subr.mxu0 %v7401_v5 }
 0x6a5   :  { %v1125_v21 = vpop.permute.xlu1 %1124 }
 0x6a9   :  { %v951_v12 = vpop.xlane.xlu0 %950  ;;  %v1203_v25 = vpop.permute.xlu1 %1202 }
 0x6aa   :  { %v953_v14 = vsub.f32 %v945_v1, %v951_v12 }
 0x6ab   :  { %v7290_v15 = vpop.eup %7289 }
 0x6ac   :  { %v956_v16 = vmul.f32 1.442695, %v953_v14  ;;  %v965_v17 = vmul.f32 %v7290_v15, %v7288_v56 }
 0x6ad   :  { %v1047_v18 = vpop.permute.xlu0 %1046  ;;  %v1201_v29 = vpop.permute.xlu1 %1200 }
 0x6ae   :  { %7291 = vpow2.f32 %v956_v16  ;;  %6809 = vmatmul.mubr.msk.f32.vlgmr.msra.gmra.mxu0 %vm459_vm4, %v965_v17  ;;  %6812 = vmatpush3.msra.mxu1 %v1047_v18 }
 0x6af   :  { %6817 = vmatpush3.xpose.msk.msra.mxu0 %vm459_vm4, %v1125_v21  ;;  %6818 = vmatprep.mubr.msk.f32.mxu0 %vm7402_vm3, %v7401_v5 }
 0x6b0   :  { %6821 = vmatprep.subr.mxu1 %v7401_v5  ;;  %6826 = vmatprep.subr.mxu0 %v7401_v5 }
 0x6bb   :  { %v7292_v22 = vpop.eup %7291 }
 0x6bc   :  { %v961_v23 = vsel %vm459_vm4, %v7292_v22, 0.0 }
 0x6bd   :  { %962 = vadd.xlane.f32.xlu0 %v961_v23 }
 0x6d3   :  { %1122 = vrot.lane.b32.xlu0 %v7642_v7, %s7404_s23 }
 0x746   :  { %v963_v19 = vpop.xlane.xlu0 %962 }
 0x747   :  { %7293 = vrcp.f32 %v963_v19 }
 0x74a   :  { %v1123_v20 = vpop.permute.xlu0 %1122 }
 0x74b   :  { %6819 = vmatmul.mubr.msk.f32.vlgmr.msra.gmra.mxu0 %vm459_vm4, %v1123_v20 }
 0x74c   :  { %6828 = vmatprep.mubr.msk.f32.mxu0 %vm7402_vm3, %v7401_v5 }
 0x754   :  { %v7294_v24 = vpop.eup %7293 }
 0x755   :  { %v967_v26 = vmul.f32 %v7294_v24, %v7292_v22 }
 0x757   :  { %6814 = vmatmul.mubr.msk.f32.vlgmr.msra.gmra.mxu1 %vm459_vm4, %v967_v26 }
 0x758   :  { %6822 = vmatpush3.xpose.msk.msra.mxu1 %vm459_vm4, %v1203_v25  ;;  %6823 = vmatprep.mubr.msk.f32.mxu1 %vm7402_vm3, %v7401_v5 }
 0x759   :  { %6831 = vmatprep.subr.mxu1 %v7401_v5 }
 0x75b   :  { %6824 = vmatmul.mubr.msk.f32.vlgmr.msra.gmra.mxu1 %vm459_vm4, %v1201_v29 }
 0x75c   :  { %6833 = vmatprep.mubr.msk.f32.mxu1 %vm7402_vm3, %v7401_v5 }
 0x76e   :  { %v7750_v30 = vpop.f32.mrf.mxu0 }
 0x770   :  { %v6810_v31 = vpop.f32.mrf.mxu0 }
 0x80b   :  { %v1196_v32 = vpop.f32.mrf.mxu0 }
 0x80c   :  { %v1278_v33 = vmul.f32 0.17677669, %v1196_v32 }
 0x80d   :  { %v6820_v34 = vpop.f32.mrf.mxu0 }
 0x80e   :  { %v1280_v35 = vsel %vm7672_vm5, %v1278_v33, -1e+30 }
 0x80f   :  { %v1282_v36 = vsel %vm459_vm4, %v1280_v35, -inf }
 0x810   :  { %1283 = vmax.xlane.f32.xlu0 %v1282_v36 }
 0x817   :  { %v7755_v37 = vpop.f32.mrf.mxu1 }
 0x819   :  { %v6815_v38 = vpop.f32.mrf.mxu1 }
 0x81b   :  { %v1274_v39 = vpop.f32.mrf.mxu1 }
 0x81c   :  { %v1279_v40 = vmul.f32 0.17677669, %v1274_v39 }
 0x81d   :  { %v6825_v41 = vpop.f32.mrf.mxu1 }
 0x81e   :  { %v1281_v42 = vsel %vm7672_vm5, %v1279_v40, -1e+30 }
 0x81f   :  { %v1285_v43 = vsel %vm459_vm4, %v1281_v42, -inf }
 0x820   :  { %1286 = vmax.xlane.f32.xlu1 %v1285_v43  ;;  %v1824_v43 = vld [vmem:[%s8708_s6 + $0x10] sm:$0xff] }
 0x831   :  { %1304 = vrot.lane.b32.xlu1 %v7662_v11, %s7404_s23 }
 0x835   :  { %1458 = vrot.lane.b32.xlu1 %v7648_v9, %s7405_s24 }
 0x839   :  { %1536 = vrot.lane.b32.xlu1 %v7644_v8, %s7405_s24 }
 0x83d   :  { %1534 = vrot.lane.b32.xlu1 %v7640_v6, %s7405_s24 }
 0x899   :  { %v1284_v44 = vpop.xlane.xlu0 %1283 }
 0x89a   :  { %v1288_v45 = vsub.f32 %v1280_v35, %v1284_v44  ;;  %v1823_v44 = vld [vmem:[%s8708_s6 + $0x8] sm:$0xff] }
 0x89c   :  { %v1290_v46 = vmul.f32 1.442695, %v1288_v45  ;;  %v1822_v45 = vld [vmem:[%s8708_s6] sm:$0xff] }
 0x89e   :  { %7295 = vpow2.f32 %v1290_v46 }
 0x8a9   :  { %v1287_v47 = vpop.xlane.xlu1 %1286 }
 0x8aa   :  { %v1289_v8 = vsub.f32 %v1281_v42, %v1287_v47 }
 0x8ab   :  { %v7296_v48 = vpop.eup %7295 }
 0x8ac   :  { %v1294_v49 = vsel %vm459_vm4, %v7296_v48, 0.0  ;;  %v1292_v9 = vmul.f32 1.442695, %v1289_v8 }
 0x8ad   :  { %1295 = vadd.xlane.f32.xlu0 %v1294_v49  ;;  %v1305_v50 = vpop.permute.xlu1 %1304 }
 0x8ae   :  { %6827 = vmatpush3.msra.mxu0 %v1305_v50  ;;  %7297 = vpow2.f32 %v1292_v9 }
 0x8af   :  { %6836 = vmatprep.subr.mxu0 %v7401_v5 }
 0x8b1   :  { %v1459_v59 = vpop.permute.xlu1 %1458 }
 0x8b5   :  { %v1537_v63 = vpop.permute.xlu1 %1536 }
 0x8b9   :  { %v1535_v1 = vpop.permute.xlu1 %1534 }
 0x8bb   :  { %v7298_v6 = vpop.eup %7297 }
 0x8bc   :  { %v1297_v51 = vsel %vm459_vm4, %v7298_v6, 0.0 }
 0x8c3   :  { %1380 = vrot.lane.b32.xlu0 %v7659_v10, %s7404_s23 }
 0x8e2   :  { %1298 = vadd.xlane.f32.xlu0 %v1297_v51 }
 0x8f8   :  { %1456 = vrot.lane.b32.xlu0 %v7642_v7, %s7405_s24 }
 0x936   :  { %v1296_v52 = vpop.xlane.xlu0 %1295 }
 0x937   :  { %7299 = vrcp.f32 %v1296_v52 }
 0x93a   :  { %v1381_v54 = vpop.permute.xlu0 %1380 }
 0x93b   :  { %6832 = vmatpush3.msra.mxu1 %v1381_v54 }
 0x93c   :  { %6841 = vmatprep.subr.mxu1 %v7401_v5 }
 0x944   :  { %v7300_v56 = vpop.eup %7299 }
 0x945   :  { %v1301_v58 = vmul.f32 %v7300_v56, %v7296_v48 }
 0x947   :  { %6829 = vmatmul.mubr.msk.f32.vlgmr.msra.gmra.mxu0 %vm459_vm4, %v1301_v58 }
 0x948   :  { %6837 = vmatpush3.xpose.msk.msra.mxu0 %vm459_vm4, %v1459_v59  ;;  %6838 = vmatprep.mubr.msk.f32.mxu0 %vm7402_vm3, %v7401_v5 }
 0x949   :  { %6846 = vmatprep.subr.mxu0 %v7401_v5 }
 0x96b   :  { %v1299_v61 = vpop.xlane.xlu0 %1298 }
 0x96c   :  { %7301 = vrcp.f32 %v1299_v61 }
 0x96f   :  { %v1457_v7 = vpop.permute.xlu0 %1456 }
 0x970   :  { %6839 = vmatmul.mubr.msk.f32.vlgmr.msra.gmra.mxu0 %vm459_vm4, %v1457_v7 }
 0x971   :  { %6848 = vmatprep.mubr.msk.f32.mxu0 %vm7402_vm3, %v7401_v5 }
 0x979   :  { %v7302_v62 = vpop.eup %7301 }
 0x97a   :  { %v1303_v0 = vmul.f32 %v7302_v62, %v7298_v6 }
 0x97c   :  { %6834 = vmatmul.mubr.msk.f32.vlgmr.msra.gmra.mxu1 %vm459_vm4, %v1303_v0 }
 0x97d   :  { %6842 = vmatpush3.xpose.msk.msra.mxu1 %vm459_vm4, %v1537_v63  ;;  %6843 = vmatprep.mubr.msk.f32.mxu1 %vm7402_vm3, %v7401_v5 }
 0x97e   :  { %6851 = vmatprep.subr.mxu1 %v7401_v5 }
 0x980   :  { %6844 = vmatmul.mubr.msk.f32.vlgmr.msra.gmra.mxu1 %vm459_vm4, %v1535_v1 }
 0x981   :  { %6853 = vmatprep.mubr.msk.f32.mxu1 %vm7402_vm3, %v7401_v5 }
 0xa07   :  { %v1376_v2 = vpop.f32.mrf.mxu0 }
 0xa09   :  { %v6830_v3 = vpop.f32.mrf.mxu0 }
 0xa30   :  { %v1530_v4 = vpop.f32.mrf.mxu0 }
 0xa31   :  { %v1612_v12 = vmul.f32 0.17677669, %v1530_v4 }
 0xa32   :  { %v6840_v14 = vpop.f32.mrf.mxu0 }
 0xa33   :  { %v1614_v15 = vsel %vm7672_vm5, %v1612_v12, -1e+30 }
 0xa34   :  { %v1616_v16 = vsel %vm459_vm4, %v1614_v15, -inf }
 0xa35   :  { %1617 = vmax.xlane.f32.xlu0 %v1616_v16 }
 0xa3c   :  { %v1452_v17 = vpop.f32.mrf.mxu1 }
 0xa3e   :  { %v6835_v18 = vpop.f32.mrf.mxu1 }
 0xa40   :  { %v1608_v21 = vpop.f32.mrf.mxu1 }
 0xa41   :  { %v1613_v22 = vmul.f32 0.17677669, %v1608_v21 }
 0xa42   :  { %v6845_v23 = vpop.f32.mrf.mxu1 }
 0xa43   :  { %v1615_v19 = vsel %vm7672_vm5, %v1613_v22, -1e+30  ;;  %v1949_v23 = vld [vmem:[%s8710_s10 + $0x18] sm:$0xff] }
 0xa44   :  { %v1619_v20 = vsel %vm459_vm4, %v1615_v19, -inf }
 0xa45   :  { %1620 = vmax.xlane.f32.xlu1 %v1619_v20  ;;  %v1947_v20 = vld [vmem:[%s8710_s10 + $0x8] sm:$0xff] }
 0xa56   :  { %1638 = vrot.lane.b32.xlu1 %v7662_v11, %s7405_s24 }
 0xa5a   :  { %1792 = vrot.lane.b32.xlu1 %v7750_v30, %s7406_s25 }
 0xa5e   :  { %1794 = vrot.lane.b32.xlu1 %v7755_v37, %s7406_s25 }
 0xa62   :  { %1802 = vrot.lane.b32.xlu1 %v1452_v17, %s7407_s26 }
 0xabe   :  { %v1618_v24 = vpop.xlane.xlu0 %1617 }
 0xabf   :  { %v1622_v25 = vsub.f32 %v1614_v15, %v1618_v24  ;;  %v1946_v24 = vld [vmem:[%s8710_s10] sm:$0xff] }
 0xac1   :  { %v1624_v26 = vmul.f32 1.442695, %v1622_v25  ;;  %v2055_v25 = vld [vmem:[%s8711_s12 + $0x78] sm:$0xff] }
 0xac3   :  { %7303 = vpow2.f32 %v1624_v26  ;;  %v2054_v26 = vld [vmem:[%s8711_s12 + $0x70] sm:$0xff] }
 0xace   :  { %v1621_v29 = vpop.xlane.xlu1 %1620 }
 0xacf   :  { %v1623_v31 = vsub.f32 %v1615_v19, %v1621_v29  ;;  %v1948_v19 = vld [vmem:[%s8710_s10 + $0x10] sm:$0xff]  ;;  %v2053_v29 = vld [vmem:[%s8711_s12 + $0x68] sm:$0xff] }
 0xad0   :  { %v7304_v32 = vpop.eup %7303 }
 0xad1   :  { %v1626_v33 = vmul.f32 1.442695, %v1623_v31  ;;  %v1628_v11 = vsel %vm459_vm4, %v7304_v32, 0.0  ;;  %v2052_v31 = vld [vmem:[%s8711_s12 + $0x60] sm:$0xff] }
 0xad2   :  { %1629 = vadd.xlane.f32.xlu0 %v1628_v11  ;;  %v1639_v34 = vpop.permute.xlu1 %1638  ;;  %v2049_v11 = vld [vmem:[%s8711_s12 + $0x48] sm:$0xff] }
 0xad3   :  { %7305 = vpow2.f32 %v1626_v33  ;;  %6847 = vmatpush3.msra.mxu0 %v1639_v34  ;;  %v2050_v33 = vld [vmem:[%s8711_s12 + $0x50] sm:$0xff]  ;;  %v2048_v34 = vld [vmem:[%s8711_s12 + $0x40] sm:$0xff] }
 0xad4   :  { %6878 = vmatprep.subr.mxu0 %v2055_v25 }
 0xad6   :  { %v1793_v50 = vpop.permute.xlu1 %1792 }
 0xad7   :  { %v1814_v9 = vsel %vm459_vm4, %v7711_v57, %v1793_v50  ;;  %v6272_v57 = vld [vmem:[%s8709_s7] ss:$0 sm:$0xff] }
 0xada   :  { %v1795_v54 = vpop.permute.xlu1 %1794 }
 0xadb   :  { %v1815_v58 = vsel %vm459_vm4, %v7714_v60, %v1795_v54 }
 0xade   :  { %v1803_v56 = vpop.permute.xlu1 %1802 }
 0xadf   :  { %v1818_v59 = vsel %vm1816_vm7, %v1815_v58, %v1803_v56 }
 0xae0   :  { %v7306_v30 = vpop.eup %7305 }
 0xae1   :  { %v1631_v35 = vsel %vm459_vm4, %v7306_v30, 0.0 }
 0xae2   :  { %1632 = vadd.xlane.f32.xlu0 %v1631_v35  ;;  %v2046_v35 = vld [vmem:[%s8711_s12 + $0x30] sm:$0xff] }
 0xaf8   :  { %1714 = vrot.lane.b32.xlu0 %v7659_v10, %s7405_s24  ;;  %v1825_v10 = vld [vmem:[%s8708_s6 + $0x18] sm:$0xff] }
 0xafc   :  { %1800 = vrot.lane.b32.xlu0 %v1376_v2, %s7407_s26 }
 0xb5b   :  { %v1630_v36 = vpop.xlane.xlu0 %1629 }
 0xb5c   :  { %7307 = vrcp.f32 %v1630_v36  ;;  %v2045_v36 = vld [vmem:[%s8711_s12 + $0x28] sm:$0xff] }
 0xb69   :  { %v7308_v37 = vpop.eup %7307 }
 0xb6a   :  { %v1635_v38 = vmul.f32 %v7308_v37, %v7304_v32  ;;  %v2051_v32 = vld [vmem:[%s8711_s12 + $0x58] sm:$0xff]  ;;  %v2044_v37 = vld [vmem:[%s8711_s12 + $0x20] sm:$0xff] }
 0xb6b   :  { %v1633_v39 = vpop.xlane.xlu0 %1632 }
 0xb6c   :  { %7309 = vrcp.f32 %v1633_v39  ;;  %6849 = vmatmul.mubr.msk.f32.vlgmr.msra.gmra.mxu0 %vm459_vm4, %v1635_v38 }
 0xb6d   :  { %6879 = vmatpush3.msra.mxu0 %v2055_v25 }
 0xb6e   :  { %6880 = vmatprep.subr.mxu0 %v2054_v26 }
 0xb6f   :  { %v1715_v40 = vpop.permute.xlu0 %1714  ;;  %6881 = vmatpush3.msra.mxu0 %v2054_v26 }
 0xb70   :  { %6852 = vmatpush3.msra.mxu1 %v1715_v40  ;;  %6882 = vmatprep.subr.mxu0 %v2053_v29 }
 0xb71   :  { %6856 = vmatprep.subr.mxu1 %v1825_v10  ;;  %6883 = vmatpush3.msra.mxu0 %v2053_v29 }
 0xb72   :  { %6884 = vmatprep.subr.mxu0 %v2052_v31 }
 0xb73   :  { %v1801_v8 = vpop.permute.xlu0 %1800  ;;  %6885 = vmatpush3.msra.mxu0 %v2052_v31 }
 0xb74   :  { %v1817_v6 = vsel %vm1816_vm7, %v1814_v9, %v1801_v8  ;;  %6886 = vmatprep.subr.mxu0 %v2051_v32  ;;  %v2043_v8 = vld [vmem:[%s8711_s12 + $0x18] sm:$0xff]  ;;  %v2042_v9 = vld [vmem:[%s8711_s12 + $0x10] sm:$0xff] }
 0xb75   :  { %6887 = vmatpush3.msra.mxu0 %v2051_v32 }
 0xb76   :  { %6888 = vmatprep.subr.mxu0 %v2050_v33 }
 0xb77   :  { %6889 = vmatpush3.msra.mxu0 %v2050_v33 }
 0xb78   :  { %6890 = vmatprep.subr.mxu0 %v2049_v11 }
 0xb79   :  { %v7310_v41 = vpop.eup %7309  ;;  %6891 = vmatpush3.msra.mxu0 %v2049_v11 }
 0xb7a   :  { %v1637_v42 = vmul.f32 %v7310_v41, %v7306_v30  ;;  %v2047_v30 = vld [vmem:[%s8711_s12 + $0x38] sm:$0xff]  ;;  %6892 = vmatprep.subr.mxu0 %v2048_v34 }
 0xb7b   :  { %6893 = vmatpush3.msra.mxu0 %v2048_v34  ;;  %v7970_v34 = vld [vmem:[%s8705_s8 + $0x1] ss:$0 sm:$0xff] }
 0xb7c   :  { %6854 = vmatmul.mubr.msk.f32.vlgmr.msra.gmra.mxu1 %vm459_vm4, %v1637_v42  ;;  %6894 = vmatprep.subr.mxu0 %v2047_v30 }
 0xb7d   :  { %6857 = vmatpush3.msra.mxu1 %v1825_v10  ;;  %6895 = vmatpush3.msra.mxu0 %v2047_v30 }
 0xb7e   :  { %6858 = vmatprep.subr.mxu1 %v1824_v43  ;;  %6896 = vmatprep.subr.mxu0 %v2046_v35 }
 0xb7f   :  { %6859 = vmatpush3.msra.mxu1 %v1824_v43  ;;  %6897 = vmatpush3.msra.mxu0 %v2046_v35 }
 0xb80   :  { %6860 = vmatprep.subr.mxu1 %v1823_v44  ;;  %6898 = vmatprep.subr.mxu0 %v2045_v36 }
 0xb81   :  { %6861 = vmatpush3.msra.mxu1 %v1823_v44  ;;  %6899 = vmatpush3.msra.mxu0 %v2045_v36 }
 0xb82   :  { %6862 = vmatprep.subr.mxu1 %v1822_v45  ;;  %6900 = vmatprep.subr.mxu0 %v2044_v37 }
 0xb83   :  { %6863 = vmatpush3.msra.mxu1 %v1822_v45  ;;  %6901 = vmatpush3.msra.mxu0 %v2044_v37  ;;  %v7976_v37 = vld [vmem:[%s8706_s9 + $0x1] ss:$0 sm:$0xff] }
 0xb84   :  { %6867 = vmatprep.subr.mxu1 %v1949_v23  ;;  %6902 = vmatprep.subr.mxu0 %v2043_v8 }
 0xb85   :  { %6903 = vmatpush3.msra.mxu0 %v2043_v8 }
 0xb86   :  { %6904 = vmatprep.subr.mxu0 %v2042_v9 }
 0xb87   :  { %6905 = vmatpush3.msra.mxu0 %v2042_v9 }
 0xc2c   :  { %v1710_v46 = vpop.f32.mrf.mxu0 }
 0xc2d   :  { %1808 = vrot.lane.b32.xlu0 %v1710_v46, %s7408_s22 }
 0xc2e   :  { %v6850_v47 = vpop.f32.mrf.mxu0 }
 0xc3c   :  { %v1786_v48 = vpop.f32.mrf.mxu1 }
 0xc3d   :  { %1810 = vrot.lane.b32.xlu1 %v1786_v48, %s7408_s22 }
 0xc3e   :  { %v6855_v49 = vpop.f32.mrf.mxu1 }
 0xc9f   :  { %v1809_v51 = vpop.permute.xlu0 %1808 }
 0xca0   :  { %v1820_v52 = vsel %vm1819_vm6, %v1817_v6, %v1809_v51  ;;  %v6275_v6 = vld [vmem:[%s8712_s11] ss:$0 sm:$0xff] }
 0xca1   :  { %6864 = vmatprep.mubr.msk.f32.mxu1 %vm172_vm2, %v1820_v52 }
 0xcaf   :  { %v1811_v61 = vpop.permute.xlu1 %1810 }
 0xcb0   :  { %v1821_v7 = vsel %vm1819_vm6, %v1818_v59, %v1811_v61 }
 0xcb1   :  { %6865 = vmatmul.mubr.msk.f32.vlgmr.msra.gmra.mxu1 %vm172_vm2, %v1821_v7  ;;  %v6278_v7 = vld [vmem:[%s8713_s13] ss:$0 sm:$0xff] }
 0xcb2   :  { %6868 = vmatpush3.msra.mxu1 %v1949_v23  ;;  %v6284_v23 = vld [vmem:[%s8703_s4 + $0x28] sm:$0xff] }
 0xcb3   :  { %6869 = vmatprep.subr.mxu1 %v1948_v19 }
 0xcb4   :  { %6870 = vmatpush3.msra.mxu1 %v1948_v19  ;;  %v6283_v19 = vld [vmem:[%s8703_s4 + $0x20] sm:$0xff] }
 0xcb5   :  { %6871 = vmatprep.subr.mxu1 %v1947_v20 }
 0xcb6   :  { %6872 = vmatpush3.msra.mxu1 %v1947_v20  ;;  %v6292_v20 = vld [vmem:[%s8704_s3 + $0x38] sm:$0xff] }
 0xcb7   :  { %6873 = vmatprep.subr.mxu1 %v1946_v24 }
 0xcb8   :  { %6874 = vmatpush3.msra.mxu1 %v1946_v24 }
 0xd71   :  { %v6866_v62 = vpop.f32.mrf.mxu1 }
 0xd72   :  { %v1911_v63 = vadd.f32 %v6866_v62, %v6272_v57 }
 0xd73   :  { %v1905_v0 = vpop.f32.mrf.mxu1 }
 0xd74   :  { %v7840_v1 = vadd.f32 %v1911_v63, %v7568_v28  ;;  %v1906_v2 = vadd.f32 %v6272_v57, %v1905_v0 }
 0xd76   :  { %v7843_v60 = vadd.f32 %v1906_v2, %v7566_v27  ;;  %v1919_v3 = vsel %vm172_vm2, %v7840_v1, 0.0 }
 0xd77   :  { %1920 = vadd.xlane.f32.xlu1 %v1919_v3 }
 0xd78   :  { %v1916_v4 = vsel %vm172_vm2, %v7843_v60, 0.0 }
 0xd79   :  { %1917 = vadd.xlane.f32.xlu0 %v1916_v4 }
 0xe00   :  { %v1921_v12 = vpop.xlane.xlu1 %1920 }
 0xe01   :  { %v1923_v14 = vmul.f32 0.03125, %v1921_v12 }
 0xe02   :  { %v1918_v15 = vpop.xlane.xlu0 %1917 }
 0xe03   :  { %v1922_v16 = vmul.f32 0.03125, %v1918_v15  ;;  %v7850_v17 = vsub.f32 %v7840_v1, %v1923_v14 }
 0xe05   :  { %v7853_v28 = vsub.f32 %v7843_v60, %v1922_v16  ;;  %v1927_v21 = vmul.f32 %v7850_v17, %v7850_v17 }
 0xe07   :  { %v1926_v27 = vmul.f32 %v7853_v28, %v7853_v28  ;;  %v1931_v22 = vsel %vm172_vm2, %v1927_v21, 0.0  ;;  %v6286_v21 = vld [vmem:[%s8703_s4 + $0x38] sm:$0xff] }
 0xe08   :  { %6913 = vmatprep.subr.mxu1 %v6286_v21 }
 0xe09   :  { %v1928_v18 = vsel %vm172_vm2, %v1926_v27, 0.0 }
 0xe0a   :  { %1929 = vadd.xlane.f32.xlu0 %v1928_v18 }
 0xe0e   :  { %1932 = vadd.xlane.f32.xlu0 %v1931_v22  ;;  %v6285_v22 = vld [vmem:[%s8703_s4 + $0x30] sm:$0xff] }
 0xe93   :  { %v1930_v38 = vpop.xlane.xlu0 %1929 }
 0xe94   :  { %v1934_v39 = vmul.f32 0.03125, %v1930_v38 }
 0xe96   :  { %v1936_v40 = vadd.f32 1e-05, %v1934_v39 }
 0xe97   :  { %v1933_v41 = vpop.xlane.xlu0 %1932 }
 0xe98   :  { %7311 = vrsqrt.f32 %v1936_v40  ;;  %v1935_v42 = vmul.f32 0.03125, %v1933_v41  ;;  %v6291_v41 = vld [vmem:[%s8704_s3 + $0x30] sm:$0xff] }
 0xe9a   :  { %v1937_v10 = vadd.f32 1e-05, %v1935_v42  ;;  %v6290_v42 = vld [vmem:[%s8704_s3 + $0x28] sm:$0xff] }
 0xe9c   :  { %7313 = vrsqrt.f32 %v1937_v10  ;;  %v6289_v10 = vld [vmem:[%s8704_s3 + $0x20] sm:$0xff] }
 0xea5   :  { %v7312_v43 = vpop.eup %7311 }
 0xea6   :  { %v1940_v44 = vmul.f32 %v7312_v43, %v7853_v28  ;;  %v6298_v43 = vld [vmem:[%s8707_s5 + $0x38] sm:$0xff] }
 0xea8   :  { %v1942_v45 = vmul.f32 %v7596_v53, %v1940_v44  ;;  %v6297_v44 = vld [vmem:[%s8707_s5 + $0x30] sm:$0xff] }
 0xea9   :  { %v7314_v46 = vpop.eup %7313 }
 0xeaa   :  { %v1944_v47 = vadd.f32 %v7601_v55, %v1942_v45  ;;  %v1941_v48 = vmul.f32 %v7314_v46, %v7850_v17  ;;  %v6296_v45 = vld [vmem:[%s8707_s5 + $0x28] sm:$0xff]  ;;  %v6295_v46 = vld [vmem:[%s8707_s5 + $0x20] sm:$0xff] }
 0xeac   :  { %6875 = vmatprep.mubr.msk.f32.mxu1 %vm172_vm2, %v1944_v47  ;;  %v1943_v49 = vmul.f32 %v7596_v53, %v1941_v48  ;;  %v2041_v53 = vld [vmem:[%s8711_s12 + $0x8] sm:$0xff] }
 0xead   :  { %6906 = vmatprep.subr.mxu0 %v2041_v53 }
 0xeae   :  { %v1945_v50 = vadd.f32 %v7601_v55, %v1943_v49  ;;  %v2040_v55 = vld [vmem:[%s8711_s12] sm:$0xff]  ;;  %6907 = vmatpush3.msra.mxu0 %v2041_v53 }
 0xeaf   :  { %6908 = vmatprep.subr.mxu0 %v2040_v55 }
 0xeb0   :  { %6876 = vmatmul.mubr.msk.f32.vlgmr.msra.gmra.mxu1 %vm172_vm2, %v1945_v50  ;;  %6909 = vmatpush3.msra.mxu0 %v2040_v55 }
 0xeb1   :  { %6956 = vmatprep.subr.mxu0 %v7401_v5  ;;  %6914 = vmatpush3.msra.mxu1 %v6286_v21 }
 0xeb2   :  { %6915 = vmatprep.subr.mxu1 %v6285_v22 }
 0xeb3   :  { %6916 = vmatpush3.msra.mxu1 %v6285_v22 }
 0xeb4   :  { %6917 = vmatprep.subr.mxu1 %v6284_v23 }
 0xeb5   :  { %6918 = vmatpush3.msra.mxu1 %v6284_v23 }
 0xeb6   :  { %6919 = vmatprep.subr.mxu1 %v6283_v19 }
 0xeb7   :  { %6920 = vmatpush3.msra.mxu1 %v6283_v19 }
 0xeb8   :  { %6924 = vmatprep.subr.mxu1 %v6292_v20 }
 0xf70   :  { %v6877_v51 = vpop.f32.mrf.mxu1 }
 0xf71   :  { %v2035_v52 = vadd.f32 %v6877_v51, %v6275_v6 }
 0xf72   :  { %v2029_v54 = vpop.f32.mrf.mxu1 }
 0xf73   :  { %v2030_v56 = vadd.f32 %v6275_v6, %v2029_v54  ;;  %v2039_v59 = vmax.f32 %v2035_v52, 0.0 }
 0xf75   :  { %v2038_v58 = vmax.f32 %v2030_v56, 0.0 }
 0xf77   :  { %6910 = vmatprep.mubr.f32.mxu0 %v2038_v58 }
 0xf78   :  { %6911 = vmatmul.mubr.f32.vlgmr.msra.gmra.mxu0 %v2039_v59 }
 0xf79   :  { %6958 = vmatprep.mubr.msk.f32.mxu0 %vm7402_vm3, %v7401_v5 }
0x1038   :  { %v6912_v61 = vpop.f32.mrf.mxu0 }
0x1039   :  { %v2132_v57 = vadd.f32 %v6912_v61, %v7840_v1 }
0x103a   :  { %v2122_v62 = vpop.f32.mrf.mxu0 }
0x103b   :  { %v7939_v63 = vadd.f32 %v6278_v7, %v2132_v57  ;;  %v2131_v0 = vadd.f32 %v2122_v62, %v7843_v60 }
0x103d   :  { %v7942_v2 = vadd.f32 %v6278_v7, %v2131_v0  ;;  %v2149_v3 = vsel %vm172_vm2, %v7939_v63, 0.0 }
0x103e   :  { %2150 = vadd.xlane.f32.xlu0 %v2149_v3 }
0x103f   :  { %v2146_v4 = vsel %vm172_vm2, %v7942_v2, 0.0 }
0x1040   :  { %2147 = vadd.xlane.f32.xlu1 %v2146_v4 }
0x10c7   :  { %v2151_v12 = vpop.xlane.xlu0 %2150 }
0x10c8   :  { %v2153_v14 = vmul.f32 0.03125, %v2151_v12 }
0x10c9   :  { %v2148_v15 = vpop.xlane.xlu1 %2147 }
0x10ca   :  { %v2155_v1 = vsub.f32 %v7939_v63, %v2153_v14  ;;  %v2152_v16 = vmul.f32 0.03125, %v2148_v15 }
0x10cc   :  { %v2154_v17 = vsub.f32 %v7942_v2, %v2152_v16  ;;  %v2157_v28 = vmul.f32 %v2155_v1, %v2155_v1 }
0x10ce   :  { %v2161_v60 = vsel %vm172_vm2, %v2157_v28, 0.0  ;;  %v2156_v27 = vmul.f32 %v2154_v17, %v2154_v17 }
0x10cf   :  { %2162 = vadd.xlane.f32.xlu0 %v2161_v60 }
0x10d0   :  { %v2158_v18 = vsel %vm172_vm2, %v2156_v27, 0.0 }
0x10d1   :  { %2159 = vadd.xlane.f32.xlu1 %v2158_v18 }
0x1158   :  { %v2163_v24 = vpop.xlane.xlu0 %2162 }
0x1159   :  { %v2165_v25 = vmul.f32 0.03125, %v2163_v24 }
0x115a   :  { %v2160_v26 = vpop.xlane.xlu1 %2159 }
0x115b   :  { %v2167_v29 = vadd.f32 1e-05, %v2165_v25  ;;  %v2164_v31 = vmul.f32 0.03125, %v2160_v26 }
0x115d   :  { %7315 = vrsqrt.f32 %v2167_v29  ;;  %v2166_v32 = vadd.f32 1e-05, %v2164_v31 }
0x115f   :  { %7317 = vrsqrt.f32 %v2166_v32 }
0x116a   :  { %v7316_v33 = vpop.eup %7315 }
0x116b   :  { %v2171_v11 = vmul.f32 %v7316_v33, %v2155_v1 }
0x116c   :  { %v7318_v30 = vpop.eup %7317 }
0x116d   :  { %v2170_v35 = vmul.f32 %v7318_v30, %v2154_v17  ;;  %v2179_v36 = vmul.f32 %v7970_v34, %v2171_v11 }
0x116f   :  { %v2178_v38 = vmul.f32 %v7970_v34, %v2170_v35  ;;  %v2187_v40 = vadd.f32 %v7976_v37, %v2179_v36 }
0x1171   :  { %v2186_v39 = vadd.f32 %v7976_v37, %v2178_v38 }
0x1173   :  { %6921 = vmatprep.mubr.msk.f32.mxu1 %vm172_vm2, %v2186_v39 }
0x1174   :  { %6922 = vmatmul.mubr.msk.f32.vlgmr.msra.gmra.mxu1 %vm172_vm2, %v2187_v40 }
0x1175   :  { %6925 = vmatpush3.msra.mxu1 %v6292_v20  ;;  %6932 = vmatprep.mubr.msk.f32.mxu1 %vm172_vm2, %v2186_v39 }
0x1176   :  { %6926 = vmatprep.subr.mxu1 %v6291_v41 }
0x1177   :  { %6927 = vmatpush3.msra.mxu1 %v6291_v41 }
0x1178   :  { %6928 = vmatprep.subr.mxu1 %v6290_v42 }
0x1179   :  { %6929 = vmatpush3.msra.mxu1 %v6290_v42 }
0x117a   :  { %6930 = vmatprep.subr.mxu1 %v6289_v10 }
0x117b   :  { %6931 = vmatpush3.msra.mxu1 %v6289_v10 }
0x117c   :  { %6933 = vmatmul.mubr.msk.f32.vlgmr.msra.gmra.mxu1 %vm172_vm2, %v2187_v40  ;;  %6935 = vmatprep.subr.mxu1 %v6298_v43 }
0x117d   :  { %6936 = vmatpush3.msra.mxu1 %v6298_v43  ;;  %6943 = vmatprep.mubr.msk.f32.mxu1 %vm172_vm2, %v2186_v39 }
0x117e   :  { %6937 = vmatprep.subr.mxu1 %v6297_v44 }
0x117f   :  { %6938 = vmatpush3.msra.mxu1 %v6297_v44 }
0x1180   :  { %6939 = vmatprep.subr.mxu1 %v6296_v45 }
0x1181   :  { %6940 = vmatpush3.msra.mxu1 %v6296_v45 }
0x1182   :  { %6941 = vmatprep.subr.mxu1 %v6295_v46 }
0x1183   :  { %6942 = vmatpush3.msra.mxu1 %v6295_v46 }
0x1184   :  { %6944 = vmatmul.mubr.msk.f32.vlgmr.msra.gmra.mxu1 %vm172_vm2, %v2187_v40  ;;  %6946 = vmatprep.subr.mxu1 %v7401_v5 }
0x1185   :  { %6948 = vmatprep.mubr.msk.f32.mxu1 %vm7402_vm3, %v7401_v5 }
0x1234   :  { %v8011_v47 = vpop.f32.mrf.mxu1 }
0x1236   :  { %v8013_v48 = vpop.f32.mrf.mxu1 }
0x123c   :  { %v8015_v49 = vpop.f32.mrf.mxu1 }
0x123e   :  { %v8017_v50 = vpop.f32.mrf.mxu1 }
0x123f   :  { %6947 = vmatpush3.xpose.msk.msra.mxu1 %vm459_vm4, %v8017_v50 }
0x1240   :  { %6951 = vmatprep.subr.mxu1 %v7401_v5 }
0x1242   :  { %6949 = vmatmul.mubr.msk.f32.vlgmr.msra.gmra.mxu1 %vm459_vm4, %v8013_v48 }
0x1243   :  { %6952 = vmatpush3.xpose.msk.msra.mxu1 %vm459_vm4, %v8015_v49  ;;  %6953 = vmatprep.mubr.msk.f32.mxu1 %vm7402_vm3, %v7401_v5 }
0x1244   :  { %v8028_v8 = vpop.f32.mrf.mxu1  ;;  %6961 = vmatprep.subr.mxu1 %v7401_v5 }
0x1246   :  { %v8031_v9 = vpop.f32.mrf.mxu1  ;;  %6954 = vmatmul.mubr.msk.f32.vlgmr.msra.gmra.mxu1 %vm459_vm4, %v8011_v47 }
0x1247   :  { %6957 = vmatpush3.msra.mxu0 %v8031_v9  ;;  %6962 = vmatpush3.msra.mxu1 %v8028_v8 }
0x1248   :  { %6966 = vmatprep.subr.mxu0 %v7401_v5  ;;  %6963 = vmatprep.mubr.msk.f32.mxu1 %vm7402_vm3, %v7401_v5 }
0x1249   :  { %6971 = vmatprep.subr.mxu1 %v7401_v5 }
0x1302   :  { %v2506_v53 = vpop.f32.mrf.mxu1 }
0x1303   :  { %v2586_v55 = vmul.f32 0.17677669, %v2506_v53 }
0x1304   :  { %v6950_v6 = vpop.f32.mrf.mxu1 }
0x1305   :  { %v2588_v51 = vsel %vm7672_vm5, %v2586_v55, -1e+30 }
0x1306   :  { %v2582_v52 = vpop.f32.mrf.mxu1  ;;  %v2590_v54 = vsel %vm459_vm4, %v2588_v51, -inf }
0x1307   :  { %v2587_v56 = vmul.f32 0.17677669, %v2582_v52  ;;  %2591 = vmax.xlane.f32.xlu1 %v2590_v54 }
0x1308   :  { %v6955_v58 = vpop.f32.mrf.mxu1 }
0x1309   :  { %v2589_v59 = vsel %vm7672_vm5, %v2587_v56, -1e+30 }
0x130a   :  { %v2593_v61 = vsel %vm459_vm4, %v2589_v59, -inf }
0x130b   :  { %2594 = vmax.xlane.f32.xlu0 %v2593_v61 }
0x1318   :  { %2760 = vrot.lane.b32.xlu1 %v8017_v50, %s7403_s19 }
0x1390   :  { %v2592_v7 = vpop.xlane.xlu1 %2591 }
0x1391   :  { %v2596_v57 = vsub.f32 %v2588_v51, %v2592_v7 }
0x1393   :  { %v2598_v62 = vmul.f32 1.442695, %v2596_v57 }
0x1394   :  { %v2595_v0 = vpop.xlane.xlu0 %2594  ;;  %v2761_v16 = vpop.permute.xlu1 %2760 }
0x1395   :  { %7319 = vpow2.f32 %v2598_v62  ;;  %v2597_v3 = vsub.f32 %v2589_v59, %v2595_v0 }
0x1397   :  { %v2600_v4 = vmul.f32 1.442695, %v2597_v3 }
0x1399   :  { %7321 = vpow2.f32 %v2600_v4 }
0x13a2   :  { %v7320_v12 = vpop.eup %7319 }
0x13a3   :  { %v2602_v14 = vsel %vm459_vm4, %v7320_v12, 0.0 }
0x13a4   :  { %2603 = vadd.xlane.f32.xlu1 %v2602_v14 }
0x13a6   :  { %v7322_v15 = vpop.eup %7321 }
0x13a7   :  { %v2605_v1 = vsel %vm459_vm4, %v7322_v15, 0.0 }
0x13a8   :  { %2606 = vadd.xlane.f32.xlu0 %v2605_v1 }
0x13b5   :  { %2758 = vrot.lane.b32.xlu1 %v8013_v48, %s7403_s19 }
0x13b9   :  { %2836 = vrot.lane.b32.xlu1 %v8011_v47, %s7403_s19 }
0x13be   :  { %2838 = vrot.lane.b32.xlu0 %v8015_v49, %s7403_s19 }
0x142d   :  { %v2604_v17 = vpop.xlane.xlu1 %2603 }
0x142e   :  { %7323 = vrcp.f32 %v2604_v17 }
0x1431   :  { %v2607_v28 = vpop.xlane.xlu0 %2606  ;;  %v2759_v21 = vpop.permute.xlu1 %2758 }
0x1432   :  { %7325 = vrcp.f32 %v2607_v28 }
0x1435   :  { %v2839_v23 = vpop.permute.xlu0 %2838  ;;  %v2837_v19 = vpop.permute.xlu1 %2836 }
0x143b   :  { %v7324_v60 = vpop.eup %7323 }
0x143c   :  { %v2609_v27 = vmul.f32 %v7324_v60, %v7320_v12 }
0x143e   :  { %6959 = vmatmul.mubr.msk.f32.vlgmr.msra.gmra.mxu0 %vm459_vm4, %v2609_v27 }
0x143f   :  { %v7326_v18 = vpop.eup %7325  ;;  %6967 = vmatpush3.xpose.msk.msra.mxu0 %vm459_vm4, %v2761_v16  ;;  %6968 = vmatprep.mubr.msk.f32.mxu0 %vm7402_vm3, %v7401_v5 }
0x1440   :  { %v2611_v22 = vmul.f32 %v7326_v18, %v7322_v15  ;;  %6976 = vmatprep.subr.mxu0 %v7401_v5 }
0x1442   :  { %6964 = vmatmul.mubr.msk.f32.vlgmr.msra.gmra.mxu1 %vm459_vm4, %v2611_v22  ;;  %6969 = vmatmul.mubr.msk.f32.vlgmr.msra.gmra.mxu0 %vm459_vm4, %v2759_v21 }
0x1443   :  { %6972 = vmatpush3.xpose.msk.msra.mxu1 %vm459_vm4, %v2839_v23  ;;  %6973 = vmatprep.mubr.msk.f32.mxu1 %vm7402_vm3, %v7401_v5 }
0x1444   :  { %6981 = vmatprep.subr.mxu1 %v7401_v5  ;;  %6978 = vmatprep.mubr.msk.f32.mxu0 %vm7402_vm3, %v7401_v5 }
0x1446   :  { %6974 = vmatmul.mubr.msk.f32.vlgmr.msra.gmra.mxu1 %vm459_vm4, %v2837_v19 }
0x1447   :  { %6983 = vmatprep.mubr.msk.f32.mxu1 %vm7402_vm3, %v7401_v5 }
0x14fe   :  { %v8073_v20 = vpop.f32.mrf.mxu0 }
0x1500   :  { %v6960_v24 = vpop.f32.mrf.mxu0 }
0x1502   :  { %v8075_v25 = vpop.f32.mrf.mxu1  ;;  %v2832_v26 = vpop.f32.mrf.mxu0 }
0x1503   :  { %v2914_v29 = vmul.f32 0.17677669, %v2832_v26 }
0x1504   :  { %v6965_v31 = vpop.f32.mrf.mxu1  ;;  %v6970_v32 = vpop.f32.mrf.mxu0 }
0x1505   :  { %v2916_v33 = vsel %vm7672_vm5, %v2914_v29, -1e+30 }
0x1506   :  { %v2910_v11 = vpop.f32.mrf.mxu1  ;;  %v2918_v30 = vsel %vm459_vm4, %v2916_v33, -inf }
0x1507   :  { %v2915_v35 = vmul.f32 0.17677669, %v2910_v11  ;;  %2919 = vmax.xlane.f32.xlu0 %v2918_v30 }
0x1508   :  { %v6975_v36 = vpop.f32.mrf.mxu1 }
0x1509   :  { %v2917_v38 = vsel %vm7672_vm5, %v2915_v35, -1e+30 }
0x150a   :  { %v2921_v39 = vsel %vm459_vm4, %v2917_v38, -inf }
0x150b   :  { %2922 = vmax.xlane.f32.xlu1 %v2921_v39 }
0x151c   :  { %2941 = vrot.lane.b32.xlu1 %v8031_v9, %s7403_s19 }
0x151d   :  { %3018 = vrot.lane.b32.xlu0 %v8028_v8, %s7403_s19 }
0x1520   :  { %3096 = vrot.lane.b32.xlu1 %v8017_v50, %s7404_s23 }
0x1524   :  { %3174 = vrot.lane.b32.xlu1 %v8015_v49, %s7404_s23 }
0x1528   :  { %3172 = vrot.lane.b32.xlu1 %v8011_v47, %s7404_s23 }
0x1590   :  { %v2920_v40 = vpop.xlane.xlu0 %2919 }
0x1591   :  { %v2924_v41 = vsub.f32 %v2916_v33, %v2920_v40 }
0x1593   :  { %v2926_v42 = vmul.f32 1.442695, %v2924_v41 }
0x1594   :  { %v3019_v10 = vpop.permute.xlu0 %3018  ;;  %v2923_v43 = vpop.xlane.xlu1 %2922 }
0x1595   :  { %7327 = vpow2.f32 %v2926_v42  ;;  %v2925_v44 = vsub.f32 %v2917_v38, %v2923_v43  ;;  %6982 = vmatpush3.msra.mxu1 %v3019_v10 }
0x1596   :  { %6991 = vmatprep.subr.mxu1 %v7401_v5 }
0x1597   :  { %v2928_v45 = vmul.f32 1.442695, %v2925_v44 }
0x1598   :  { %v2942_v46 = vpop.permute.xlu1 %2941 }
0x1599   :  { %7329 = vpow2.f32 %v2928_v45  ;;  %6977 = vmatpush3.msra.mxu0 %v2942_v46 }
0x159a   :  { %6986 = vmatprep.subr.mxu0 %v7401_v5 }
0x159c   :  { %v3097_v56 = vpop.permute.xlu1 %3096 }
0x15a0   :  { %v3175_v7 = vpop.permute.xlu1 %3174 }
0x15a2   :  { %v7328_v53 = vpop.eup %7327 }
0x15a3   :  { %v2930_v55 = vsel %vm459_vm4, %v7328_v53, 0.0 }
0x15a4   :  { %2931 = vadd.xlane.f32.xlu0 %v2930_v55  ;;  %v3173_v0 = vpop.permute.xlu1 %3172 }
0x15a6   :  { %v7330_v6 = vpop.eup %7329 }
0x15a7   :  { %v2933_v51 = vsel %vm459_vm4, %v7330_v6, 0.0 }
0x15a8   :  { %2934 = vadd.xlane.f32.xlu0 %v2933_v51 }
0x15be   :  { %3094 = vrot.lane.b32.xlu0 %v8013_v48, %s7404_s23 }
0x162d   :  { %v2932_v52 = vpop.xlane.xlu0 %2931 }
0x162e   :  { %7331 = vrcp.f32 %v2932_v52 }
0x1631   :  { %v2935_v54 = vpop.xlane.xlu0 %2934 }
0x1632   :  { %7333 = vrcp.f32 %v2935_v54 }
0x1635   :  { %v3095_v62 = vpop.permute.xlu0 %3094 }
0x163b   :  { %v7332_v58 = vpop.eup %7331 }
0x163c   :  { %v2937_v59 = vmul.f32 %v7332_v58, %v7328_v53 }
0x163e   :  { %6979 = vmatmul.mubr.msk.f32.vlgmr.msra.gmra.mxu0 %vm459_vm4, %v2937_v59 }
0x163f   :  { %v7334_v61 = vpop.eup %7333  ;;  %6987 = vmatpush3.xpose.msk.msra.mxu0 %vm459_vm4, %v3097_v56  ;;  %6988 = vmatprep.mubr.msk.f32.mxu0 %vm7402_vm3, %v7401_v5 }
0x1640   :  { %v2939_v57 = vmul.f32 %v7334_v61, %v7330_v6  ;;  %6996 = vmatprep.subr.mxu0 %v7401_v5 }
0x1642   :  { %6984 = vmatmul.mubr.msk.f32.vlgmr.msra.gmra.mxu1 %vm459_vm4, %v2939_v57  ;;  %6989 = vmatmul.mubr.msk.f32.vlgmr.msra.gmra.mxu0 %vm459_vm4, %v3095_v62 }
0x1643   :  { %6992 = vmatpush3.xpose.msk.msra.mxu1 %vm459_vm4, %v3175_v7  ;;  %6993 = vmatprep.mubr.msk.f32.mxu1 %vm7402_vm3, %v7401_v5 }
0x1644   :  { %7001 = vmatprep.subr.mxu1 %v7401_v5  ;;  %6998 = vmatprep.mubr.msk.f32.mxu0 %vm7402_vm3, %v7401_v5 }
0x1646   :  { %6994 = vmatmul.mubr.msk.f32.vlgmr.msra.gmra.mxu1 %vm459_vm4, %v3173_v0 }
0x1647   :  { %7003 = vmatprep.mubr.msk.f32.mxu1 %vm7402_vm3, %v7401_v5 }
0x16fe   :  { %v8115_v3 = vpop.f32.mrf.mxu0 }
0x1700   :  { %v6980_v4 = vpop.f32.mrf.mxu0 }
0x1702   :  { %v8117_v12 = vpop.f32.mrf.mxu1  ;;  %v3168_v14 = vpop.f32.mrf.mxu0 }
0x1703   :  { %v3250_v15 = vmul.f32 0.17677669, %v3168_v14 }
0x1704   :  { %v6985_v1 = vpop.f32.mrf.mxu1  ;;  %v6990_v16 = vpop.f32.mrf.mxu0 }
0x1705   :  { %v3252_v17 = vsel %vm7672_vm5, %v3250_v15, -1e+30 }
0x1706   :  { %v3246_v28 = vpop.f32.mrf.mxu1  ;;  %v3254_v60 = vsel %vm459_vm4, %v3252_v17, -inf }
0x1707   :  { %v3251_v27 = vmul.f32 0.17677669, %v3246_v28  ;;  %3255 = vmax.xlane.f32.xlu0 %v3254_v60 }
0x1708   :  { %v6995_v18 = vpop.f32.mrf.mxu1 }
0x1709   :  { %v3253_v21 = vsel %vm7672_vm5, %v3251_v27, -1e+30 }
0x170a   :  { %v3257_v22 = vsel %vm459_vm4, %v3253_v21, -inf }
0x170b   :  { %3258 = vmax.xlane.f32.xlu1 %v3257_v22  ;;  %v6327_v22 = vld [vmem:[%s8708_s6 + $0x30] sm:$0xff] }
0x171c   :  { %3276 = vrot.lane.b32.xlu1 %v8031_v9, %s7404_s23 }
0x171d   :  { %3352 = vrot.lane.b32.xlu0 %v8028_v8, %s7404_s23 }
0x1720   :  { %3430 = vrot.lane.b32.xlu1 %v8017_v50, %s7405_s24 }
0x1724   :  { %3508 = vrot.lane.b32.xlu1 %v8015_v49, %s7405_s24 }
0x1728   :  { %3506 = vrot.lane.b32.xlu1 %v8011_v47, %s7405_s24 }
0x1790   :  { %v3256_v23 = vpop.xlane.xlu0 %3255 }
0x1791   :  { %v3260_v19 = vsub.f32 %v3252_v17, %v3256_v23  ;;  %v6326_v23 = vld [vmem:[%s8708_s6 + $0x28] sm:$0xff] }
0x1793   :  { %v3262_v24 = vmul.f32 1.442695, %v3260_v19  ;;  %v6325_v19 = vld [vmem:[%s8708_s6 + $0x20] sm:$0xff] }
0x1794   :  { %v3353_v26 = vpop.permute.xlu0 %3352  ;;  %v3259_v29 = vpop.xlane.xlu1 %3258 }
0x1795   :  { %7335 = vpow2.f32 %v3262_v24  ;;  %v3261_v31 = vsub.f32 %v3253_v21, %v3259_v29  ;;  %7002 = vmatpush3.msra.mxu1 %v3353_v26 }
0x1796   :  { %7011 = vmatprep.subr.mxu1 %v7401_v5 }
0x1797   :  { %v3264_v32 = vmul.f32 1.442695, %v3261_v31 }
0x1798   :  { %v3277_v33 = vpop.permute.xlu1 %3276 }
0x1799   :  { %7337 = vpow2.f32 %v3264_v32  ;;  %6997 = vmatpush3.msra.mxu0 %v3277_v33 }
0x179a   :  { %7006 = vmatprep.subr.mxu0 %v7401_v5 }
0x179c   :  { %v3431_v36 = vpop.permute.xlu1 %3430 }
0x17a0   :  { %v3509_v41 = vpop.permute.xlu1 %3508 }
0x17a2   :  { %v7336_v49 = vpop.eup %7335 }
0x17a3   :  { %v3266_v50 = vsel %vm459_vm4, %v7336_v49, 0.0 }
0x17a4   :  { %3267 = vadd.xlane.f32.xlu0 %v3266_v50  ;;  %v3507_v10 = vpop.permute.xlu1 %3506 }
0x17a6   :  { %v7338_v47 = vpop.eup %7337 }
0x17a7   :  { %v3269_v11 = vsel %vm459_vm4, %v7338_v47, 0.0 }
0x17a8   :  { %3270 = vadd.xlane.f32.xlu0 %v3269_v11 }
0x17be   :  { %3428 = vrot.lane.b32.xlu0 %v8013_v48, %s7405_s24 }
0x182d   :  { %v3268_v30 = vpop.xlane.xlu0 %3267 }
0x182e   :  { %7339 = vrcp.f32 %v3268_v30 }
0x1831   :  { %v3271_v35 = vpop.xlane.xlu0 %3270 }
0x1832   :  { %7341 = vrcp.f32 %v3271_v35 }
0x1835   :  { %v3429_v48 = vpop.permute.xlu0 %3428 }
0x183b   :  { %v7340_v38 = vpop.eup %7339 }
0x183c   :  { %v3273_v39 = vmul.f32 %v7340_v38, %v7336_v49 }
0x183e   :  { %6999 = vmatmul.mubr.msk.f32.vlgmr.msra.gmra.mxu0 %vm459_vm4, %v3273_v39 }
0x183f   :  { %v7342_v40 = vpop.eup %7341  ;;  %7007 = vmatpush3.xpose.msk.msra.mxu0 %vm459_vm4, %v3431_v36  ;;  %7008 = vmatprep.mubr.msk.f32.mxu0 %vm7402_vm3, %v7401_v5 }
0x1840   :  { %v3275_v42 = vmul.f32 %v7342_v40, %v7338_v47  ;;  %7016 = vmatprep.subr.mxu0 %v7401_v5 }
0x1842   :  { %7004 = vmatmul.mubr.msk.f32.vlgmr.msra.gmra.mxu1 %vm459_vm4, %v3275_v42  ;;  %7009 = vmatmul.mubr.msk.f32.vlgmr.msra.gmra.mxu0 %vm459_vm4, %v3429_v48 }
0x1843   :  { %7012 = vmatpush3.xpose.msk.msra.mxu1 %vm459_vm4, %v3509_v41  ;;  %7013 = vmatprep.mubr.msk.f32.mxu1 %vm7402_vm3, %v7401_v5 }
0x1844   :  { %7021 = vmatprep.subr.mxu1 %v7401_v5  ;;  %7018 = vmatprep.mubr.msk.f32.mxu0 %vm7402_vm3, %v7401_v5 }
0x1846   :  { %7014 = vmatmul.mubr.msk.f32.vlgmr.msra.gmra.mxu1 %vm459_vm4, %v3507_v10 }
0x1847   :  { %7023 = vmatprep.mubr.msk.f32.mxu1 %vm7402_vm3, %v7401_v5 }
0x18fe   :  { %v3348_v43 = vpop.f32.mrf.mxu0 }
0x1900   :  { %v7000_v44 = vpop.f32.mrf.mxu0 }
0x1902   :  { %v3424_v45 = vpop.f32.mrf.mxu1  ;;  %v3502_v46 = vpop.f32.mrf.mxu0 }
0x1903   :  { %v3584_v53 = vmul.f32 0.17677669, %v3502_v46 }
0x1904   :  { %v7005_v55 = vpop.f32.mrf.mxu1  ;;  %v7010_v6 = vpop.f32.mrf.mxu0 }
0x1905   :  { %v3586_v51 = vsel %vm7672_vm5, %v3584_v53, -1e+30 }
0x1906   :  { %v3580_v52 = vpop.f32.mrf.mxu1  ;;  %v3588_v54 = vsel %vm459_vm4, %v3586_v51, -inf }
0x1907   :  { %v3585_v56 = vmul.f32 0.17677669, %v3580_v52  ;;  %3589 = vmax.xlane.f32.xlu0 %v3588_v54 }
0x1908   :  { %v7015_v58 = vpop.f32.mrf.mxu1 }
0x1909   :  { %v3587_v59 = vsel %vm7672_vm5, %v3585_v56, -1e+30  ;;  %v6336_v58 = vld [vmem:[%s8710_s10 + $0x38] sm:$0xff] }
0x190a   :  { %v3591_v61 = vsel %vm459_vm4, %v3587_v59, -inf }
0x190b   :  { %3592 = vmax.xlane.f32.xlu1 %v3591_v61  ;;  %v6334_v61 = vld [vmem:[%s8710_s10 + $0x28] sm:$0xff] }
0x191c   :  { %3610 = vrot.lane.b32.xlu1 %v8031_v9, %s7405_s24 }
0x1920   :  { %3764 = vrot.lane.b32.xlu1 %v8115_v3, %s7406_s25 }
0x1924   :  { %3766 = vrot.lane.b32.xlu1 %v8117_v12, %s7406_s25 }
0x1928   :  { %3774 = vrot.lane.b32.xlu1 %v3424_v45, %s7407_s26 }
0x1990   :  { %v3590_v7 = vpop.xlane.xlu0 %3589 }
0x1991   :  { %v3594_v57 = vsub.f32 %v3586_v51, %v3590_v7  ;;  %v6333_v7 = vld [vmem:[%s8710_s10 + $0x20] sm:$0xff] }
0x1993   :  { %v3596_v62 = vmul.f32 1.442695, %v3594_v57  ;;  %v6356_v57 = vld [vmem:[%s8711_s12 + $0xf8] sm:$0xff] }
0x1994   :  { %v3593_v0 = vpop.xlane.xlu1 %3592 }
0x1995   :  { %7343 = vpow2.f32 %v3596_v62  ;;  %v3595_v4 = vsub.f32 %v3587_v59, %v3593_v0  ;;  %v6335_v59 = vld [vmem:[%s8710_s10 + $0x30] sm:$0xff]  ;;  %v6354_v0 = vld [vmem:[%s8711_s12 + $0xe8] sm:$0xff] }
0x1996   :  { %v6355_v62 = vld [vmem:[%s8711_s12 + $0xf0] sm:$0xff] }
0x1997   :  { %v3598_v14 = vmul.f32 1.442695, %v3595_v4  ;;  %v6353_v4 = vld [vmem:[%s8711_s12 + $0xe0] sm:$0xff] }
0x1998   :  { %v3611_v15 = vpop.permute.xlu1 %3610 }
0x1999   :  { %7345 = vpow2.f32 %v3598_v14  ;;  %7017 = vmatpush3.msra.mxu0 %v3611_v15  ;;  %v6352_v14 = vld [vmem:[%s8711_s12 + $0xd8] sm:$0xff]  ;;  %v6351_v15 = vld [vmem:[%s8711_s12 + $0xd0] sm:$0xff] }
0x199c   :  { %v3765_v32 = vpop.permute.xlu1 %3764 }
0x199d   :  { %v3786_v50 = vsel %vm459_vm4, %v8073_v20, %v3765_v32  ;;  %v6330_v20 = vld [vmem:[%s8709_s7 + $0x1] ss:$0 sm:$0xff] }
0x19a0   :  { %v3767_v33 = vpop.permute.xlu1 %3766 }
0x19a1   :  { %v3787_v36 = vsel %vm459_vm4, %v8075_v25, %v3767_v33  ;;  %v6344_v33 = vld [vmem:[%s8711_s12 + $0x98] sm:$0xff] }
0x19a2   :  { %v7344_v1 = vpop.eup %7343 }
0x19a3   :  { %v3600_v9 = vsel %vm459_vm4, %v7344_v1, 0.0 }
0x19a4   :  { %3601 = vadd.xlane.f32.xlu0 %v3600_v9  ;;  %v3775_v47 = vpop.permute.xlu1 %3774  ;;  %v6349_v9 = vld [vmem:[%s8711_s12 + $0xc0] sm:$0xff] }
0x19a5   :  { %v3789_v38 = vsel %vm1816_vm7, %v3787_v36, %v3775_v47 }
0x19a6   :  { %v7346_v3 = vpop.eup %7345 }
0x19a7   :  { %v3603_v16 = vsel %vm459_vm4, %v7346_v3, 0.0 }
0x19a8   :  { %3604 = vadd.xlane.f32.xlu0 %v3603_v16  ;;  %v6347_v16 = vld [vmem:[%s8711_s12 + $0xb0] sm:$0xff] }
0x19be   :  { %3686 = vrot.lane.b32.xlu0 %v8028_v8, %s7405_s24  ;;  %v6328_v8 = vld [vmem:[%s8708_s6 + $0x38] sm:$0xff] }
0x19bf   :  { %7026 = vmatprep.subr.mxu0 %v6328_v8 }
0x19c2   :  { %3772 = vrot.lane.b32.xlu0 %v3348_v43, %s7407_s26 }
0x1a2d   :  { %v3602_v12 = vpop.xlane.xlu0 %3601 }
0x1a2e   :  { %7347 = vrcp.f32 %v3602_v12  ;;  %v6346_v12 = vld [vmem:[%s8711_s12 + $0xa8] sm:$0xff] }
0x1a31   :  { %v3605_v17 = vpop.xlane.xlu0 %3604 }
0x1a32   :  { %7349 = vrcp.f32 %v3605_v17  ;;  %v6345_v17 = vld [vmem:[%s8711_s12 + $0xa0] sm:$0xff] }
0x1a35   :  { %v3687_v28 = vpop.permute.xlu0 %3686 }
0x1a36   :  { %7022 = vmatpush3.msra.mxu1 %v3687_v28 }
0x1a37   :  { %7037 = vmatprep.subr.mxu1 %v6336_v58 }
0x1a39   :  { %v3773_v49 = vpop.permute.xlu0 %3772 }
0x1a3a   :  { %v3788_v11 = vsel %vm1816_vm7, %v3786_v50, %v3773_v49  ;;  %v6343_v49 = vld [vmem:[%s8711_s12 + $0x90] sm:$0xff]  ;;  %v6338_v50 = vld [vmem:[%s8712_s11 + $0x1] ss:$0 sm:$0xff] }
0x1a3b   :  { %v7348_v60 = vpop.eup %7347 }
0x1a3c   :  { %v3607_v27 = vmul.f32 %v7348_v60, %v7344_v1  ;;  %v6350_v1 = vld [vmem:[%s8711_s12 + $0xc8] sm:$0xff] }
0x1a3e   :  { %7019 = vmatmul.mubr.msk.f32.vlgmr.msra.gmra.mxu0 %vm459_vm4, %v3607_v27 }
0x1a3f   :  { %v7350_v18 = vpop.eup %7349  ;;  %7027 = vmatpush3.msra.mxu0 %v6328_v8 }
0x1a40   :  { %v3609_v21 = vmul.f32 %v7350_v18, %v7346_v3  ;;  %7028 = vmatprep.subr.mxu0 %v6327_v22  ;;  %v6348_v3 = vld [vmem:[%s8711_s12 + $0xb8] sm:$0xff] }
0x1a41   :  { %7029 = vmatpush3.msra.mxu0 %v6327_v22 }
0x1a42   :  { %7024 = vmatmul.mubr.msk.f32.vlgmr.msra.gmra.mxu1 %vm459_vm4, %v3609_v21  ;;  %7030 = vmatprep.subr.mxu0 %v6326_v23 }
0x1a43   :  { %7031 = vmatpush3.msra.mxu0 %v6326_v23  ;;  %7038 = vmatpush3.msra.mxu1 %v6336_v58  ;;  %v6364_v58 = vld [vmem:[%s8703_s4 + $0x48] sm:$0xff] }
0x1a44   :  { %7032 = vmatprep.subr.mxu0 %v6325_v19  ;;  %7039 = vmatprep.subr.mxu1 %v6335_v59 }
0x1a45   :  { %7033 = vmatpush3.msra.mxu0 %v6325_v19  ;;  %7040 = vmatpush3.msra.mxu1 %v6335_v59  ;;  %v6363_v59 = vld [vmem:[%s8703_s4 + $0x40] sm:$0xff] }
0x1a46   :  { %7041 = vmatprep.subr.mxu1 %v6334_v61  ;;  %7048 = vmatprep.subr.mxu0 %v6356_v57 }
0x1a47   :  { %7042 = vmatpush3.msra.mxu1 %v6334_v61  ;;  %v6372_v61 = vld [vmem:[%s8704_s3 + $0x58] sm:$0xff] }
0x1a48   :  { %7043 = vmatprep.subr.mxu1 %v6333_v7 }
0x1a49   :  { %7044 = vmatpush3.msra.mxu1 %v6333_v7 }
0x1afe   :  { %v3682_v24 = vpop.f32.mrf.mxu0 }
0x1aff   :  { %3780 = vrot.lane.b32.xlu0 %v3682_v24, %s7408_s22 }
0x1b00   :  { %v7020_v26 = vpop.f32.mrf.mxu0 }
0x1b02   :  { %v3758_v29 = vpop.f32.mrf.mxu1 }
0x1b03   :  { %3782 = vrot.lane.b32.xlu1 %v3758_v29, %s7408_s22 }
0x1b04   :  { %v7025_v31 = vpop.f32.mrf.mxu1 }
0x1b71   :  { %v3781_v30 = vpop.permute.xlu0 %3780 }
0x1b72   :  { %v3790_v35 = vsel %vm1819_vm6, %v3788_v11, %v3781_v30 }
0x1b73   :  { %7034 = vmatprep.mubr.msk.f32.mxu0 %vm172_vm2, %v3790_v35 }
0x1b75   :  { %v3783_v39 = vpop.permute.xlu1 %3782 }
0x1b76   :  { %v3791_v40 = vsel %vm1819_vm6, %v3789_v38, %v3783_v39 }
0x1b77   :  { %7035 = vmatmul.mubr.msk.f32.vlgmr.msra.gmra.mxu0 %vm172_vm2, %v3791_v40  ;;  %v6358_v40 = vld [vmem:[%s8713_s13 + $0x1] ss:$0 sm:$0xff] }
0x1b78   :  { %7049 = vmatpush3.msra.mxu0 %v6356_v57 }
0x1b79   :  { %7050 = vmatprep.subr.mxu0 %v6355_v62 }
0x1b7a   :  { %7051 = vmatpush3.msra.mxu0 %v6355_v62 }
0x1b7b   :  { %7052 = vmatprep.subr.mxu0 %v6354_v0 }
0x1b7c   :  { %7053 = vmatpush3.msra.mxu0 %v6354_v0 }
0x1b7d   :  { %7054 = vmatprep.subr.mxu0 %v6353_v4 }
0x1b7e   :  { %7055 = vmatpush3.msra.mxu0 %v6353_v4 }
0x1b7f   :  { %7056 = vmatprep.subr.mxu0 %v6352_v14 }
0x1b80   :  { %7057 = vmatpush3.msra.mxu0 %v6352_v14 }
0x1b81   :  { %7058 = vmatprep.subr.mxu0 %v6351_v15 }
0x1b82   :  { %7059 = vmatpush3.msra.mxu0 %v6351_v15 }
0x1b83   :  { %7060 = vmatprep.subr.mxu0 %v6350_v1 }
0x1b84   :  { %7061 = vmatpush3.msra.mxu0 %v6350_v1 }
0x1b85   :  { %7062 = vmatprep.subr.mxu0 %v6349_v9 }
0x1b86   :  { %7063 = vmatpush3.msra.mxu0 %v6349_v9  ;;  %v8335_v9 = vld [vmem:[%s8705_s8 + $0x2] ss:$0 sm:$0xff] }
0x1b87   :  { %7064 = vmatprep.subr.mxu0 %v6348_v3 }
0x1b88   :  { %7065 = vmatpush3.msra.mxu0 %v6348_v3 }
0x1b89   :  { %7066 = vmatprep.subr.mxu0 %v6347_v16 }
0x1b8a   :  { %7067 = vmatpush3.msra.mxu0 %v6347_v16 }
0x1b8b   :  { %7068 = vmatprep.subr.mxu0 %v6346_v12 }
0x1b8c   :  { %7069 = vmatpush3.msra.mxu0 %v6346_v12 }
0x1b8d   :  { %7070 = vmatprep.subr.mxu0 %v6345_v17 }
0x1b8e   :  { %7071 = vmatpush3.msra.mxu0 %v6345_v17  ;;  %v8341_v17 = vld [vmem:[%s8706_s9 + $0x2] ss:$0 sm:$0xff] }
0x1b8f   :  { %7072 = vmatprep.subr.mxu0 %v6344_v33 }
0x1b90   :  { %7073 = vmatpush3.msra.mxu0 %v6344_v33 }
0x1b91   :  { %7074 = vmatprep.subr.mxu0 %v6343_v49 }
0x1b92   :  { %7075 = vmatpush3.msra.mxu0 %v6343_v49 }
0x1c37   :  { %v7036_v41 = vpop.f32.mrf.mxu0 }
0x1c38   :  { %v3883_v42 = vadd.f32 %v7036_v41, %v6330_v20 }
0x1c39   :  { %v3877_v48 = vpop.f32.mrf.mxu0 }
0x1c3a   :  { %v8205_v10 = vadd.f32 %v3883_v42, %v7939_v63  ;;  %v3878_v43 = vadd.f32 %v6330_v20, %v3877_v48 }
0x1c3c   :  { %v8208_v25 = vadd.f32 %v3878_v43, %v7942_v2  ;;  %v3891_v44 = vsel %vm172_vm2, %v8205_v10, 0.0 }
0x1c3d   :  { %3892 = vadd.xlane.f32.xlu1 %v3891_v44 }
0x1c3e   :  { %v3888_v45 = vsel %vm172_vm2, %v8208_v25, 0.0 }
0x1c3f   :  { %3889 = vadd.xlane.f32.xlu0 %v3888_v45 }
0x1cc6   :  { %v3893_v46 = vpop.xlane.xlu1 %3892 }
0x1cc7   :  { %v3895_v53 = vmul.f32 0.03125, %v3893_v46 }
0x1cc8   :  { %v3890_v55 = vpop.xlane.xlu0 %3889 }
0x1cc9   :  { %v3894_v6 = vmul.f32 0.03125, %v3890_v55  ;;  %v8215_v51 = vsub.f32 %v8205_v10, %v3895_v53 }
0x1ccb   :  { %v8218_v63 = vsub.f32 %v8208_v25, %v3894_v6  ;;  %v3899_v54 = vmul.f32 %v8215_v51, %v8215_v51 }
0x1ccd   :  { %v3898_v2 = vmul.f32 %v8218_v63, %v8218_v63  ;;  %v3903_v56 = vsel %vm172_vm2, %v3899_v54, 0.0  ;;  %v6366_v54 = vld [vmem:[%s8703_s4 + $0x58] sm:$0xff] }
0x1cce   :  { %7083 = vmatprep.subr.mxu1 %v6366_v54 }
0x1ccf   :  { %v3900_v52 = vsel %vm172_vm2, %v3898_v2, 0.0 }
0x1cd0   :  { %3901 = vadd.xlane.f32.xlu0 %v3900_v52 }
0x1cd4   :  { %3904 = vadd.xlane.f32.xlu0 %v3903_v56  ;;  %v6365_v56 = vld [vmem:[%s8703_s4 + $0x50] sm:$0xff] }
0x1d59   :  { %v3902_v28 = vpop.xlane.xlu0 %3901 }
0x1d5a   :  { %v3906_v60 = vmul.f32 0.03125, %v3902_v28 }
0x1d5c   :  { %v3908_v27 = vadd.f32 1e-05, %v3906_v60 }
0x1d5d   :  { %v3905_v18 = vpop.xlane.xlu0 %3904 }
0x1d5e   :  { %7351 = vrsqrt.f32 %v3908_v27  ;;  %v3907_v21 = vmul.f32 0.03125, %v3905_v18  ;;  %v6371_v18 = vld [vmem:[%s8704_s3 + $0x50] sm:$0xff] }
0x1d60   :  { %v3909_v8 = vadd.f32 1e-05, %v3907_v21  ;;  %v6370_v21 = vld [vmem:[%s8704_s3 + $0x48] sm:$0xff] }
0x1d62   :  { %7353 = vrsqrt.f32 %v3909_v8  ;;  %v6369_v8 = vld [vmem:[%s8704_s3 + $0x40] sm:$0xff] }
0x1d6b   :  { %v7352_v22 = vpop.eup %7351 }
0x1d6c   :  { %v3912_v23 = vmul.f32 %v7352_v22, %v8218_v63  ;;  %v6378_v22 = vld [vmem:[%s8707_s5 + $0x58] sm:$0xff] }
0x1d6e   :  { %v3914_v19 = vmul.f32 %v7970_v34, %v3912_v23  ;;  %v6377_v23 = vld [vmem:[%s8707_s5 + $0x50] sm:$0xff] }
0x1d6f   :  { %v7354_v24 = vpop.eup %7353 }
0x1d70   :  { %v3913_v26 = vmul.f32 %v7354_v24, %v8215_v51  ;;  %v3916_v29 = vadd.f32 %v7976_v37, %v3914_v19  ;;  %v6376_v19 = vld [vmem:[%s8707_s5 + $0x48] sm:$0xff]  ;;  %v6375_v24 = vld [vmem:[%s8707_s5 + $0x40] sm:$0xff] }
0x1d72   :  { %7045 = vmatprep.mubr.msk.f32.mxu1 %vm172_vm2, %v3916_v29  ;;  %v3915_v31 = vmul.f32 %v7970_v34, %v3913_v26  ;;  %v6342_v34 = vld [vmem:[%s8711_s12 + $0x88] sm:$0xff] }
0x1d73   :  { %7076 = vmatprep.subr.mxu0 %v6342_v34 }
0x1d74   :  { %v3917_v32 = vadd.f32 %v7976_v37, %v3915_v31  ;;  %v6341_v37 = vld [vmem:[%s8711_s12 + $0x80] sm:$0xff]  ;;  %7077 = vmatpush3.msra.mxu0 %v6342_v34 }
0x1d75   :  { %7078 = vmatprep.subr.mxu0 %v6341_v37 }
0x1d76   :  { %7046 = vmatmul.mubr.msk.f32.vlgmr.msra.gmra.mxu1 %vm172_vm2, %v3917_v32  ;;  %7079 = vmatpush3.msra.mxu0 %v6341_v37 }
0x1d77   :  { %7126 = vmatprep.subr.mxu0 %v7401_v5  ;;  %7084 = vmatpush3.msra.mxu1 %v6366_v54 }
0x1d78   :  { %7085 = vmatprep.subr.mxu1 %v6365_v56 }
0x1d79   :  { %7086 = vmatpush3.msra.mxu1 %v6365_v56 }
0x1d7a   :  { %7087 = vmatprep.subr.mxu1 %v6364_v58 }
0x1d7b   :  { %7088 = vmatpush3.msra.mxu1 %v6364_v58 }
0x1d7c   :  { %7089 = vmatprep.subr.mxu1 %v6363_v59 }
0x1d7d   :  { %7090 = vmatpush3.msra.mxu1 %v6363_v59 }
0x1d7e   :  { %7094 = vmatprep.subr.mxu1 %v6372_v61 }
0x1e36   :  { %v7047_v47 = vpop.f32.mrf.mxu1 }
0x1e37   :  { %v4009_v11 = vadd.f32 %v7047_v47, %v6338_v50 }
0x1e38   :  { %v4003_v30 = vpop.f32.mrf.mxu1 }
0x1e39   :  { %v4004_v35 = vadd.f32 %v6338_v50, %v4003_v30  ;;  %v4013_v38 = vmax.f32 %v4009_v11, 0.0 }
0x1e3b   :  { %v4012_v36 = vmax.f32 %v4004_v35, 0.0 }
0x1e3d   :  { %7080 = vmatprep.mubr.f32.mxu0 %v4012_v36 }
0x1e3e   :  { %7081 = vmatmul.mubr.f32.vlgmr.msra.gmra.mxu0 %v4013_v38 }
0x1e3f   :  { %7128 = vmatprep.mubr.msk.f32.mxu0 %vm7402_vm3, %v7401_v5 }
0x1efe   :  { %v7082_v39 = vpop.f32.mrf.mxu0 }
0x1eff   :  { %v4107_v20 = vadd.f32 %v7082_v39, %v8205_v10 }
0x1f00   :  { %v4097_v41 = vpop.f32.mrf.mxu0 }
0x1f01   :  { %v8304_v42 = vadd.f32 %v6358_v40, %v4107_v20  ;;  %v4106_v48 = vadd.f32 %v4097_v41, %v8208_v25 }
0x1f03   :  { %v8307_v43 = vadd.f32 %v6358_v40, %v4106_v48  ;;  %v4125_v44 = vsel %vm172_vm2, %v8304_v42, 0.0 }
0x1f04   :  { %4126 = vadd.xlane.f32.xlu0 %v4125_v44 }
0x1f05   :  { %v4122_v45 = vsel %vm172_vm2, %v8307_v43, 0.0 }
0x1f06   :  { %4123 = vadd.xlane.f32.xlu1 %v4122_v45 }
0x1f8d   :  { %v4127_v46 = vpop.xlane.xlu0 %4126 }
0x1f8e   :  { %v4129_v53 = vmul.f32 0.03125, %v4127_v46 }
0x1f8f   :  { %v4124_v55 = vpop.xlane.xlu1 %4123 }
0x1f90   :  { %v4131_v10 = vsub.f32 %v8304_v42, %v4129_v53  ;;  %v4128_v6 = vmul.f32 0.03125, %v4124_v55 }
0x1f92   :  { %v4130_v51 = vsub.f32 %v8307_v43, %v4128_v6  ;;  %v4133_v63 = vmul.f32 %v4131_v10, %v4131_v10 }
0x1f94   :  { %v4137_v25 = vsel %vm172_vm2, %v4133_v63, 0.0  ;;  %v4132_v2 = vmul.f32 %v4130_v51, %v4130_v51 }
0x1f95   :  { %4138 = vadd.xlane.f32.xlu0 %v4137_v25 }
0x1f96   :  { %v4134_v52 = vsel %vm172_vm2, %v4132_v2, 0.0 }
0x1f97   :  { %4135 = vadd.xlane.f32.xlu1 %v4134_v52 }
0x201e   :  { %v4139_v7 = vpop.xlane.xlu0 %4138 }
0x201f   :  { %v4141_v57 = vmul.f32 0.03125, %v4139_v7 }
0x2020   :  { %v4136_v62 = vpop.xlane.xlu1 %4135 }
0x2021   :  { %v4143_v0 = vadd.f32 1e-05, %v4141_v57  ;;  %v4140_v4 = vmul.f32 0.03125, %v4136_v62 }
0x2023   :  { %7355 = vrsqrt.f32 %v4143_v0  ;;  %v4142_v14 = vadd.f32 1e-05, %v4140_v4 }
0x2025   :  { %7357 = vrsqrt.f32 %v4142_v14 }
0x2030   :  { %v7356_v15 = vpop.eup %7355 }
0x2031   :  { %v4147_v1 = vmul.f32 %v7356_v15, %v4131_v10 }
0x2032   :  { %v7358_v3 = vpop.eup %7357 }
0x2033   :  { %v4146_v16 = vmul.f32 %v7358_v3, %v4130_v51  ;;  %v4155_v12 = vmul.f32 %v8335_v9, %v4147_v1 }
0x2035   :  { %v4154_v28 = vmul.f32 %v8335_v9, %v4146_v16  ;;  %v4163_v27 = vadd.f32 %v8341_v17, %v4155_v12 }
0x2037   :  { %v4162_v60 = vadd.f32 %v8341_v17, %v4154_v28 }
0x2039   :  { %7091 = vmatprep.mubr.msk.f32.mxu1 %vm172_vm2, %v4162_v60 }
0x203a   :  { %7092 = vmatmul.mubr.msk.f32.vlgmr.msra.gmra.mxu1 %vm172_vm2, %v4163_v27 }
0x203b   :  { %7095 = vmatpush3.msra.mxu1 %v6372_v61  ;;  %7102 = vmatprep.mubr.msk.f32.mxu1 %vm172_vm2, %v4162_v60 }
0x203c   :  { %7096 = vmatprep.subr.mxu1 %v6371_v18 }
0x203d   :  { %7097 = vmatpush3.msra.mxu1 %v6371_v18 }
0x203e   :  { %7098 = vmatprep.subr.mxu1 %v6370_v21 }
0x203f   :  { %7099 = vmatpush3.msra.mxu1 %v6370_v21 }
0x2040   :  { %7100 = vmatprep.subr.mxu1 %v6369_v8 }
0x2041   :  { %7101 = vmatpush3.msra.mxu1 %v6369_v8 }
0x2042   :  { %7103 = vmatmul.mubr.msk.f32.vlgmr.msra.gmra.mxu1 %vm172_vm2, %v4163_v27  ;;  %7105 = vmatprep.subr.mxu1 %v6378_v22 }
0x2043   :  { %7106 = vmatpush3.msra.mxu1 %v6378_v22  ;;  %7113 = vmatprep.mubr.msk.f32.mxu1 %vm172_vm2, %v4162_v60 }
0x2044   :  { %7107 = vmatprep.subr.mxu1 %v6377_v23 }
0x2045   :  { %7108 = vmatpush3.msra.mxu1 %v6377_v23 }
0x2046   :  { %7109 = vmatprep.subr.mxu1 %v6376_v19 }
0x2047   :  { %7110 = vmatpush3.msra.mxu1 %v6376_v19 }
0x2048   :  { %7111 = vmatprep.subr.mxu1 %v6375_v24 }
0x2049   :  { %7112 = vmatpush3.msra.mxu1 %v6375_v24 }
0x204a   :  { %7114 = vmatmul.mubr.msk.f32.vlgmr.msra.gmra.mxu1 %vm172_vm2, %v4163_v27  ;;  %7116 = vmatprep.subr.mxu1 %v7401_v5 }
0x204b   :  { %7118 = vmatprep.mubr.msk.f32.mxu1 %vm7402_vm3, %v7401_v5 }
0x20fa   :  { %v8376_v26 = vpop.f32.mrf.mxu1 }
0x20fc   :  { %v8378_v29 = vpop.f32.mrf.mxu1 }
0x2102   :  { %v8380_v31 = vpop.f32.mrf.mxu1 }
0x2104   :  { %v8382_v32 = vpop.f32.mrf.mxu1 }
0x2105   :  { %7117 = vmatpush3.xpose.msk.msra.mxu1 %vm459_vm4, %v8382_v32 }
0x2106   :  { %7121 = vmatprep.subr.mxu1 %v7401_v5 }
0x2108   :  { %7119 = vmatmul.mubr.msk.f32.vlgmr.msra.gmra.mxu1 %vm459_vm4, %v8378_v29 }
0x2109   :  { %7122 = vmatpush3.xpose.msk.msra.mxu1 %vm459_vm4, %v8380_v31  ;;  %7123 = vmatprep.mubr.msk.f32.mxu1 %vm7402_vm3, %v7401_v5 }
0x210a   :  { %v8393_v33 = vpop.f32.mrf.mxu1  ;;  %7131 = vmatprep.subr.mxu1 %v7401_v5 }
0x210c   :  { %v8396_v49 = vpop.f32.mrf.mxu1  ;;  %7124 = vmatmul.mubr.msk.f32.vlgmr.msra.gmra.mxu1 %vm459_vm4, %v8376_v26 }
0x210d   :  { %7127 = vmatpush3.msra.mxu0 %v8396_v49  ;;  %7132 = vmatpush3.msra.mxu1 %v8393_v33 }
0x210e   :  { %7136 = vmatprep.subr.mxu0 %v7401_v5  ;;  %7133 = vmatprep.mubr.msk.f32.mxu1 %vm7402_vm3, %v7401_v5 }
0x210f   :  { %7141 = vmatprep.subr.mxu1 %v7401_v5 }
0x21c8   :  { %v4482_v34 = vpop.f32.mrf.mxu1 }
0x21c9   :  { %v4562_v37 = vmul.f32 0.17677669, %v4482_v34 }
0x21ca   :  { %v7120_v50 = vpop.f32.mrf.mxu1 }
0x21cb   :  { %v4564_v47 = vsel %vm7672_vm5, %v4562_v37, -1e+30 }
0x21cc   :  { %v4558_v11 = vpop.f32.mrf.mxu1  ;;  %v4566_v30 = vsel %vm459_vm4, %v4564_v47, -inf }
0x21cd   :  { %v4563_v35 = vmul.f32 0.17677669, %v4558_v11  ;;  %4567 = vmax.xlane.f32.xlu1 %v4566_v30 }
0x21ce   :  { %v7125_v36 = vpop.f32.mrf.mxu1 }
0x21cf   :  { %v4565_v38 = vsel %vm7672_vm5, %v4563_v35, -1e+30 }
0x21d0   :  { %v4569_v39 = vsel %vm459_vm4, %v4565_v38, -inf }
0x21d1   :  { %4570 = vmax.xlane.f32.xlu0 %v4569_v39 }
0x21de   :  { %4736 = vrot.lane.b32.xlu1 %v8382_v32, %s7403_s19 }
0x2256   :  { %v4568_v40 = vpop.xlane.xlu1 %4567 }
0x2257   :  { %v4572_v20 = vsub.f32 %v4564_v47, %v4568_v40 }
0x2259   :  { %v4574_v41 = vmul.f32 1.442695, %v4572_v20 }
0x225a   :  { %v4571_v48 = vpop.xlane.xlu0 %4570  ;;  %v4737_v6 = vpop.permute.xlu1 %4736 }
0x225b   :  { %7359 = vpow2.f32 %v4574_v41  ;;  %v4573_v44 = vsub.f32 %v4565_v38, %v4571_v48 }
0x225d   :  { %v4576_v45 = vmul.f32 1.442695, %v4573_v44 }
0x225f   :  { %7361 = vpow2.f32 %v4576_v45 }
0x2268   :  { %v7360_v46 = vpop.eup %7359 }
0x2269   :  { %v4578_v53 = vsel %vm459_vm4, %v7360_v46, 0.0 }
0x226a   :  { %4579 = vadd.xlane.f32.xlu1 %v4578_v53 }
0x226c   :  { %v7362_v55 = vpop.eup %7361 }
0x226d   :  { %v4581_v10 = vsel %vm459_vm4, %v7362_v55, 0.0 }
0x226e   :  { %4582 = vadd.xlane.f32.xlu0 %v4581_v10 }
0x227b   :  { %4734 = vrot.lane.b32.xlu1 %v8378_v29, %s7403_s19 }
0x227f   :  { %4812 = vrot.lane.b32.xlu1 %v8376_v26, %s7403_s19 }
0x2284   :  { %4814 = vrot.lane.b32.xlu0 %v8380_v31, %s7403_s19 }
0x22f3   :  { %v4580_v51 = vpop.xlane.xlu1 %4579 }
0x22f4   :  { %7363 = vrcp.f32 %v4580_v51 }
0x22f7   :  { %v4583_v63 = vpop.xlane.xlu0 %4582  ;;  %v4735_v54 = vpop.permute.xlu1 %4734 }
0x22f8   :  { %7365 = vrcp.f32 %v4583_v63 }
0x22fb   :  { %v4815_v58 = vpop.permute.xlu0 %4814  ;;  %v4813_v59 = vpop.permute.xlu1 %4812 }
0x2301   :  { %v7364_v25 = vpop.eup %7363 }
0x2302   :  { %v4585_v2 = vmul.f32 %v7364_v25, %v7360_v46 }
0x2304   :  { %7129 = vmatmul.mubr.msk.f32.vlgmr.msra.gmra.mxu0 %vm459_vm4, %v4585_v2 }
0x2305   :  { %v7366_v52 = vpop.eup %7365  ;;  %7137 = vmatpush3.xpose.msk.msra.mxu0 %vm459_vm4, %v4737_v6  ;;  %7138 = vmatprep.mubr.msk.f32.mxu0 %vm7402_vm3, %v7401_v5 }
0x2306   :  { %v4587_v56 = vmul.f32 %v7366_v52, %v7362_v55  ;;  %7146 = vmatprep.subr.mxu0 %v7401_v5 }
0x2308   :  { %7134 = vmatmul.mubr.msk.f32.vlgmr.msra.gmra.mxu1 %vm459_vm4, %v4587_v56  ;;  %7139 = vmatmul.mubr.msk.f32.vlgmr.msra.gmra.mxu0 %vm459_vm4, %v4735_v54 }
0x2309   :  { %7142 = vmatpush3.xpose.msk.msra.mxu1 %vm459_vm4, %v4815_v58  ;;  %7143 = vmatprep.mubr.msk.f32.mxu1 %vm7402_vm3, %v7401_v5 }
0x230a   :  { %7151 = vmatprep.subr.mxu1 %v7401_v5  ;;  %7148 = vmatprep.mubr.msk.f32.mxu0 %vm7402_vm3, %v7401_v5 }
0x230c   :  { %7144 = vmatmul.mubr.msk.f32.vlgmr.msra.gmra.mxu1 %vm459_vm4, %v4813_v59 }
0x230d   :  { %7153 = vmatprep.mubr.msk.f32.mxu1 %vm7402_vm3, %v7401_v5 }
0x23c4   :  { %v8438_v61 = vpop.f32.mrf.mxu0 }
0x23c6   :  { %v7130_v7 = vpop.f32.mrf.mxu0 }
0x23c8   :  { %v8440_v57 = vpop.f32.mrf.mxu1  ;;  %v4808_v62 = vpop.f32.mrf.mxu0 }
0x23c9   :  { %v4890_v0 = vmul.f32 0.17677669, %v4808_v62 }
0x23ca   :  { %v7135_v4 = vpop.f32.mrf.mxu1  ;;  %v7140_v14 = vpop.f32.mrf.mxu0 }
0x23cb   :  { %v4892_v15 = vsel %vm7672_vm5, %v4890_v0, -1e+30 }
0x23cc   :  { %v4886_v1 = vpop.f32.mrf.mxu1  ;;  %v4894_v3 = vsel %vm459_vm4, %v4892_v15, -inf }
0x23cd   :  { %v4891_v16 = vmul.f32 0.17677669, %v4886_v1  ;;  %4895 = vmax.xlane.f32.xlu0 %v4894_v3 }
0x23ce   :  { %v7145_v12 = vpop.f32.mrf.mxu1 }
0x23cf   :  { %v4893_v28 = vsel %vm7672_vm5, %v4891_v16, -1e+30 }
0x23d0   :  { %v4897_v60 = vsel %vm459_vm4, %v4893_v28, -inf }
0x23d1   :  { %4898 = vmax.xlane.f32.xlu1 %v4897_v60 }
0x23e2   :  { %4917 = vrot.lane.b32.xlu1 %v8396_v49, %s7403_s19 }
0x23e3   :  { %4994 = vrot.lane.b32.xlu0 %v8393_v33, %s7403_s19 }
0x23e6   :  { %5072 = vrot.lane.b32.xlu1 %v8382_v32, %s7404_s23 }
0x23ea   :  { %5150 = vrot.lane.b32.xlu1 %v8380_v31, %s7404_s23 }
0x23ee   :  { %5148 = vrot.lane.b32.xlu1 %v8376_v26, %s7404_s23 }
0x2456   :  { %v4896_v27 = vpop.xlane.xlu0 %4895 }
0x2457   :  { %v4900_v18 = vsub.f32 %v4892_v15, %v4896_v27 }
0x2459   :  { %v4902_v21 = vmul.f32 1.442695, %v4900_v18 }
0x245a   :  { %v4995_v8 = vpop.permute.xlu0 %4994  ;;  %v4899_v22 = vpop.xlane.xlu1 %4898 }
0x245b   :  { %7367 = vpow2.f32 %v4902_v21  ;;  %v4901_v23 = vsub.f32 %v4893_v28, %v4899_v22  ;;  %7152 = vmatpush3.msra.mxu1 %v4995_v8 }
0x245c   :  { %7161 = vmatprep.subr.mxu1 %v7401_v5 }
0x245d   :  { %v4904_v19 = vmul.f32 1.442695, %v4901_v23 }
0x245e   :  { %v4918_v24 = vpop.permute.xlu1 %4917 }
0x245f   :  { %7369 = vpow2.f32 %v4904_v19  ;;  %7147 = vmatpush3.msra.mxu0 %v4918_v24 }
0x2460   :  { %7156 = vmatprep.subr.mxu0 %v7401_v5 }
0x2462   :  { %v5073_v35 = vpop.permute.xlu1 %5072 }
0x2466   :  { %v5151_v40 = vpop.permute.xlu1 %5150 }
0x2468   :  { %v7368_v34 = vpop.eup %7367 }
0x2469   :  { %v4906_v37 = vsel %vm459_vm4, %v7368_v34, 0.0 }
0x246a   :  { %4907 = vadd.xlane.f32.xlu0 %v4906_v37  ;;  %v5149_v48 = vpop.permute.xlu1 %5148 }
0x246c   :  { %v7370_v50 = vpop.eup %7369 }
0x246d   :  { %v4909_v47 = vsel %vm459_vm4, %v7370_v50, 0.0 }
0x246e   :  { %4910 = vadd.xlane.f32.xlu0 %v4909_v47 }
0x2484   :  { %5070 = vrot.lane.b32.xlu0 %v8378_v29, %s7404_s23 }
0x24f3   :  { %v4908_v11 = vpop.xlane.xlu0 %4907 }
0x24f4   :  { %7371 = vrcp.f32 %v4908_v11 }
0x24f7   :  { %v4911_v30 = vpop.xlane.xlu0 %4910 }
0x24f8   :  { %7373 = vrcp.f32 %v4911_v30 }
0x24fb   :  { %v5071_v41 = vpop.permute.xlu0 %5070 }
0x2501   :  { %v7372_v36 = vpop.eup %7371 }
0x2502   :  { %v4913_v38 = vmul.f32 %v7372_v36, %v7368_v34 }
0x2504   :  { %7149 = vmatmul.mubr.msk.f32.vlgmr.msra.gmra.mxu0 %vm459_vm4, %v4913_v38 }
0x2505   :  { %v7374_v39 = vpop.eup %7373  ;;  %7157 = vmatpush3.xpose.msk.msra.mxu0 %vm459_vm4, %v5073_v35  ;;  %7158 = vmatprep.mubr.msk.f32.mxu0 %vm7402_vm3, %v7401_v5 }
0x2506   :  { %v4915_v20 = vmul.f32 %v7374_v39, %v7370_v50  ;;  %7166 = vmatprep.subr.mxu0 %v7401_v5 }
0x2508   :  { %7154 = vmatmul.mubr.msk.f32.vlgmr.msra.gmra.mxu1 %vm459_vm4, %v4915_v20  ;;  %7159 = vmatmul.mubr.msk.f32.vlgmr.msra.gmra.mxu0 %vm459_vm4, %v5071_v41 }
0x2509   :  { %7162 = vmatpush3.xpose.msk.msra.mxu1 %vm459_vm4, %v5151_v40  ;;  %7163 = vmatprep.mubr.msk.f32.mxu1 %vm7402_vm3, %v7401_v5 }
0x250a   :  { %7171 = vmatprep.subr.mxu1 %v7401_v5  ;;  %7168 = vmatprep.mubr.msk.f32.mxu0 %vm7402_vm3, %v7401_v5 }
0x250c   :  { %7164 = vmatmul.mubr.msk.f32.vlgmr.msra.gmra.mxu1 %vm459_vm4, %v5149_v48 }
0x250d   :  { %7173 = vmatprep.mubr.msk.f32.mxu1 %vm7402_vm3, %v7401_v5 }
0x25c4   :  { %v8480_v44 = vpop.f32.mrf.mxu0 }
0x25c6   :  { %v7150_v45 = vpop.f32.mrf.mxu0 }
0x25c8   :  { %v8482_v46 = vpop.f32.mrf.mxu1  ;;  %v5144_v53 = vpop.f32.mrf.mxu0 }
0x25c9   :  { %v5226_v55 = vmul.f32 0.17677669, %v5144_v53 }
0x25ca   :  { %v7155_v10 = vpop.f32.mrf.mxu1  ;;  %v7160_v6 = vpop.f32.mrf.mxu0 }
0x25cb   :  { %v5228_v51 = vsel %vm7672_vm5, %v5226_v55, -1e+30 }
0x25cc   :  { %v5222_v63 = vpop.f32.mrf.mxu1  ;;  %v5230_v25 = vsel %vm459_vm4, %v5228_v51, -inf }
0x25cd   :  { %v5227_v2 = vmul.f32 0.17677669, %v5222_v63  ;;  %5231 = vmax.xlane.f32.xlu0 %v5230_v25 }
0x25ce   :  { %v7165_v52 = vpop.f32.mrf.mxu1 }
0x25cf   :  { %v5229_v54 = vsel %vm7672_vm5, %v5227_v2, -1e+30  ;;  %v6407_v52 = vld [vmem:[%s8708_s6 + $0x50] sm:$0xff] }
0x25d0   :  { %v5233_v56 = vsel %vm459_vm4, %v5229_v54, -inf }
0x25d1   :  { %5234 = vmax.xlane.f32.xlu1 %v5233_v56  ;;  %v6405_v56 = vld [vmem:[%s8708_s6 + $0x40] sm:$0xff] }
0x25e2   :  { %5252 = vrot.lane.b32.xlu1 %v8396_v49, %s7404_s23 }
0x25e3   :  { %5328 = vrot.lane.b32.xlu0 %v8393_v33, %s7404_s23 }
0x25e6   :  { %5406 = vrot.lane.b32.xlu1 %v8382_v32, %s7405_s24 }
0x25ea   :  { %5484 = vrot.lane.b32.xlu1 %v8380_v31, %s7405_s24 }
0x25ee   :  { %5482 = vrot.lane.b32.xlu1 %v8376_v26, %s7405_s24 }
0x2656   :  { %v5232_v58 = vpop.xlane.xlu0 %5231 }
0x2657   :  { %v5236_v59 = vsub.f32 %v5228_v51, %v5232_v58 }
0x2659   :  { %v5238_v7 = vmul.f32 1.442695, %v5236_v59 }
0x265a   :  { %v5329_v62 = vpop.permute.xlu0 %5328  ;;  %v5235_v0 = vpop.xlane.xlu1 %5234 }
0x265b   :  { %7375 = vpow2.f32 %v5238_v7  ;;  %v5237_v4 = vsub.f32 %v5229_v54, %v5235_v0  ;;  %7172 = vmatpush3.msra.mxu1 %v5329_v62  ;;  %v6406_v54 = vld [vmem:[%s8708_s6 + $0x48] sm:$0xff] }
0x265c   :  { %7181 = vmatprep.subr.mxu1 %v7401_v5 }
0x265d   :  { %v5240_v14 = vmul.f32 1.442695, %v5237_v4 }
0x265e   :  { %v5253_v15 = vpop.permute.xlu1 %5252 }
0x265f   :  { %7377 = vpow2.f32 %v5240_v14  ;;  %7167 = vmatpush3.msra.mxu0 %v5253_v15 }
0x2660   :  { %7176 = vmatprep.subr.mxu0 %v7401_v5 }
0x2662   :  { %v5407_v12 = vpop.permute.xlu1 %5406 }
0x2666   :  { %v5485_v18 = vpop.permute.xlu1 %5484 }
0x2668   :  { %v7376_v31 = vpop.eup %7375 }
0x2669   :  { %v5242_v32 = vsel %vm459_vm4, %v7376_v31, 0.0 }
0x266a   :  { %5243 = vadd.xlane.f32.xlu0 %v5242_v32  ;;  %v5483_v8 = vpop.permute.xlu1 %5482 }
0x266c   :  { %v7378_v26 = vpop.eup %7377 }
0x266d   :  { %v5245_v1 = vsel %vm459_vm4, %v7378_v26, 0.0 }
0x266e   :  { %5246 = vadd.xlane.f32.xlu0 %v5245_v1 }
0x2684   :  { %5404 = vrot.lane.b32.xlu0 %v8378_v29, %s7405_s24 }
0x26f3   :  { %v5244_v3 = vpop.xlane.xlu0 %5243 }
0x26f4   :  { %7379 = vrcp.f32 %v5244_v3 }
0x26f7   :  { %v5247_v16 = vpop.xlane.xlu0 %5246 }
0x26f8   :  { %7381 = vrcp.f32 %v5247_v16 }
0x26fb   :  { %v5405_v29 = vpop.permute.xlu0 %5404 }
0x2701   :  { %v7380_v28 = vpop.eup %7379 }
0x2702   :  { %v5249_v60 = vmul.f32 %v7380_v28, %v7376_v31 }
0x2704   :  { %7169 = vmatmul.mubr.msk.f32.vlgmr.msra.gmra.mxu0 %vm459_vm4, %v5249_v60 }
0x2705   :  { %v7382_v27 = vpop.eup %7381  ;;  %7177 = vmatpush3.xpose.msk.msra.mxu0 %vm459_vm4, %v5407_v12  ;;  %7178 = vmatprep.mubr.msk.f32.mxu0 %vm7402_vm3, %v7401_v5 }
0x2706   :  { %v5251_v21 = vmul.f32 %v7382_v27, %v7378_v26  ;;  %7186 = vmatprep.subr.mxu0 %v7401_v5 }
0x2708   :  { %7174 = vmatmul.mubr.msk.f32.vlgmr.msra.gmra.mxu1 %vm459_vm4, %v5251_v21  ;;  %7179 = vmatmul.mubr.msk.f32.vlgmr.msra.gmra.mxu0 %vm459_vm4, %v5405_v29 }
0x2709   :  { %7182 = vmatpush3.xpose.msk.msra.mxu1 %vm459_vm4, %v5485_v18  ;;  %7183 = vmatprep.mubr.msk.f32.mxu1 %vm7402_vm3, %v7401_v5 }
0x270a   :  { %7191 = vmatprep.subr.mxu1 %v7401_v5  ;;  %7188 = vmatprep.mubr.msk.f32.mxu0 %vm7402_vm3, %v7401_v5 }
0x270c   :  { %7184 = vmatmul.mubr.msk.f32.vlgmr.msra.gmra.mxu1 %vm459_vm4, %v5483_v8 }
0x270d   :  { %7193 = vmatprep.mubr.msk.f32.mxu1 %vm7402_vm3, %v7401_v5 }
0x27c4   :  { %v5324_v22 = vpop.f32.mrf.mxu0 }
0x27c6   :  { %v7170_v23 = vpop.f32.mrf.mxu0 }
0x27c8   :  { %v5400_v19 = vpop.f32.mrf.mxu1  ;;  %v5478_v24 = vpop.f32.mrf.mxu0 }
0x27c9   :  { %v5560_v34 = vmul.f32 0.17677669, %v5478_v24 }
0x27ca   :  { %v7175_v37 = vpop.f32.mrf.mxu1  ;;  %v7180_v50 = vpop.f32.mrf.mxu0 }
0x27cb   :  { %v5562_v47 = vsel %vm7672_vm5, %v5560_v34, -1e+30 }
0x27cc   :  { %v5556_v11 = vpop.f32.mrf.mxu1  ;;  %v5564_v30 = vsel %vm459_vm4, %v5562_v47, -inf }
0x27cd   :  { %v5561_v35 = vmul.f32 0.17677669, %v5556_v11  ;;  %5565 = vmax.xlane.f32.xlu0 %v5564_v30  ;;  %v6416_v30 = vld [vmem:[%s8710_s10 + $0x58] sm:$0xff] }
0x27ce   :  { %v7185_v36 = vpop.f32.mrf.mxu1 }
0x27cf   :  { %v5563_v38 = vsel %vm7672_vm5, %v5561_v35, -1e+30  ;;  %v6415_v35 = vld [vmem:[%s8710_s10 + $0x50] sm:$0xff]  ;;  %v6414_v36 = vld [vmem:[%s8710_s10 + $0x48] sm:$0xff] }
0x27d0   :  { %v5567_v5 = vsel %vm459_vm4, %v5563_v38, -inf }
0x27d1   :  { %5568 = vmax.xlane.f32.xlu1 %v5567_v5  ;;  %v6436_v5 = vld [vmem:[%s8711_s12 + $0x178] sm:$0xff] }
0x27e2   :  { %5586 = vrot.lane.b32.xlu1 %v8396_v49, %s7405_s24 }
0x27e6   :  { %5740 = vrot.lane.b32.xlu1 %v8480_v44, %s7406_s25 }
0x27ea   :  { %5742 = vrot.lane.b32.xlu1 %v8482_v46, %s7406_s25 }
0x27ee   :  { %5750 = vrot.lane.b32.xlu1 %v5400_v19, %s7407_s26 }
0x2856   :  { %v5566_v39 = vpop.xlane.xlu0 %5565 }
0x2857   :  { %v5570_v40 = vsub.f32 %v5562_v47, %v5566_v39  ;;  %v6435_v39 = vld [vmem:[%s8711_s12 + $0x170] sm:$0xff] }
0x2859   :  { %v5572_v20 = vmul.f32 1.442695, %v5570_v40  ;;  %v6434_v40 = vld [vmem:[%s8711_s12 + $0x168] sm:$0xff] }
0x285a   :  { %v5569_v41 = vpop.xlane.xlu1 %5568 }
0x285b   :  { %7383 = vpow2.f32 %v5572_v20  ;;  %v5571_v13 = vsub.f32 %v5563_v38, %v5569_v41  ;;  %v6413_v38 = vld [vmem:[%s8710_s10 + $0x40] sm:$0xff]  ;;  %v6432_v41 = vld [vmem:[%s8711_s12 + $0x158] sm:$0xff] }
0x285c   :  { %v6433_v20 = vld [vmem:[%s8711_s12 + $0x160] sm:$0xff] }
0x285d   :  { %v5574_v48 = vmul.f32 1.442695, %v5571_v13  ;;  %v6431_v13 = vld [vmem:[%s8711_s12 + $0x150] sm:$0xff] }
0x285e   :  { %v5587_v45 = vpop.permute.xlu1 %5586 }
0x285f   :  { %7385 = vpow2.f32 %v5574_v48  ;;  %7187 = vmatpush3.msra.mxu0 %v5587_v45  ;;  %v6430_v48 = vld [vmem:[%s8711_s12 + $0x148] sm:$0xff]  ;;  %v6429_v45 = vld [vmem:[%s8711_s12 + $0x140] sm:$0xff] }
0x2862   :  { %v5741_v0 = vpop.permute.xlu1 %5740 }
0x2863   :  { %v5762_v15 = vsel %vm459_vm4, %v8438_v61, %v5741_v0  ;;  %v6410_v61 = vld [vmem:[%s8709_s7 + $0x2] ss:$0 sm:$0xff]  ;;  %v6423_v0 = vld [vmem:[%s8711_s12 + $0x110] sm:$0xff] }
0x2866   :  { %v5743_v4 = vpop.permute.xlu1 %5742 }
0x2867   :  { %v5763_v3 = vsel %vm459_vm4, %v8440_v57, %v5743_v4  ;;  %v6418_v4 = vld [vmem:[%s8712_s11 + $0x2] ss:$0 sm:$0xff] }
0x2868   :  { %v7384_v53 = vpop.eup %7383 }
0x2869   :  { %v5576_v49 = vsel %vm459_vm4, %v7384_v53, 0.0 }
0x286a   :  { %5577 = vadd.xlane.f32.xlu0 %v5576_v49  ;;  %v5751_v31 = vpop.permute.xlu1 %5750  ;;  %v6427_v49 = vld [vmem:[%s8711_s12 + $0x130] sm:$0xff] }
0x286b   :  { %v5765_v16 = vsel %vm1816_vm7, %v5763_v3, %v5751_v31 }
0x286c   :  { %v7386_v44 = vpop.eup %7385 }
0x286d   :  { %v5579_v55 = vsel %vm459_vm4, %v7386_v44, 0.0 }
0x286e   :  { %5580 = vadd.xlane.f32.xlu0 %v5579_v55  ;;  %v6425_v55 = vld [vmem:[%s8711_s12 + $0x120] sm:$0xff] }
0x2884   :  { %5662 = vrot.lane.b32.xlu0 %v8393_v33, %s7405_s24  ;;  %v6408_v33 = vld [vmem:[%s8708_s6 + $0x58] sm:$0xff] }
0x2885   :  { %7196 = vmatprep.subr.mxu0 %v6408_v33 }
0x2888   :  { %5748 = vrot.lane.b32.xlu0 %v5324_v22, %s7407_s26 }
0x28f3   :  { %v5578_v46 = vpop.xlane.xlu0 %5577 }
0x28f4   :  { %7387 = vrcp.f32 %v5578_v46 }
0x28f7   :  { %v5581_v10 = vpop.xlane.xlu0 %5580 }
0x28f8   :  { %7389 = vrcp.f32 %v5581_v10 }
0x28fb   :  { %v5663_v6 = vpop.permute.xlu0 %5662 }
0x28fc   :  { %7192 = vmatpush3.msra.mxu1 %v5663_v6 }
0x28fd   :  { %7207 = vmatprep.subr.mxu1 %v6416_v30 }
0x28ff   :  { %v5749_v14 = vpop.permute.xlu0 %5748 }
0x2900   :  { %v5764_v32 = vsel %vm1816_vm7, %v5762_v15, %v5749_v14 }
0x2901   :  { %v7388_v51 = vpop.eup %7387 }
0x2902   :  { %v5583_v63 = vmul.f32 %v7388_v51, %v7384_v53  ;;  %v6428_v53 = vld [vmem:[%s8711_s12 + $0x138] sm:$0xff] }
0x2904   :  { %7189 = vmatmul.mubr.msk.f32.vlgmr.msra.gmra.mxu0 %vm459_vm4, %v5583_v63 }
0x2905   :  { %v7390_v25 = vpop.eup %7389  ;;  %7197 = vmatpush3.msra.mxu0 %v6408_v33 }
0x2906   :  { %v5585_v2 = vmul.f32 %v7390_v25, %v7386_v44  ;;  %7198 = vmatprep.subr.mxu0 %v6407_v52  ;;  %v6426_v44 = vld [vmem:[%s8711_s12 + $0x128] sm:$0xff] }
0x2907   :  { %7199 = vmatpush3.msra.mxu0 %v6407_v52 }
0x2908   :  { %7194 = vmatmul.mubr.msk.f32.vlgmr.msra.gmra.mxu1 %vm459_vm4, %v5585_v2  ;;  %7200 = vmatprep.subr.mxu0 %v6406_v54 }
0x2909   :  { %7201 = vmatpush3.msra.mxu0 %v6406_v54  ;;  %7208 = vmatpush3.msra.mxu1 %v6416_v30 }
0x290a   :  { %7202 = vmatprep.subr.mxu0 %v6405_v56  ;;  %7209 = vmatprep.subr.mxu1 %v6415_v35 }
0x290b   :  { %7203 = vmatpush3.msra.mxu0 %v6405_v56  ;;  %7210 = vmatpush3.msra.mxu1 %v6415_v35 }
0x290c   :  { %7211 = vmatprep.subr.mxu1 %v6414_v36  ;;  %7218 = vmatprep.subr.mxu0 %v6436_v5 }
0x290d   :  { %7212 = vmatpush3.msra.mxu1 %v6414_v36 }
0x290e   :  { %7213 = vmatprep.subr.mxu1 %v6413_v38 }
0x290f   :  { %7214 = vmatpush3.msra.mxu1 %v6413_v38 }
0x29c4   :  { %v5658_v58 = vpop.f32.mrf.mxu0 }
0x29c5   :  { %5756 = vrot.lane.b32.xlu0 %v5658_v58, %s7408_s22 }
0x29c6   :  { %v7190_v59 = vpop.f32.mrf.mxu0 }
0x29c8   :  { %v5734_v7 = vpop.f32.mrf.mxu1 }
0x29c9   :  { %5758 = vrot.lane.b32.xlu1 %v5734_v7, %s7408_s22 }
0x29ca   :  { %v7195_v62 = vpop.f32.mrf.mxu1 }
0x29cb   :  { %v6424_v62 = vld [vmem:[%s8711_s12 + $0x118] sm:$0xff] }
0x2a37   :  { %v5757_v26 = vpop.permute.xlu0 %5756 }
0x2a38   :  { %v5766_v1 = vsel %vm1819_vm6, %v5764_v32, %v5757_v26 }
0x2a39   :  { %7204 = vmatprep.mubr.msk.f32.mxu0 %vm172_vm2, %v5766_v1 }
0x2a3b   :  { %v5759_v12 = vpop.permute.xlu1 %5758 }
0x2a3c   :  { %v5767_v28 = vsel %vm1819_vm6, %v5765_v16, %v5759_v12  ;;  %v6438_v16 = vld [vmem:[%s8713_s13 + $0x2] ss:$0 sm:$0xff] }
0x2a3d   :  { %7205 = vmatmul.mubr.msk.f32.vlgmr.msra.gmra.mxu0 %vm172_vm2, %v5767_v28 }
0x2a3e   :  { %7219 = vmatpush3.msra.mxu0 %v6436_v5 }
0x2a3f   :  { %7220 = vmatprep.subr.mxu0 %v6435_v39 }
0x2a40   :  { %7221 = vmatpush3.msra.mxu0 %v6435_v39 }
0x2a41   :  { %7222 = vmatprep.subr.mxu0 %v6434_v40 }
0x2a42   :  { %7223 = vmatpush3.msra.mxu0 %v6434_v40 }
0x2a43   :  { %7224 = vmatprep.subr.mxu0 %v6433_v20 }
0x2a44   :  { %7225 = vmatpush3.msra.mxu0 %v6433_v20  ;;  %v6439_v20 = vld [vmem:[%s8715_s14] ss:$0 sm:$0xff] }
0x2a45   :  { %7226 = vmatprep.subr.mxu0 %v6432_v41 }
0x2a46   :  { %7227 = vmatpush3.msra.mxu0 %v6432_v41 }
0x2a47   :  { %7228 = vmatprep.subr.mxu0 %v6431_v13 }
0x2a48   :  { %7229 = vmatpush3.msra.mxu0 %v6431_v13 }
0x2a49   :  { %7230 = vmatprep.subr.mxu0 %v6430_v48 }
0x2a4a   :  { %7231 = vmatpush3.msra.mxu0 %v6430_v48 }
0x2a4b   :  { %7232 = vmatprep.subr.mxu0 %v6429_v45 }
0x2a4c   :  { %7233 = vmatpush3.msra.mxu0 %v6429_v45 }
0x2a4d   :  { %7234 = vmatprep.subr.mxu0 %v6428_v53 }
0x2a4e   :  { %7235 = vmatpush3.msra.mxu0 %v6428_v53  ;;  %v6440_v53 = vld [vmem:[%s8716_s15] ss:$0 sm:$0xff] }
0x2a4f   :  { %7236 = vmatprep.subr.mxu0 %v6427_v49 }
0x2a50   :  { %7237 = vmatpush3.msra.mxu0 %v6427_v49 }
0x2a51   :  { %7238 = vmatprep.subr.mxu0 %v6426_v44 }
0x2a52   :  { %7239 = vmatpush3.msra.mxu0 %v6426_v44 }
0x2a53   :  { %7240 = vmatprep.subr.mxu0 %v6425_v55 }
0x2a54   :  { %7241 = vmatpush3.msra.mxu0 %v6425_v55 }
0x2a55   :  { %7242 = vmatprep.subr.mxu0 %v6424_v62 }
0x2a56   :  { %7243 = vmatpush3.msra.mxu0 %v6424_v62 }
0x2a57   :  { %7244 = vmatprep.subr.mxu0 %v6423_v0 }
0x2a58   :  { %7245 = vmatpush3.msra.mxu0 %v6423_v0 }
0x2afd   :  { %v7206_v60 = vpop.f32.mrf.mxu0 }
0x2afe   :  { %v5859_v27 = vadd.f32 %v7206_v60, %v6410_v61 }
0x2aff   :  { %v5853_v18 = vpop.f32.mrf.mxu0 }
0x2b00   :  { %v8570_v21 = vadd.f32 %v5859_v27, %v8304_v42  ;;  %v5854_v29 = vadd.f32 %v6410_v61, %v5853_v18 }
0x2b02   :  { %v8573_v57 = vadd.f32 %v5854_v29, %v8307_v43  ;;  %v5867_v8 = vsel %vm172_vm2, %v8570_v21, 0.0 }
0x2b03   :  { %5868 = vadd.xlane.f32.xlu1 %v5867_v8 }
0x2b04   :  { %v5864_v22 = vsel %vm172_vm2, %v8573_v57, 0.0 }
0x2b05   :  { %5865 = vadd.xlane.f32.xlu0 %v5864_v22 }
0x2b8c   :  { %v5869_v23 = vpop.xlane.xlu1 %5868 }
0x2b8d   :  { %v5871_v19 = vmul.f32 0.03125, %v5869_v23 }
0x2b8e   :  { %v5866_v24 = vpop.xlane.xlu0 %5865 }
0x2b8f   :  { %v5870_v34 = vmul.f32 0.03125, %v5866_v24  ;;  %v8580_v37 = vsub.f32 %v8570_v21, %v5871_v19 }
0x2b91   :  { %v8583_v42 = vsub.f32 %v8573_v57, %v5870_v34  ;;  %v5875_v47 = vmul.f32 %v8580_v37, %v8580_v37 }
0x2b93   :  { %v5874_v43 = vmul.f32 %v8583_v42, %v8583_v42  ;;  %v5879_v11 = vsel %vm172_vm2, %v5875_v47, 0.0  ;;  %v6139_v47 = vld [vmem:[%s8714_s16 + $0x8] sm:$0xff] }
0x2b95   :  { %v5876_v50 = vsel %vm172_vm2, %v5874_v43, 0.0  ;;  %v6141_v43 = vld [vmem:[%s8714_s16 + $0x18] sm:$0xff] }
0x2b96   :  { %5877 = vadd.xlane.f32.xlu0 %v5876_v50  ;;  %v6140_v50 = vld [vmem:[%s8714_s16 + $0x10] sm:$0xff]  ;;  %7253 = vmatprep.subr.mxu1 %v6141_v43 }
0x2b9a   :  { %5880 = vadd.xlane.f32.xlu0 %v5879_v11  ;;  %v6138_v11 = vld [vmem:[%s8714_s16] sm:$0xff] }
0x2c1f   :  { %v5878_v46 = vpop.xlane.xlu0 %5877 }
0x2c20   :  { %v5882_v10 = vmul.f32 0.03125, %v5878_v46  ;;  %v6441_v46 = vld [vmem:[%s8717_s17] ss:$0 sm:$0xff] }
0x2c22   :  { %v5884_v6 = vadd.f32 1e-05, %v5882_v10 }
0x2c23   :  { %v5881_v51 = vpop.xlane.xlu0 %5880 }
0x2c24   :  { %7391 = vrsqrt.f32 %v5884_v6  ;;  %v5883_v63 = vmul.f32 0.03125, %v5881_v51 }
0x2c26   :  { %v5885_v25 = vadd.f32 1e-05, %v5883_v63 }
0x2c28   :  { %7393 = vrsqrt.f32 %v5885_v25 }
0x2c31   :  { %v7392_v2 = vpop.eup %7391 }
0x2c32   :  { %v5888_v33 = vmul.f32 %v7392_v2, %v8583_v42 }
0x2c34   :  { %v5890_v52 = vmul.f32 %v8335_v9, %v5888_v33 }
0x2c35   :  { %v7394_v54 = vpop.eup %7393 }
0x2c36   :  { %v5889_v56 = vmul.f32 %v7394_v54, %v8580_v37  ;;  %v5892_v58 = vadd.f32 %v8341_v17, %v5890_v52 }
0x2c38   :  { %7215 = vmatprep.mubr.msk.f32.mxu1 %vm172_vm2, %v5892_v58  ;;  %v5891_v59 = vmul.f32 %v8335_v9, %v5889_v56  ;;  %v6422_v9 = vld [vmem:[%s8711_s12 + $0x108] sm:$0xff] }
0x2c39   :  { %7246 = vmatprep.subr.mxu0 %v6422_v9 }
0x2c3a   :  { %v5893_v7 = vadd.f32 %v8341_v17, %v5891_v59  ;;  %v6421_v17 = vld [vmem:[%s8711_s12 + $0x100] sm:$0xff]  ;;  %7247 = vmatpush3.msra.mxu0 %v6422_v9 }
0x2c3b   :  { %7248 = vmatprep.subr.mxu0 %v6421_v17 }
0x2c3c   :  { %7216 = vmatmul.mubr.msk.f32.vlgmr.msra.gmra.mxu1 %vm172_vm2, %v5893_v7  ;;  %7249 = vmatpush3.msra.mxu0 %v6421_v17 }
0x2c3d   :  { %7254 = vmatpush3.msra.mxu1 %v6141_v43 }
0x2c3e   :  { %7255 = vmatprep.subr.mxu1 %v6140_v50 }
0x2c3f   :  { %7256 = vmatpush3.msra.mxu1 %v6140_v50 }
0x2c40   :  { %7257 = vmatprep.subr.mxu1 %v6139_v47 }
0x2c41   :  { %7258 = vmatpush3.msra.mxu1 %v6139_v47 }
0x2c42   :  { %7259 = vmatprep.subr.mxu1 %v6138_v11 }
0x2c43   :  { %7260 = vmatpush3.msra.mxu1 %v6138_v11 }
0x2cfc   :  { %v7217_v14 = vpop.f32.mrf.mxu1 }
0x2cfd   :  { %v5985_v15 = vadd.f32 %v7217_v14, %v6418_v4 }
0x2cfe   :  { %v5979_v31 = vpop.f32.mrf.mxu1 }
0x2cff   :  { %v5980_v32 = vadd.f32 %v6418_v4, %v5979_v31  ;;  %v5989_v1 = vmax.f32 %v5985_v15, 0.0 }
0x2d01   :  { %v5988_v26 = vmax.f32 %v5980_v32, 0.0 }
0x2d03   :  { %7250 = vmatprep.mubr.f32.mxu0 %v5988_v26 }
0x2d04   :  { %7251 = vmatmul.mubr.f32.vlgmr.msra.gmra.mxu0 %v5989_v1 }
0x2dc4   :  { %v7252_v3 = vpop.f32.mrf.mxu0 }
0x2dc5   :  { %v6083_v12 = vadd.f32 %v7252_v3, %v8570_v21 }
0x2dc6   :  { %v6073_v28 = vpop.f32.mrf.mxu0 }
0x2dc7   :  { %v6093_v61 = vadd.f32 %v6438_v16, %v6083_v12  ;;  %v6082_v60 = vadd.f32 %v6073_v28, %v8573_v57 }
0x2dc9   :  { %v6092_v27 = vadd.f32 %v6438_v16, %v6082_v60  ;;  %v6099_v18 = vsel %vm172_vm2, %v6093_v61, 0.0 }
0x2dca   :  { %6100 = vadd.xlane.f32.xlu0 %v6099_v18 }
0x2dcb   :  { %v6096_v29 = vsel %vm172_vm2, %v6092_v27, 0.0 }
0x2dcc   :  { %6097 = vadd.xlane.f32.xlu1 %v6096_v29 }
0x2e53   :  { %v6101_v8 = vpop.xlane.xlu0 %6100 }
0x2e54   :  { %v6103_v22 = vmul.f32 0.03125, %v6101_v8 }
0x2e55   :  { %v6098_v23 = vpop.xlane.xlu1 %6097 }
0x2e56   :  { %v6105_v19 = vsub.f32 %v6093_v61, %v6103_v22  ;;  %v6102_v24 = vmul.f32 0.03125, %v6098_v23 }
0x2e58   :  { %v6104_v34 = vsub.f32 %v6092_v27, %v6102_v24  ;;  %v6107_v37 = vmul.f32 %v6105_v19, %v6105_v19 }
0x2e5a   :  { %v6111_v21 = vsel %vm172_vm2, %v6107_v37, 0.0  ;;  %v6106_v42 = vmul.f32 %v6104_v34, %v6104_v34 }
0x2e5b   :  { %6112 = vadd.xlane.f32.xlu0 %v6111_v21 }
0x2e5c   :  { %v6108_v57 = vsel %vm172_vm2, %v6106_v42, 0.0 }
0x2e5d   :  { %6109 = vadd.xlane.f32.xlu1 %v6108_v57 }
0x2ee4   :  { %v6113_v30 = vpop.xlane.xlu0 %6112 }
0x2ee5   :  { %v6115_v35 = vmul.f32 0.03125, %v6113_v30 }
0x2ee6   :  { %v6110_v36 = vpop.xlane.xlu1 %6109 }
0x2ee7   :  { %v6117_v38 = vadd.f32 1e-05, %v6115_v35  ;;  %v6114_v5 = vmul.f32 0.03125, %v6110_v36 }
0x2ee9   :  { %7395 = vrsqrt.f32 %v6117_v38  ;;  %v6116_v39 = vadd.f32 1e-05, %v6114_v5 }
0x2eeb   :  { %7397 = vrsqrt.f32 %v6116_v39 }
0x2ef6   :  { %v7396_v40 = vpop.eup %7395 }
0x2ef7   :  { %v6121_v41 = vmul.f32 %v7396_v40, %v6105_v19 }
0x2ef8   :  { %v7398_v13 = vpop.eup %7397 }
0x2ef9   :  { %v6120_v48 = vmul.f32 %v7398_v13, %v6104_v34  ;;  %v6129_v45 = vmul.f32 %v6439_v20, %v6121_v41 }
0x2efb   :  { %v6128_v49 = vmul.f32 %v6439_v20, %v6120_v48  ;;  %v6137_v55 = vadd.f32 %v6440_v53, %v6129_v45 }
0x2efd   :  { %v6136_v44 = vadd.f32 %v6440_v53, %v6128_v49 }
0x2eff   :  { %7261 = vmatprep.mubr.msk.f32.mxu1 %vm172_vm2, %v6136_v44 }
0x2f00   :  { %7262 = vmatmul.mubr.msk.f32.vlgmr.msra.gmra.mxu1 %vm172_vm2, %v6137_v55 }
0x2fc0   :  { %v7263_v10 = vpop.f32.mrf.mxu1 }
0x2fc1   :  { %v6227_v6 = vadd.f32 %v7263_v10, %v6441_v46 }
0x2fc2   :  { %v6221_v51 = vpop.f32.mrf.mxu1 }
0x2fc3   :  { %6231 = vst [vmem:[%s8718_s18 + $0x8] sm:$0xff] %v6227_v6  ;;  %v6222_v63 = vadd.f32 %v6441_v46, %v6221_v51 }
0x2fc5   :  { %6230 = vst [vmem:[%s8718_s18] sm:$0xff] %v6222_v63 }

</bundles_post_ra>
